<compile_context>
chip_gen: v7x
topology: tpu7x:2x2x1
jax: 0.10.0
libtpu: 0.0.40
codegen_flags: <defaults>
</compile_context>

<pallas_src>
import functools
import math

import numpy as np
import jax
import jax.numpy as jnp
from jax import lax
from jax.experimental import pallas as pl
from jax.experimental.pallas import tpu as pltpu


def _round_up(n, m):
    return ((n + m - 1) // m) * m


def _pad_to(arr, axis, size):
    pad = size - arr.shape[axis]
    if pad == 0:
        return arr
    widths = [(0, 0)] * arr.ndim
    widths[axis] = (0, pad)
    return jnp.pad(arr, widths)


def _lstm_fc_kernel(num_layers, T, Bp, Hp, Cp, *refs):
    """Stacked LSTM over T steps + FC fused into the last layer's recurrence.

    refs = [x(T,Bp,Dp),
            (w_ih(Dl_p,4Hp), w_hh(Hp,4Hp), bias(1,4Hp)) * num_layers,
            fc_w(T,Hp,Cp), fc_b(1,Cp),
            out(Bp,Cp),
            seq_scr(T,Bp,Hp), gates_scr(T,Bp,4Hp)]
    """
    x_ref = refs[0]
    layer_refs = refs[1:1 + 3 * num_layers]
    fcw_ref = refs[1 + 3 * num_layers]   # (T, Hp, Cp)
    fcb_ref = refs[2 + 3 * num_layers]   # (1, Cp)
    out_ref = refs[3 + 3 * num_layers]   # (Bp, Cp)
    seq_scr, gates_scr = refs[4 + 3 * num_layers:]

    G = 4 * Hp

    for l in range(num_layers):
        is_last = (l == num_layers - 1)
        wih_ref = layer_refs[3 * l]       # (Dl_p, 4Hp)
        whh_ref = layer_refs[3 * l + 1]   # (Hp, 4Hp)
        b_ref = layer_refs[3 * l + 2]     # (1, 4Hp)

        # Hoisted input projection: one big matmul over all timesteps, bias
        # folded in.  Layer 0 reads the kernel input; deeper layers read the
        # previous layer's output sequence (read before any overwrite).
        if l == 0:
            x_all = x_ref[...].reshape(T * Bp, -1)          # (T*Bp, Dp)
        else:
            x_all = seq_scr[...].reshape(T * Bp, Hp)        # (T*Bp, Hp)
        gates_in = (jnp.dot(x_all, wih_ref[...],
                            preferred_element_type=jnp.float32)
                    + b_ref[...])                           # (T*Bp, 4Hp)
        gates_scr[...] = gates_in.reshape(T, Bp, G)

        whh = whh_ref[...]  # hoisted out of the unrolled recurrence

        def step(t, carry, whh=whh, is_last=is_last):
            if is_last:
                h, c, acc = carry
            else:
                h, c = carry
            gates = gates_scr[t] + jnp.dot(
                h, whh, preferred_element_type=jnp.float32)   # (Bp, 4Hp)
            # Lane-aligned gate slices (Hp multiple of 128); PyTorch nn.LSTM
            # gate order (i, f, g, o).
            i_g = jax.nn.sigmoid(gates[:, 0 * Hp:1 * Hp])
            f_g = jax.nn.sigmoid(gates[:, 1 * Hp:2 * Hp])
            g_g = jnp.tanh(gates[:, 2 * Hp:3 * Hp])
            o_g = jax.nn.sigmoid(gates[:, 3 * Hp:4 * Hp])
            c_new = f_g * c + i_g * g_g
            h_new = o_g * jnp.tanh(c_new)
            if is_last:
                # Fused FC: accumulate this timestep's contribution directly;
                # no seq store, no epilogue transpose.
                acc = acc + jnp.dot(h_new, fcw_ref[t],
                                    preferred_element_type=jnp.float32)
                return (h_new, c_new, acc)
            seq_scr[t] = h_new
            return (h_new, c_new)

        zeros = jnp.zeros((Bp, Hp), jnp.float32)
        if is_last:
            init = (zeros, zeros, jnp.zeros((Bp, Cp), jnp.float32))
            _, _, acc = lax.fori_loop(0, T, step, init, unroll=True)
            out_ref[...] = acc + fcb_ref[...]
        else:
            lax.fori_loop(0, T, step, (zeros, zeros), unroll=True)


def lstm_all_forward(x, params, hidden_size, num_layers, num_classes):
    """x: (B, T, D_in) float32 — matches the PyTorch batch_first layout."""
    B, T, D = x.shape
    H, C = hidden_size, num_classes
    Bp = _round_up(B, 8)      # sublane-aligned batch
    Hp = _round_up(H, 128)    # lane-aligned per-gate hidden
    Dp = _round_up(D, 128)    # lane-aligned input features
    Cp = _round_up(C, 128)    # lane-dense output

    # Time-major, zero-padded batch / feature dims.
    x_tm = jnp.transpose(x, (1, 0, 2))                 # (T, B, D)
    x_tm = _pad_to(_pad_to(x_tm, 1, Bp), 2, Dp)        # (T, Bp, Dp)

    def pad_gate_cols(w):  # (rows, 4H) -> (rows, 4Hp) with per-gate padding
        rows = w.shape[0]
        return _pad_to(w.reshape(rows, 4, H), 2, Hp).reshape(rows, 4 * Hp)

    inputs = [x_tm]
    for l in range(num_layers):
        w_ih, w_hh, b_ih, b_hh = params[f"layer{l}"]
        dp_l = Dp if l == 0 else Hp
        wih = _pad_to(pad_gate_cols(w_ih.T), 0, dp_l)              # (Dl_p, 4Hp)
        whh = _pad_to(pad_gate_cols(w_hh.T), 0, Hp)                # (Hp, 4Hp)
        bias = _pad_to((b_ih + b_hh).reshape(4, H), 1, Hp).reshape(1, 4 * Hp)
        inputs += [wih, whh, bias]

    fc_w, fc_b = params["fc"]                          # (C, T*H), (C,)
    fcw = fc_w.T.reshape(T, H, C)                      # feature index t*H + h
    fcw = _pad_to(_pad_to(fcw, 1, Hp), 2, Cp)          # (T, Hp, Cp)
    fcb = _pad_to(fc_b, 0, Cp).reshape(1, Cp)
    inputs += [fcw, fcb]

    # All weights/activations fit comfortably in VMEM at these shapes.
    # For large H/T, stream weights from HBM (memory_space=pl.ANY +
    # make_async_copy double-buffering) and tile T with an "arbitrary" grid.
    kernel = functools.partial(_lstm_fc_kernel, num_layers, T, Bp, Hp, Cp)
    out = pl.pallas_call(
        kernel,
        out_shape=jax.ShapeDtypeStruct((Bp, Cp), jnp.float32),
        in_specs=[pl.BlockSpec(memory_space=pltpu.MemorySpace.VMEM)
                  for _ in inputs],
        out_specs=pl.BlockSpec(memory_space=pltpu.MemorySpace.VMEM),
        scratch_shapes=[
            pltpu.VMEM((T, Bp, Hp), jnp.float32),        # inter-layer seq
            pltpu.VMEM((T, Bp, 4 * Hp), jnp.float32),    # hoisted input gates
        ],
    )(*inputs)
    return out[:B, :C]


def ref_forward(x, params, hidden_size, num_layers, num_classes):
    """Pure-JAX reference reproducing nn.LSTM (batch_first) + nn.Linear."""
    B, T, _ = x.shape
    H = hidden_size
    inp = x
    for l in range(num_layers):
        w_ih, w_hh, b_ih, b_hh = params[f"layer{l}"]
        h = jnp.zeros((B, H), jnp.float32)
        c = jnp.zeros((B, H), jnp.float32)
        outs = []
        for t in range(T):
            g = inp[:, t, :] @ w_ih.T + b_ih + h @ w_hh.T + b_hh
            i = jax.nn.sigmoid(g[:, :H])
            f = jax.nn.sigmoid(g[:, H:2 * H])
            gg = jnp.tanh(g[:, 2 * H:3 * H])
            o = jax.nn.sigmoid(g[:, 3 * H:])
            c = f * c + i * gg
            h = o * jnp.tanh(c)
            outs.append(h)
        inp = jnp.stack(outs, axis=1)          # (B, T, H)
    flat = inp.reshape(B, T * H)
    fc_w, fc_b = params["fc"]
    return flat @ fc_w.T + fc_b


if __name__ == "__main__":
    # Small shapes consistent with the module's forward:
    B, T, D_IN, H, L, C = 2, 8, 16, 32, 2, 10

    key = jax.random.PRNGKey(0)
    params = {}
    bound = float(1.0 / math.sqrt(H))
    for l in range(L):
        d = D_IN if l == 0 else H
        key, k1, k2, k3, k4 = jax.random.split(key, 5)
        params[f"layer{l}"] = (
            jax.random.uniform(k1, (4 * H, d), jnp.float32, -bound, bound),
            jax.random.uniform(k2, (4 * H, H), jnp.float32, -bound, bound),
            jax.random.uniform(k3, (4 * H,), jnp.float32, -bound, bound),
            jax.random.uniform(k4, (4 * H,), jnp.float32, -bound, bound),
        )
    key, k1, k2, kx = jax.random.split(key, 4)
    fc_bound = float(1.0 / math.sqrt(H * T))
    params["fc"] = (
        jax.random.uniform(k1, (C, H * T), jnp.float32, -fc_bound, fc_bound),
        jax.random.uniform(k2, (C,), jnp.float32, -fc_bound, fc_bound),
    )

    x = jax.random.normal(kx, (B, T, D_IN), jnp.float32)

    out = lstm_all_forward(x, params, H, L, C)
    out = jax.block_until_ready(out)
    assert out.shape == (B, C)

    ref = ref_forward(x, params, H, L, C)
    np.testing.assert_allclose(np.asarray(out), np.asarray(ref),
                               rtol=1e-4, atol=1e-4)
    print("KERNEL_OK")
</pallas_src>

<mosaic_0001>
module attributes {stable_mosaic.version = 11 : i64} {
  func.func @_lstm_fc_kernel(%arg0: memref<8x8x128xf32, #tpu.memory_space<vmem>>, %arg1: memref<128x512xf32, #tpu.memory_space<vmem>>, %arg2: memref<128x512xf32, #tpu.memory_space<vmem>>, %arg3: memref<1x512xf32, #tpu.memory_space<vmem>>, %arg4: memref<128x512xf32, #tpu.memory_space<vmem>>, %arg5: memref<128x512xf32, #tpu.memory_space<vmem>>, %arg6: memref<1x512xf32, #tpu.memory_space<vmem>>, %arg7: memref<8x128x128xf32, #tpu.memory_space<vmem>>, %arg8: memref<1x128xf32, #tpu.memory_space<vmem>>, %arg9: memref<8x128xf32, #tpu.memory_space<vmem>>, %arg10: memref<8x8x128xf32, #tpu.memory_space<vmem>>, %arg11: memref<8x8x512xf32, #tpu.memory_space<vmem>>) attributes {dimension_semantics = [], scalar_prefetch = 0 : i64, scratch_operands = 2 : i64, tpu.core_type = #tpu.core_type<tc>} {
    %c0 = arith.constant 0 : index
    %c0_0 = arith.constant 0 : index
    %c0_1 = arith.constant 0 : index
    %0 = vector.load %arg0[%c0, %c0_0, %c0_1] : memref<8x8x128xf32, #tpu.memory_space<vmem>>, vector<8x8x128xf32>
    %1 = vector.shape_cast %0 : vector<8x8x128xf32> to vector<64x128xf32>
    %c0_2 = arith.constant 0 : index
    %c0_3 = arith.constant 0 : index
    %2 = vector.load %arg1[%c0_2, %c0_3] : memref<128x512xf32, #tpu.memory_space<vmem>>, vector<128x512xf32>
    %cst = arith.constant dense<0.000000e+00> : vector<64x512xf32>
    %3 = tpu.matmul %1, %2, %cst {dimension_numbers = #tpu.dot_dimension_numbers<[1], [0], [0], [1], [0, 0, 1, 1], [], []>} : vector<64x128xf32>, vector<128x512xf32>, vector<64x512xf32> -> vector<64x512xf32>
    %c0_4 = arith.constant 0 : index
    %c0_5 = arith.constant 0 : index
    %4 = vector.load %arg3[%c0_4, %c0_5] : memref<1x512xf32, #tpu.memory_space<vmem>>, vector<1x512xf32>
    %5 = vector.broadcast %4 : vector<1x512xf32> to vector<64x512xf32>
    %6 = arith.addf %3, %5 : vector<64x512xf32>
    %7 = vector.shape_cast %6 : vector<64x512xf32> to vector<8x8x512xf32>
    %c0_6 = arith.constant 0 : index
    %c0_7 = arith.constant 0 : index
    %c0_8 = arith.constant 0 : index
    %8 = vector.load %arg11[%c0_6, %c0_7, %c0_8] : memref<8x8x512xf32, #tpu.memory_space<vmem>>, vector<8x8x512xf32>
    tpu.vector_store %arg11[%c0_6, %c0_7, %c0_8], %7 {strides = array<i32>} : memref<8x8x512xf32, #tpu.memory_space<vmem>>, vector<8x8x512xf32>,
    %c0_9 = arith.constant 0 : index
    %c0_10 = arith.constant 0 : index
    %9 = vector.load %arg2[%c0_9, %c0_10] : memref<128x512xf32, #tpu.memory_space<vmem>>, vector<128x512xf32>
    %cst_11 = arith.constant 0.000000e+00 : f32
    %10 = vector.broadcast %cst_11 : f32 to vector<8x128xf32>
    %c0_i32 = arith.constant 0 : i32
    %11 = arith.index_cast %c0_i32 : i32 to index
    %c0_12 = arith.constant 0 : index
    %c0_13 = arith.constant 0 : index
    %12 = vector.load %arg11[%11, %c0_12, %c0_13] : memref<8x8x512xf32, #tpu.memory_space<vmem>>, vector<1x8x512xf32>
    %13 = vector.shape_cast %12 : vector<1x8x512xf32> to vector<8x512xf32>
    %cst_14 = arith.constant dense<0.000000e+00> : vector<8x512xf32>
    %14 = tpu.matmul %10, %9, %cst_14 {dimension_numbers = #tpu.dot_dimension_numbers<[1], [0], [0], [1], [0, 0, 1, 1], [], []>} : vector<8x128xf32>, vector<128x512xf32>, vector<8x512xf32> -> vector<8x512xf32>
    %15 = arith.addf %13, %14 : vector<8x512xf32>
    %16 = vector.extract_strided_slice %15 {offsets = [0, 0], sizes = [8, 128], strides = [1, 1]} : vector<8x512xf32> to vector<8x128xf32>
    %17 = arith.negf %16 : vector<8x128xf32>
    %18 = math.exp %17 : vector<8x128xf32>
    %cst_15 = arith.constant 1.000000e+00 : f32
    %19 = vector.broadcast %cst_15 : f32 to vector<8x128xf32>
    %20 = arith.addf %19, %18 : vector<8x128xf32>
    %21 = arith.divf %19, %20 : vector<8x128xf32>
    %22 = vector.extract_strided_slice %15 {offsets = [0, 128], sizes = [8, 128], strides = [1, 1]} : vector<8x512xf32> to vector<8x128xf32>
    %23 = arith.negf %22 : vector<8x128xf32>
    %24 = math.exp %23 : vector<8x128xf32>
    %cst_16 = arith.constant 1.000000e+00 : f32
    %25 = vector.broadcast %cst_16 : f32 to vector<8x128xf32>
    %26 = arith.addf %25, %24 : vector<8x128xf32>
    %27 = arith.divf %25, %26 : vector<8x128xf32>
    %28 = vector.extract_strided_slice %15 {offsets = [0, 256], sizes = [8, 128], strides = [1, 1]} : vector<8x512xf32> to vector<8x128xf32>
    %29 = math.tanh %28 : vector<8x128xf32>
    %30 = vector.extract_strided_slice %15 {offsets = [0, 384], sizes = [8, 128], strides = [1, 1]} : vector<8x512xf32> to vector<8x128xf32>
    %31 = arith.negf %30 : vector<8x128xf32>
    %32 = math.exp %31 : vector<8x128xf32>
    %cst_17 = arith.constant 1.000000e+00 : f32
    %33 = vector.broadcast %cst_17 : f32 to vector<8x128xf32>
    %34 = arith.addf %33, %32 : vector<8x128xf32>
    %35 = arith.divf %33, %34 : vector<8x128xf32>
    %36 = arith.mulf %27, %10 : vector<8x128xf32>
    %37 = arith.mulf %21, %29 : vector<8x128xf32>
    %38 = arith.addf %36, %37 : vector<8x128xf32>
    %39 = math.tanh %38 : vector<8x128xf32>
    %40 = arith.mulf %35, %39 : vector<8x128xf32>
    %41 = arith.index_cast %c0_i32 : i32 to index
    %c0_18 = arith.constant 0 : index
    %c0_19 = arith.constant 0 : index
    %42 = vector.load %arg10[%41, %c0_18, %c0_19] : memref<8x8x128xf32, #tpu.memory_space<vmem>>, vector<1x8x128xf32>
    %43 = vector.shape_cast %42 : vector<1x8x128xf32> to vector<8x128xf32>
    %44 = vector.shape_cast %40 : vector<8x128xf32> to vector<1x8x128xf32>
    tpu.vector_store %arg10[%41, %c0_18, %c0_19], %44 {strides = array<i32>} : memref<8x8x128xf32, #tpu.memory_space<vmem>>, vector<1x8x128xf32>,
    %c1_i32 = arith.constant 1 : i32
    %45 = arith.index_cast %c1_i32 : i32 to index
    %c0_20 = arith.constant 0 : index
    %c0_21 = arith.constant 0 : index
    %46 = vector.load %arg11[%45, %c0_20, %c0_21] : memref<8x8x512xf32, #tpu.memory_space<vmem>>, vector<1x8x512xf32>
    %47 = vector.shape_cast %46 : vector<1x8x512xf32> to vector<8x512xf32>
    %cst_22 = arith.constant dense<0.000000e+00> : vector<8x512xf32>
    %48 = tpu.matmul %40, %9, %cst_22 {dimension_numbers = #tpu.dot_dimension_numbers<[1], [0], [0], [1], [0, 0, 1, 1], [], []>} : vector<8x128xf32>, vector<128x512xf32>, vector<8x512xf32> -> vector<8x512xf32>
    %49 = arith.addf %47, %48 : vector<8x512xf32>
    %50 = vector.extract_strided_slice %49 {offsets = [0, 0], sizes = [8, 128], strides = [1, 1]} : vector<8x512xf32> to vector<8x128xf32>
    %51 = arith.negf %50 : vector<8x128xf32>
    %52 = math.exp %51 : vector<8x128xf32>
    %cst_23 = arith.constant 1.000000e+00 : f32
    %53 = vector.broadcast %cst_23 : f32 to vector<8x128xf32>
    %54 = arith.addf %53, %52 : vector<8x128xf32>
    %55 = arith.divf %53, %54 : vector<8x128xf32>
    %56 = vector.extract_strided_slice %49 {offsets = [0, 128], sizes = [8, 128], strides = [1, 1]} : vector<8x512xf32> to vector<8x128xf32>
    %57 = arith.negf %56 : vector<8x128xf32>
    %58 = math.exp %57 : vector<8x128xf32>
    %cst_24 = arith.constant 1.000000e+00 : f32
    %59 = vector.broadcast %cst_24 : f32 to vector<8x128xf32>
    %60 = arith.addf %59, %58 : vector<8x128xf32>
    %61 = arith.divf %59, %60 : vector<8x128xf32>
    %62 = vector.extract_strided_slice %49 {offsets = [0, 256], sizes = [8, 128], strides = [1, 1]} : vector<8x512xf32> to vector<8x128xf32>
    %63 = math.tanh %62 : vector<8x128xf32>
    %64 = vector.extract_strided_slice %49 {offsets = [0, 384], sizes = [8, 128], strides = [1, 1]} : vector<8x512xf32> to vector<8x128xf32>
    %65 = arith.negf %64 : vector<8x128xf32>
    %66 = math.exp %65 : vector<8x128xf32>
    %cst_25 = arith.constant 1.000000e+00 : f32
    %67 = vector.broadcast %cst_25 : f32 to vector<8x128xf32>
    %68 = arith.addf %67, %66 : vector<8x128xf32>
    %69 = arith.divf %67, %68 : vector<8x128xf32>
    %70 = arith.mulf %61, %38 : vector<8x128xf32>
    %71 = arith.mulf %55, %63 : vector<8x128xf32>
    %72 = arith.addf %70, %71 : vector<8x128xf32>
    %73 = math.tanh %72 : vector<8x128xf32>
    %74 = arith.mulf %69, %73 : vector<8x128xf32>
    %75 = arith.index_cast %c1_i32 : i32 to index
    %c0_26 = arith.constant 0 : index
    %c0_27 = arith.constant 0 : index
    %76 = vector.load %arg10[%75, %c0_26, %c0_27] : memref<8x8x128xf32, #tpu.memory_space<vmem>>, vector<1x8x128xf32>
    %77 = vector.shape_cast %76 : vector<1x8x128xf32> to vector<8x128xf32>
    %78 = vector.shape_cast %74 : vector<8x128xf32> to vector<1x8x128xf32>
    tpu.vector_store %arg10[%75, %c0_26, %c0_27], %78 {strides = array<i32>} : memref<8x8x128xf32, #tpu.memory_space<vmem>>, vector<1x8x128xf32>,
    %c2_i32 = arith.constant 2 : i32
    %79 = arith.index_cast %c2_i32 : i32 to index
    %c0_28 = arith.constant 0 : index
    %c0_29 = arith.constant 0 : index
    %80 = vector.load %arg11[%79, %c0_28, %c0_29] : memref<8x8x512xf32, #tpu.memory_space<vmem>>, vector<1x8x512xf32>
    %81 = vector.shape_cast %80 : vector<1x8x512xf32> to vector<8x512xf32>
    %cst_30 = arith.constant dense<0.000000e+00> : vector<8x512xf32>
    %82 = tpu.matmul %74, %9, %cst_30 {dimension_numbers = #tpu.dot_dimension_numbers<[1], [0], [0], [1], [0, 0, 1, 1], [], []>} : vector<8x128xf32>, vector<128x512xf32>, vector<8x512xf32> -> vector<8x512xf32>
    %83 = arith.addf %81, %82 : vector<8x512xf32>
    %84 = vector.extract_strided_slice %83 {offsets = [0, 0], sizes = [8, 128], strides = [1, 1]} : vector<8x512xf32> to vector<8x128xf32>
    %85 = arith.negf %84 : vector<8x128xf32>
    %86 = math.exp %85 : vector<8x128xf32>
    %cst_31 = arith.constant 1.000000e+00 : f32
    %87 = vector.broadcast %cst_31 : f32 to vector<8x128xf32>
    %88 = arith.addf %87, %86 : vector<8x128xf32>
    %89 = arith.divf %87, %88 : vector<8x128xf32>
    %90 = vector.extract_strided_slice %83 {offsets = [0, 128], sizes = [8, 128], strides = [1, 1]} : vector<8x512xf32> to vector<8x128xf32>
    %91 = arith.negf %90 : vector<8x128xf32>
    %92 = math.exp %91 : vector<8x128xf32>
    %cst_32 = arith.constant 1.000000e+00 : f32
    %93 = vector.broadcast %cst_32 : f32 to vector<8x128xf32>
    %94 = arith.addf %93, %92 : vector<8x128xf32>
    %95 = arith.divf %93, %94 : vector<8x128xf32>
    %96 = vector.extract_strided_slice %83 {offsets = [0, 256], sizes = [8, 128], strides = [1, 1]} : vector<8x512xf32> to vector<8x128xf32>
    %97 = math.tanh %96 : vector<8x128xf32>
    %98 = vector.extract_strided_slice %83 {offsets = [0, 384], sizes = [8, 128], strides = [1, 1]} : vector<8x512xf32> to vector<8x128xf32>
    %99 = arith.negf %98 : vector<8x128xf32>
    %100 = math.exp %99 : vector<8x128xf32>
    %cst_33 = arith.constant 1.000000e+00 : f32
    %101 = vector.broadcast %cst_33 : f32 to vector<8x128xf32>
    %102 = arith.addf %101, %100 : vector<8x128xf32>
    %103 = arith.divf %101, %102 : vector<8x128xf32>
    %104 = arith.mulf %95, %72 : vector<8x128xf32>
    %105 = arith.mulf %89, %97 : vector<8x128xf32>
    %106 = arith.addf %104, %105 : vector<8x128xf32>
    %107 = math.tanh %106 : vector<8x128xf32>
    %108 = arith.mulf %103, %107 : vector<8x128xf32>
    %109 = arith.index_cast %c2_i32 : i32 to index
    %c0_34 = arith.constant 0 : index
    %c0_35 = arith.constant 0 : index
    %110 = vector.load %arg10[%109, %c0_34, %c0_35] : memref<8x8x128xf32, #tpu.memory_space<vmem>>, vector<1x8x128xf32>
    %111 = vector.shape_cast %110 : vector<1x8x128xf32> to vector<8x128xf32>
    %112 = vector.shape_cast %108 : vector<8x128xf32> to vector<1x8x128xf32>
    tpu.vector_store %arg10[%109, %c0_34, %c0_35], %112 {strides = array<i32>} : memref<8x8x128xf32, #tpu.memory_space<vmem>>, vector<1x8x128xf32>,
    %c3_i32 = arith.constant 3 : i32
    %113 = arith.index_cast %c3_i32 : i32 to index
    %c0_36 = arith.constant 0 : index
    %c0_37 = arith.constant 0 : index
    %114 = vector.load %arg11[%113, %c0_36, %c0_37] : memref<8x8x512xf32, #tpu.memory_space<vmem>>, vector<1x8x512xf32>
    %115 = vector.shape_cast %114 : vector<1x8x512xf32> to vector<8x512xf32>
    %cst_38 = arith.constant dense<0.000000e+00> : vector<8x512xf32>
    %116 = tpu.matmul %108, %9, %cst_38 {dimension_numbers = #tpu.dot_dimension_numbers<[1], [0], [0], [1], [0, 0, 1, 1], [], []>} : vector<8x128xf32>, vector<128x512xf32>, vector<8x512xf32> -> vector<8x512xf32>
    %117 = arith.addf %115, %116 : vector<8x512xf32>
    %118 = vector.extract_strided_slice %117 {offsets = [0, 0], sizes = [8, 128], strides = [1, 1]} : vector<8x512xf32> to vector<8x128xf32>
    %119 = arith.negf %118 : vector<8x128xf32>
    %120 = math.exp %119 : vector<8x128xf32>
    %cst_39 = arith.constant 1.000000e+00 : f32
    %121 = vector.broadcast %cst_39 : f32 to vector<8x128xf32>
    %122 = arith.addf %121, %120 : vector<8x128xf32>
    %123 = arith.divf %121, %122 : vector<8x128xf32>
    %124 = vector.extract_strided_slice %117 {offsets = [0, 128], sizes = [8, 128], strides = [1, 1]} : vector<8x512xf32> to vector<8x128xf32>
    %125 = arith.negf %124 : vector<8x128xf32>
    %126 = math.exp %125 : vector<8x128xf32>
    %cst_40 = arith.constant 1.000000e+00 : f32
    %127 = vector.broadcast %cst_40 : f32 to vector<8x128xf32>
    %128 = arith.addf %127, %126 : vector<8x128xf32>
    %129 = arith.divf %127, %128 : vector<8x128xf32>
    %130 = vector.extract_strided_slice %117 {offsets = [0, 256], sizes = [8, 128], strides = [1, 1]} : vector<8x512xf32> to vector<8x128xf32>
    %131 = math.tanh %130 : vector<8x128xf32>
    %132 = vector.extract_strided_slice %117 {offsets = [0, 384], sizes = [8, 128], strides = [1, 1]} : vector<8x512xf32> to vector<8x128xf32>
    %133 = arith.negf %132 : vector<8x128xf32>
    %134 = math.exp %133 : vector<8x128xf32>
    %cst_41 = arith.constant 1.000000e+00 : f32
    %135 = vector.broadcast %cst_41 : f32 to vector<8x128xf32>
    %136 = arith.addf %135, %134 : vector<8x128xf32>
    %137 = arith.divf %135, %136 : vector<8x128xf32>
    %138 = arith.mulf %129, %106 : vector<8x128xf32>
    %139 = arith.mulf %123, %131 : vector<8x128xf32>
    %140 = arith.addf %138, %139 : vector<8x128xf32>
    %141 = math.tanh %140 : vector<8x128xf32>
    %142 = arith.mulf %137, %141 : vector<8x128xf32>
    %143 = arith.index_cast %c3_i32 : i32 to index
    %c0_42 = arith.constant 0 : index
    %c0_43 = arith.constant 0 : index
    %144 = vector.load %arg10[%143, %c0_42, %c0_43] : memref<8x8x128xf32, #tpu.memory_space<vmem>>, vector<1x8x128xf32>
    %145 = vector.shape_cast %144 : vector<1x8x128xf32> to vector<8x128xf32>
    %146 = vector.shape_cast %142 : vector<8x128xf32> to vector<1x8x128xf32>
    tpu.vector_store %arg10[%143, %c0_42, %c0_43], %146 {strides = array<i32>} : memref<8x8x128xf32, #tpu.memory_space<vmem>>, vector<1x8x128xf32>,
    %c4_i32 = arith.constant 4 : i32
    %147 = arith.index_cast %c4_i32 : i32 to index
    %c0_44 = arith.constant 0 : index
    %c0_45 = arith.constant 0 : index
    %148 = vector.load %arg11[%147, %c0_44, %c0_45] : memref<8x8x512xf32, #tpu.memory_space<vmem>>, vector<1x8x512xf32>
    %149 = vector.shape_cast %148 : vector<1x8x512xf32> to vector<8x512xf32>
    %cst_46 = arith.constant dense<0.000000e+00> : vector<8x512xf32>
    %150 = tpu.matmul %142, %9, %cst_46 {dimension_numbers = #tpu.dot_dimension_numbers<[1], [0], [0], [1], [0, 0, 1, 1], [], []>} : vector<8x128xf32>, vector<128x512xf32>, vector<8x512xf32> -> vector<8x512xf32>
    %151 = arith.addf %149, %150 : vector<8x512xf32>
    %152 = vector.extract_strided_slice %151 {offsets = [0, 0], sizes = [8, 128], strides = [1, 1]} : vector<8x512xf32> to vector<8x128xf32>
    %153 = arith.negf %152 : vector<8x128xf32>
    %154 = math.exp %153 : vector<8x128xf32>
    %cst_47 = arith.constant 1.000000e+00 : f32
    %155 = vector.broadcast %cst_47 : f32 to vector<8x128xf32>
    %156 = arith.addf %155, %154 : vector<8x128xf32>
    %157 = arith.divf %155, %156 : vector<8x128xf32>
    %158 = vector.extract_strided_slice %151 {offsets = [0, 128], sizes = [8, 128], strides = [1, 1]} : vector<8x512xf32> to vector<8x128xf32>
    %159 = arith.negf %158 : vector<8x128xf32>
    %160 = math.exp %159 : vector<8x128xf32>
    %cst_48 = arith.constant 1.000000e+00 : f32
    %161 = vector.broadcast %cst_48 : f32 to vector<8x128xf32>
    %162 = arith.addf %161, %160 : vector<8x128xf32>
    %163 = arith.divf %161, %162 : vector<8x128xf32>
    %164 = vector.extract_strided_slice %151 {offsets = [0, 256], sizes = [8, 128], strides = [1, 1]} : vector<8x512xf32> to vector<8x128xf32>
    %165 = math.tanh %164 : vector<8x128xf32>
    %166 = vector.extract_strided_slice %151 {offsets = [0, 384], sizes = [8, 128], strides = [1, 1]} : vector<8x512xf32> to vector<8x128xf32>
    %167 = arith.negf %166 : vector<8x128xf32>
    %168 = math.exp %167 : vector<8x128xf32>
    %cst_49 = arith.constant 1.000000e+00 : f32
    %169 = vector.broadcast %cst_49 : f32 to vector<8x128xf32>
    %170 = arith.addf %169, %168 : vector<8x128xf32>
    %171 = arith.divf %169, %170 : vector<8x128xf32>
    %172 = arith.mulf %163, %140 : vector<8x128xf32>
    %173 = arith.mulf %157, %165 : vector<8x128xf32>
    %174 = arith.addf %172, %173 : vector<8x128xf32>
    %175 = math.tanh %174 : vector<8x128xf32>
    %176 = arith.mulf %171, %175 : vector<8x128xf32>
    %177 = arith.index_cast %c4_i32 : i32 to index
    %c0_50 = arith.constant 0 : index
    %c0_51 = arith.constant 0 : index
    %178 = vector.load %arg10[%177, %c0_50, %c0_51] : memref<8x8x128xf32, #tpu.memory_space<vmem>>, vector<1x8x128xf32>
    %179 = vector.shape_cast %178 : vector<1x8x128xf32> to vector<8x128xf32>
    %180 = vector.shape_cast %176 : vector<8x128xf32> to vector<1x8x128xf32>
    tpu.vector_store %arg10[%177, %c0_50, %c0_51], %180 {strides = array<i32>} : memref<8x8x128xf32, #tpu.memory_space<vmem>>, vector<1x8x128xf32>,
    %c5_i32 = arith.constant 5 : i32
    %181 = arith.index_cast %c5_i32 : i32 to index
    %c0_52 = arith.constant 0 : index
    %c0_53 = arith.constant 0 : index
    %182 = vector.load %arg11[%181, %c0_52, %c0_53] : memref<8x8x512xf32, #tpu.memory_space<vmem>>, vector<1x8x512xf32>
    %183 = vector.shape_cast %182 : vector<1x8x512xf32> to vector<8x512xf32>
    %cst_54 = arith.constant dense<0.000000e+00> : vector<8x512xf32>
    %184 = tpu.matmul %176, %9, %cst_54 {dimension_numbers = #tpu.dot_dimension_numbers<[1], [0], [0], [1], [0, 0, 1, 1], [], []>} : vector<8x128xf32>, vector<128x512xf32>, vector<8x512xf32> -> vector<8x512xf32>
    %185 = arith.addf %183, %184 : vector<8x512xf32>
    %186 = vector.extract_strided_slice %185 {offsets = [0, 0], sizes = [8, 128], strides = [1, 1]} : vector<8x512xf32> to vector<8x128xf32>
    %187 = arith.negf %186 : vector<8x128xf32>
    %188 = math.exp %187 : vector<8x128xf32>
    %cst_55 = arith.constant 1.000000e+00 : f32
    %189 = vector.broadcast %cst_55 : f32 to vector<8x128xf32>
    %190 = arith.addf %189, %188 : vector<8x128xf32>
    %191 = arith.divf %189, %190 : vector<8x128xf32>
    %192 = vector.extract_strided_slice %185 {offsets = [0, 128], sizes = [8, 128], strides = [1, 1]} : vector<8x512xf32> to vector<8x128xf32>
    %193 = arith.negf %192 : vector<8x128xf32>
    %194 = math.exp %193 : vector<8x128xf32>
    %cst_56 = arith.constant 1.000000e+00 : f32
    %195 = vector.broadcast %cst_56 : f32 to vector<8x128xf32>
    %196 = arith.addf %195, %194 : vector<8x128xf32>
    %197 = arith.divf %195, %196 : vector<8x128xf32>
    %198 = vector.extract_strided_slice %185 {offsets = [0, 256], sizes = [8, 128], strides = [1, 1]} : vector<8x512xf32> to vector<8x128xf32>
    %199 = math.tanh %198 : vector<8x128xf32>
    %200 = vector.extract_strided_slice %185 {offsets = [0, 384], sizes = [8, 128], strides = [1, 1]} : vector<8x512xf32> to vector<8x128xf32>
    %201 = arith.negf %200 : vector<8x128xf32>
    %202 = math.exp %201 : vector<8x128xf32>
    %cst_57 = arith.constant 1.000000e+00 : f32
    %203 = vector.broadcast %cst_57 : f32 to vector<8x128xf32>
    %204 = arith.addf %203, %202 : vector<8x128xf32>
    %205 = arith.divf %203, %204 : vector<8x128xf32>
    %206 = arith.mulf %197, %174 : vector<8x128xf32>
    %207 = arith.mulf %191, %199 : vector<8x128xf32>
    %208 = arith.addf %206, %207 : vector<8x128xf32>
    %209 = math.tanh %208 : vector<8x128xf32>
    %210 = arith.mulf %205, %209 : vector<8x128xf32>
    %211 = arith.index_cast %c5_i32 : i32 to index
    %c0_58 = arith.constant 0 : index
    %c0_59 = arith.constant 0 : index
    %212 = vector.load %arg10[%211, %c0_58, %c0_59] : memref<8x8x128xf32, #tpu.memory_space<vmem>>, vector<1x8x128xf32>
    %213 = vector.shape_cast %212 : vector<1x8x128xf32> to vector<8x128xf32>
    %214 = vector.shape_cast %210 : vector<8x128xf32> to vector<1x8x128xf32>
    tpu.vector_store %arg10[%211, %c0_58, %c0_59], %214 {strides = array<i32>} : memref<8x8x128xf32, #tpu.memory_space<vmem>>, vector<1x8x128xf32>,
    %c6_i32 = arith.constant 6 : i32
    %215 = arith.index_cast %c6_i32 : i32 to index
    %c0_60 = arith.constant 0 : index
    %c0_61 = arith.constant 0 : index
    %216 = vector.load %arg11[%215, %c0_60, %c0_61] : memref<8x8x512xf32, #tpu.memory_space<vmem>>, vector<1x8x512xf32>
    %217 = vector.shape_cast %216 : vector<1x8x512xf32> to vector<8x512xf32>
    %cst_62 = arith.constant dense<0.000000e+00> : vector<8x512xf32>
    %218 = tpu.matmul %210, %9, %cst_62 {dimension_numbers = #tpu.dot_dimension_numbers<[1], [0], [0], [1], [0, 0, 1, 1], [], []>} : vector<8x128xf32>, vector<128x512xf32>, vector<8x512xf32> -> vector<8x512xf32>
    %219 = arith.addf %217, %218 : vector<8x512xf32>
    %220 = vector.extract_strided_slice %219 {offsets = [0, 0], sizes = [8, 128], strides = [1, 1]} : vector<8x512xf32> to vector<8x128xf32>
    %221 = arith.negf %220 : vector<8x128xf32>
    %222 = math.exp %221 : vector<8x128xf32>
    %cst_63 = arith.constant 1.000000e+00 : f32
    %223 = vector.broadcast %cst_63 : f32 to vector<8x128xf32>
    %224 = arith.addf %223, %222 : vector<8x128xf32>
    %225 = arith.divf %223, %224 : vector<8x128xf32>
    %226 = vector.extract_strided_slice %219 {offsets = [0, 128], sizes = [8, 128], strides = [1, 1]} : vector<8x512xf32> to vector<8x128xf32>
    %227 = arith.negf %226 : vector<8x128xf32>
    %228 = math.exp %227 : vector<8x128xf32>
    %cst_64 = arith.constant 1.000000e+00 : f32
    %229 = vector.broadcast %cst_64 : f32 to vector<8x128xf32>
    %230 = arith.addf %229, %228 : vector<8x128xf32>
    %231 = arith.divf %229, %230 : vector<8x128xf32>
    %232 = vector.extract_strided_slice %219 {offsets = [0, 256], sizes = [8, 128], strides = [1, 1]} : vector<8x512xf32> to vector<8x128xf32>
    %233 = math.tanh %232 : vector<8x128xf32>
    %234 = vector.extract_strided_slice %219 {offsets = [0, 384], sizes = [8, 128], strides = [1, 1]} : vector<8x512xf32> to vector<8x128xf32>
    %235 = arith.negf %234 : vector<8x128xf32>
    %236 = math.exp %235 : vector<8x128xf32>
    %cst_65 = arith.constant 1.000000e+00 : f32
    %237 = vector.broadcast %cst_65 : f32 to vector<8x128xf32>
    %238 = arith.addf %237, %236 : vector<8x128xf32>
    %239 = arith.divf %237, %238 : vector<8x128xf32>
    %240 = arith.mulf %231, %208 : vector<8x128xf32>
    %241 = arith.mulf %225, %233 : vector<8x128xf32>
    %242 = arith.addf %240, %241 : vector<8x128xf32>
    %243 = math.tanh %242 : vector<8x128xf32>
    %244 = arith.mulf %239, %243 : vector<8x128xf32>
    %245 = arith.index_cast %c6_i32 : i32 to index
    %c0_66 = arith.constant 0 : index
    %c0_67 = arith.constant 0 : index
    %246 = vector.load %arg10[%245, %c0_66, %c0_67] : memref<8x8x128xf32, #tpu.memory_space<vmem>>, vector<1x8x128xf32>
    %247 = vector.shape_cast %246 : vector<1x8x128xf32> to vector<8x128xf32>
    %248 = vector.shape_cast %244 : vector<8x128xf32> to vector<1x8x128xf32>
    tpu.vector_store %arg10[%245, %c0_66, %c0_67], %248 {strides = array<i32>} : memref<8x8x128xf32, #tpu.memory_space<vmem>>, vector<1x8x128xf32>,
    %c7_i32 = arith.constant 7 : i32
    %249 = arith.index_cast %c7_i32 : i32 to index
    %c0_68 = arith.constant 0 : index
    %c0_69 = arith.constant 0 : index
    %250 = vector.load %arg11[%249, %c0_68, %c0_69] : memref<8x8x512xf32, #tpu.memory_space<vmem>>, vector<1x8x512xf32>
    %251 = vector.shape_cast %250 : vector<1x8x512xf32> to vector<8x512xf32>
    %cst_70 = arith.constant dense<0.000000e+00> : vector<8x512xf32>
    %252 = tpu.matmul %244, %9, %cst_70 {dimension_numbers = #tpu.dot_dimension_numbers<[1], [0], [0], [1], [0, 0, 1, 1], [], []>} : vector<8x128xf32>, vector<128x512xf32>, vector<8x512xf32> -> vector<8x512xf32>
    %253 = arith.addf %251, %252 : vector<8x512xf32>
    %254 = vector.extract_strided_slice %253 {offsets = [0, 0], sizes = [8, 128], strides = [1, 1]} : vector<8x512xf32> to vector<8x128xf32>
    %255 = arith.negf %254 : vector<8x128xf32>
    %256 = math.exp %255 : vector<8x128xf32>
    %cst_71 = arith.constant 1.000000e+00 : f32
    %257 = vector.broadcast %cst_71 : f32 to vector<8x128xf32>
    %258 = arith.addf %257, %256 : vector<8x128xf32>
    %259 = arith.divf %257, %258 : vector<8x128xf32>
    %260 = vector.extract_strided_slice %253 {offsets = [0, 128], sizes = [8, 128], strides = [1, 1]} : vector<8x512xf32> to vector<8x128xf32>
    %261 = arith.negf %260 : vector<8x128xf32>
    %262 = math.exp %261 : vector<8x128xf32>
    %cst_72 = arith.constant 1.000000e+00 : f32
    %263 = vector.broadcast %cst_72 : f32 to vector<8x128xf32>
    %264 = arith.addf %263, %262 : vector<8x128xf32>
    %265 = arith.divf %263, %264 : vector<8x128xf32>
    %266 = vector.extract_strided_slice %253 {offsets = [0, 256], sizes = [8, 128], strides = [1, 1]} : vector<8x512xf32> to vector<8x128xf32>
    %267 = math.tanh %266 : vector<8x128xf32>
    %268 = vector.extract_strided_slice %253 {offsets = [0, 384], sizes = [8, 128], strides = [1, 1]} : vector<8x512xf32> to vector<8x128xf32>
    %269 = arith.negf %268 : vector<8x128xf32>
    %270 = math.exp %269 : vector<8x128xf32>
    %cst_73 = arith.constant 1.000000e+00 : f32
    %271 = vector.broadcast %cst_73 : f32 to vector<8x128xf32>
    %272 = arith.addf %271, %270 : vector<8x128xf32>
    %273 = arith.divf %271, %272 : vector<8x128xf32>
    %274 = arith.mulf %265, %242 : vector<8x128xf32>
    %275 = arith.mulf %259, %267 : vector<8x128xf32>
    %276 = arith.addf %274, %275 : vector<8x128xf32>
    %277 = math.tanh %276 : vector<8x128xf32>
    %278 = arith.mulf %273, %277 : vector<8x128xf32>
    %279 = arith.index_cast %c7_i32 : i32 to index
    %c0_74 = arith.constant 0 : index
    %c0_75 = arith.constant 0 : index
    %280 = vector.load %arg10[%279, %c0_74, %c0_75] : memref<8x8x128xf32, #tpu.memory_space<vmem>>, vector<1x8x128xf32>
    %281 = vector.shape_cast %280 : vector<1x8x128xf32> to vector<8x128xf32>
    %282 = vector.shape_cast %278 : vector<8x128xf32> to vector<1x8x128xf32>
    tpu.vector_store %arg10[%279, %c0_74, %c0_75], %282 {strides = array<i32>} : memref<8x8x128xf32, #tpu.memory_space<vmem>>, vector<1x8x128xf32>,
    %c8_i32 = arith.constant 8 : i32
    %c0_76 = arith.constant 0 : index
    %c0_77 = arith.constant 0 : index
    %c0_78 = arith.constant 0 : index
    %283 = vector.load %arg10[%c0_76, %c0_77, %c0_78] : memref<8x8x128xf32, #tpu.memory_space<vmem>>, vector<8x8x128xf32>
    %284 = vector.shape_cast %283 : vector<8x8x128xf32> to vector<64x128xf32>
    %c0_79 = arith.constant 0 : index
    %c0_80 = arith.constant 0 : index
    %285 = vector.load %arg4[%c0_79, %c0_80] : memref<128x512xf32, #tpu.memory_space<vmem>>, vector<128x512xf32>
    %cst_81 = arith.constant dense<0.000000e+00> : vector<64x512xf32>
    %286 = tpu.matmul %284, %285, %cst_81 {dimension_numbers = #tpu.dot_dimension_numbers<[1], [0], [0], [1], [0, 0, 1, 1], [], []>} : vector<64x128xf32>, vector<128x512xf32>, vector<64x512xf32> -> vector<64x512xf32>
    %c0_82 = arith.constant 0 : index
    %c0_83 = arith.constant 0 : index
    %287 = vector.load %arg6[%c0_82, %c0_83] : memref<1x512xf32, #tpu.memory_space<vmem>>, vector<1x512xf32>
    %288 = vector.broadcast %287 : vector<1x512xf32> to vector<64x512xf32>
    %289 = arith.addf %286, %288 : vector<64x512xf32>
    %290 = vector.shape_cast %289 : vector<64x512xf32> to vector<8x8x512xf32>
    %c0_84 = arith.constant 0 : index
    %c0_85 = arith.constant 0 : index
    %c0_86 = arith.constant 0 : index
    %291 = vector.load %arg11[%c0_84, %c0_85, %c0_86] : memref<8x8x512xf32, #tpu.memory_space<vmem>>, vector<8x8x512xf32>
    tpu.vector_store %arg11[%c0_84, %c0_85, %c0_86], %290 {strides = array<i32>} : memref<8x8x512xf32, #tpu.memory_space<vmem>>, vector<8x8x512xf32>,
    %c0_87 = arith.constant 0 : index
    %c0_88 = arith.constant 0 : index
    %292 = vector.load %arg5[%c0_87, %c0_88] : memref<128x512xf32, #tpu.memory_space<vmem>>, vector<128x512xf32>
    %cst_89 = arith.constant 0.000000e+00 : f32
    %293 = vector.broadcast %cst_89 : f32 to vector<8x128xf32>
    %cst_90 = arith.constant 0.000000e+00 : f32
    %294 = vector.broadcast %cst_90 : f32 to vector<8x128xf32>
    %c0_i32_91 = arith.constant 0 : i32
    %295 = arith.index_cast %c0_i32_91 : i32 to index
    %c0_92 = arith.constant 0 : index
    %c0_93 = arith.constant 0 : index
    %296 = vector.load %arg11[%295, %c0_92, %c0_93] : memref<8x8x512xf32, #tpu.memory_space<vmem>>, vector<1x8x512xf32>
    %297 = vector.shape_cast %296 : vector<1x8x512xf32> to vector<8x512xf32>
    %cst_94 = arith.constant dense<0.000000e+00> : vector<8x512xf32>
    %298 = tpu.matmul %293, %292, %cst_94 {dimension_numbers = #tpu.dot_dimension_numbers<[1], [0], [0], [1], [0, 0, 1, 1], [], []>} : vector<8x128xf32>, vector<128x512xf32>, vector<8x512xf32> -> vector<8x512xf32>
    %299 = arith.addf %297, %298 : vector<8x512xf32>
    %300 = vector.extract_strided_slice %299 {offsets = [0, 0], sizes = [8, 128], strides = [1, 1]} : vector<8x512xf32> to vector<8x128xf32>
    %301 = arith.negf %300 : vector<8x128xf32>
    %302 = math.exp %301 : vector<8x128xf32>
    %cst_95 = arith.constant 1.000000e+00 : f32
    %303 = vector.broadcast %cst_95 : f32 to vector<8x128xf32>
    %304 = arith.addf %303, %302 : vector<8x128xf32>
    %305 = arith.divf %303, %304 : vector<8x128xf32>
    %306 = vector.extract_strided_slice %299 {offsets = [0, 128], sizes = [8, 128], strides = [1, 1]} : vector<8x512xf32> to vector<8x128xf32>
    %307 = arith.negf %306 : vector<8x128xf32>
    %308 = math.exp %307 : vector<8x128xf32>
    %cst_96 = arith.constant 1.000000e+00 : f32
    %309 = vector.broadcast %cst_96 : f32 to vector<8x128xf32>
    %310 = arith.addf %309, %308 : vector<8x128xf32>
    %311 = arith.divf %309, %310 : vector<8x128xf32>
    %312 = vector.extract_strided_slice %299 {offsets = [0, 256], sizes = [8, 128], strides = [1, 1]} : vector<8x512xf32> to vector<8x128xf32>
    %313 = math.tanh %312 : vector<8x128xf32>
    %314 = vector.extract_strided_slice %299 {offsets = [0, 384], sizes = [8, 128], strides = [1, 1]} : vector<8x512xf32> to vector<8x128xf32>
    %315 = arith.negf %314 : vector<8x128xf32>
    %316 = math.exp %315 : vector<8x128xf32>
    %cst_97 = arith.constant 1.000000e+00 : f32
    %317 = vector.broadcast %cst_97 : f32 to vector<8x128xf32>
    %318 = arith.addf %317, %316 : vector<8x128xf32>
    %319 = arith.divf %317, %318 : vector<8x128xf32>
    %320 = arith.mulf %311, %293 : vector<8x128xf32>
    %321 = arith.mulf %305, %313 : vector<8x128xf32>
    %322 = arith.addf %320, %321 : vector<8x128xf32>
    %323 = math.tanh %322 : vector<8x128xf32>
    %324 = arith.mulf %319, %323 : vector<8x128xf32>
    %325 = arith.index_cast %c0_i32_91 : i32 to index
    %c0_98 = arith.constant 0 : index
    %c0_99 = arith.constant 0 : index
    %326 = vector.load %arg7[%325, %c0_98, %c0_99] : memref<8x128x128xf32, #tpu.memory_space<vmem>>, vector<1x128x128xf32>
    %327 = vector.shape_cast %326 : vector<1x128x128xf32> to vector<128x128xf32>
    %cst_100 = arith.constant dense<0.000000e+00> : vector<8x128xf32>
    %328 = tpu.matmul %324, %327, %cst_100 {dimension_numbers = #tpu.dot_dimension_numbers<[1], [0], [0], [1], [0, 0, 1, 1], [], []>} : vector<8x128xf32>, vector<128x128xf32>, vector<8x128xf32> -> vector<8x128xf32>
    %329 = arith.addf %294, %328 : vector<8x128xf32>
    %c1_i32_101 = arith.constant 1 : i32
    %330 = arith.index_cast %c1_i32_101 : i32 to index
    %c0_102 = arith.constant 0 : index
    %c0_103 = arith.constant 0 : index
    %331 = vector.load %arg11[%330, %c0_102, %c0_103] : memref<8x8x512xf32, #tpu.memory_space<vmem>>, vector<1x8x512xf32>
    %332 = vector.shape_cast %331 : vector<1x8x512xf32> to vector<8x512xf32>
    %cst_104 = arith.constant dense<0.000000e+00> : vector<8x512xf32>
    %333 = tpu.matmul %324, %292, %cst_104 {dimension_numbers = #tpu.dot_dimension_numbers<[1], [0], [0], [1], [0, 0, 1, 1], [], []>} : vector<8x128xf32>, vector<128x512xf32>, vector<8x512xf32> -> vector<8x512xf32>
    %334 = arith.addf %332, %333 : vector<8x512xf32>
    %335 = vector.extract_strided_slice %334 {offsets = [0, 0], sizes = [8, 128], strides = [1, 1]} : vector<8x512xf32> to vector<8x128xf32>
    %336 = arith.negf %335 : vector<8x128xf32>
    %337 = math.exp %336 : vector<8x128xf32>
    %cst_105 = arith.constant 1.000000e+00 : f32
    %338 = vector.broadcast %cst_105 : f32 to vector<8x128xf32>
    %339 = arith.addf %338, %337 : vector<8x128xf32>
    %340 = arith.divf %338, %339 : vector<8x128xf32>
    %341 = vector.extract_strided_slice %334 {offsets = [0, 128], sizes = [8, 128], strides = [1, 1]} : vector<8x512xf32> to vector<8x128xf32>
    %342 = arith.negf %341 : vector<8x128xf32>
    %343 = math.exp %342 : vector<8x128xf32>
    %cst_106 = arith.constant 1.000000e+00 : f32
    %344 = vector.broadcast %cst_106 : f32 to vector<8x128xf32>
    %345 = arith.addf %344, %343 : vector<8x128xf32>
    %346 = arith.divf %344, %345 : vector<8x128xf32>
    %347 = vector.extract_strided_slice %334 {offsets = [0, 256], sizes = [8, 128], strides = [1, 1]} : vector<8x512xf32> to vector<8x128xf32>
    %348 = math.tanh %347 : vector<8x128xf32>
    %349 = vector.extract_strided_slice %334 {offsets = [0, 384], sizes = [8, 128], strides = [1, 1]} : vector<8x512xf32> to vector<8x128xf32>
    %350 = arith.negf %349 : vector<8x128xf32>
    %351 = math.exp %350 : vector<8x128xf32>
    %cst_107 = arith.constant 1.000000e+00 : f32
    %352 = vector.broadcast %cst_107 : f32 to vector<8x128xf32>
    %353 = arith.addf %352, %351 : vector<8x128xf32>
    %354 = arith.divf %352, %353 : vector<8x128xf32>
    %355 = arith.mulf %346, %322 : vector<8x128xf32>
    %356 = arith.mulf %340, %348 : vector<8x128xf32>
    %357 = arith.addf %355, %356 : vector<8x128xf32>
    %358 = math.tanh %357 : vector<8x128xf32>
    %359 = arith.mulf %354, %358 : vector<8x128xf32>
    %360 = arith.index_cast %c1_i32_101 : i32 to index
    %c0_108 = arith.constant 0 : index
    %c0_109 = arith.constant 0 : index
    %361 = vector.load %arg7[%360, %c0_108, %c0_109] : memref<8x128x128xf32, #tpu.memory_space<vmem>>, vector<1x128x128xf32>
    %362 = vector.shape_cast %361 : vector<1x128x128xf32> to vector<128x128xf32>
    %cst_110 = arith.constant dense<0.000000e+00> : vector<8x128xf32>
    %363 = tpu.matmul %359, %362, %cst_110 {dimension_numbers = #tpu.dot_dimension_numbers<[1], [0], [0], [1], [0, 0, 1, 1], [], []>} : vector<8x128xf32>, vector<128x128xf32>, vector<8x128xf32> -> vector<8x128xf32>
    %364 = arith.addf %329, %363 : vector<8x128xf32>
    %c2_i32_111 = arith.constant 2 : i32
    %365 = arith.index_cast %c2_i32_111 : i32 to index
    %c0_112 = arith.constant 0 : index
    %c0_113 = arith.constant 0 : index
    %366 = vector.load %arg11[%365, %c0_112, %c0_113] : memref<8x8x512xf32, #tpu.memory_space<vmem>>, vector<1x8x512xf32>
    %367 = vector.shape_cast %366 : vector<1x8x512xf32> to vector<8x512xf32>
    %cst_114 = arith.constant dense<0.000000e+00> : vector<8x512xf32>
    %368 = tpu.matmul %359, %292, %cst_114 {dimension_numbers = #tpu.dot_dimension_numbers<[1], [0], [0], [1], [0, 0, 1, 1], [], []>} : vector<8x128xf32>, vector<128x512xf32>, vector<8x512xf32> -> vector<8x512xf32>
    %369 = arith.addf %367, %368 : vector<8x512xf32>
    %370 = vector.extract_strided_slice %369 {offsets = [0, 0], sizes = [8, 128], strides = [1, 1]} : vector<8x512xf32> to vector<8x128xf32>
    %371 = arith.negf %370 : vector<8x128xf32>
    %372 = math.exp %371 : vector<8x128xf32>
    %cst_115 = arith.constant 1.000000e+00 : f32
    %373 = vector.broadcast %cst_115 : f32 to vector<8x128xf32>
    %374 = arith.addf %373, %372 : vector<8x128xf32>
    %375 = arith.divf %373, %374 : vector<8x128xf32>
    %376 = vector.extract_strided_slice %369 {offsets = [0, 128], sizes = [8, 128], strides = [1, 1]} : vector<8x512xf32> to vector<8x128xf32>
    %377 = arith.negf %376 : vector<8x128xf32>
    %378 = math.exp %377 : vector<8x128xf32>
    %cst_116 = arith.constant 1.000000e+00 : f32
    %379 = vector.broadcast %cst_116 : f32 to vector<8x128xf32>
    %380 = arith.addf %379, %378 : vector<8x128xf32>
    %381 = arith.divf %379, %380 : vector<8x128xf32>
    %382 = vector.extract_strided_slice %369 {offsets = [0, 256], sizes = [8, 128], strides = [1, 1]} : vector<8x512xf32> to vector<8x128xf32>
    %383 = math.tanh %382 : vector<8x128xf32>
    %384 = vector.extract_strided_slice %369 {offsets = [0, 384], sizes = [8, 128], strides = [1, 1]} : vector<8x512xf32> to vector<8x128xf32>
    %385 = arith.negf %384 : vector<8x128xf32>
    %386 = math.exp %385 : vector<8x128xf32>
    %cst_117 = arith.constant 1.000000e+00 : f32
    %387 = vector.broadcast %cst_117 : f32 to vector<8x128xf32>
    %388 = arith.addf %387, %386 : vector<8x128xf32>
    %389 = arith.divf %387, %388 : vector<8x128xf32>
    %390 = arith.mulf %381, %357 : vector<8x128xf32>
    %391 = arith.mulf %375, %383 : vector<8x128xf32>
    %392 = arith.addf %390, %391 : vector<8x128xf32>
    %393 = math.tanh %392 : vector<8x128xf32>
    %394 = arith.mulf %389, %393 : vector<8x128xf32>
    %395 = arith.index_cast %c2_i32_111 : i32 to index
    %c0_118 = arith.constant 0 : index
    %c0_119 = arith.constant 0 : index
    %396 = vector.load %arg7[%395, %c0_118, %c0_119] : memref<8x128x128xf32, #tpu.memory_space<vmem>>, vector<1x128x128xf32>
    %397 = vector.shape_cast %396 : vector<1x128x128xf32> to vector<128x128xf32>
    %cst_120 = arith.constant dense<0.000000e+00> : vector<8x128xf32>
    %398 = tpu.matmul %394, %397, %cst_120 {dimension_numbers = #tpu.dot_dimension_numbers<[1], [0], [0], [1], [0, 0, 1, 1], [], []>} : vector<8x128xf32>, vector<128x128xf32>, vector<8x128xf32> -> vector<8x128xf32>
    %399 = arith.addf %364, %398 : vector<8x128xf32>
    %c3_i32_121 = arith.constant 3 : i32
    %400 = arith.index_cast %c3_i32_121 : i32 to index
    %c0_122 = arith.constant 0 : index
    %c0_123 = arith.constant 0 : index
    %401 = vector.load %arg11[%400, %c0_122, %c0_123] : memref<8x8x512xf32, #tpu.memory_space<vmem>>, vector<1x8x512xf32>
    %402 = vector.shape_cast %401 : vector<1x8x512xf32> to vector<8x512xf32>
    %cst_124 = arith.constant dense<0.000000e+00> : vector<8x512xf32>
    %403 = tpu.matmul %394, %292, %cst_124 {dimension_numbers = #tpu.dot_dimension_numbers<[1], [0], [0], [1], [0, 0, 1, 1], [], []>} : vector<8x128xf32>, vector<128x512xf32>, vector<8x512xf32> -> vector<8x512xf32>
    %404 = arith.addf %402, %403 : vector<8x512xf32>
    %405 = vector.extract_strided_slice %404 {offsets = [0, 0], sizes = [8, 128], strides = [1, 1]} : vector<8x512xf32> to vector<8x128xf32>
    %406 = arith.negf %405 : vector<8x128xf32>
    %407 = math.exp %406 : vector<8x128xf32>
    %cst_125 = arith.constant 1.000000e+00 : f32
    %408 = vector.broadcast %cst_125 : f32 to vector<8x128xf32>
    %409 = arith.addf %408, %407 : vector<8x128xf32>
    %410 = arith.divf %408, %409 : vector<8x128xf32>
    %411 = vector.extract_strided_slice %404 {offsets = [0, 128], sizes = [8, 128], strides = [1, 1]} : vector<8x512xf32> to vector<8x128xf32>
    %412 = arith.negf %411 : vector<8x128xf32>
    %413 = math.exp %412 : vector<8x128xf32>
    %cst_126 = arith.constant 1.000000e+00 : f32
    %414 = vector.broadcast %cst_126 : f32 to vector<8x128xf32>
    %415 = arith.addf %414, %413 : vector<8x128xf32>
    %416 = arith.divf %414, %415 : vector<8x128xf32>
    %417 = vector.extract_strided_slice %404 {offsets = [0, 256], sizes = [8, 128], strides = [1, 1]} : vector<8x512xf32> to vector<8x128xf32>
    %418 = math.tanh %417 : vector<8x128xf32>
    %419 = vector.extract_strided_slice %404 {offsets = [0, 384], sizes = [8, 128], strides = [1, 1]} : vector<8x512xf32> to vector<8x128xf32>
    %420 = arith.negf %419 : vector<8x128xf32>
    %421 = math.exp %420 : vector<8x128xf32>
    %cst_127 = arith.constant 1.000000e+00 : f32
    %422 = vector.broadcast %cst_127 : f32 to vector<8x128xf32>
    %423 = arith.addf %422, %421 : vector<8x128xf32>
    %424 = arith.divf %422, %423 : vector<8x128xf32>
    %425 = arith.mulf %416, %392 : vector<8x128xf32>
    %426 = arith.mulf %410, %418 : vector<8x128xf32>
    %427 = arith.addf %425, %426 : vector<8x128xf32>
    %428 = math.tanh %427 : vector<8x128xf32>
    %429 = arith.mulf %424, %428 : vector<8x128xf32>
    %430 = arith.index_cast %c3_i32_121 : i32 to index
    %c0_128 = arith.constant 0 : index
    %c0_129 = arith.constant 0 : index
    %431 = vector.load %arg7[%430, %c0_128, %c0_129] : memref<8x128x128xf32, #tpu.memory_space<vmem>>, vector<1x128x128xf32>
    %432 = vector.shape_cast %431 : vector<1x128x128xf32> to vector<128x128xf32>
    %cst_130 = arith.constant dense<0.000000e+00> : vector<8x128xf32>
    %433 = tpu.matmul %429, %432, %cst_130 {dimension_numbers = #tpu.dot_dimension_numbers<[1], [0], [0], [1], [0, 0, 1, 1], [], []>} : vector<8x128xf32>, vector<128x128xf32>, vector<8x128xf32> -> vector<8x128xf32>
    %434 = arith.addf %399, %433 : vector<8x128xf32>
    %c4_i32_131 = arith.constant 4 : i32
    %435 = arith.index_cast %c4_i32_131 : i32 to index
    %c0_132 = arith.constant 0 : index
    %c0_133 = arith.constant 0 : index
    %436 = vector.load %arg11[%435, %c0_132, %c0_133] : memref<8x8x512xf32, #tpu.memory_space<vmem>>, vector<1x8x512xf32>
    %437 = vector.shape_cast %436 : vector<1x8x512xf32> to vector<8x512xf32>
    %cst_134 = arith.constant dense<0.000000e+00> : vector<8x512xf32>
    %438 = tpu.matmul %429, %292, %cst_134 {dimension_numbers = #tpu.dot_dimension_numbers<[1], [0], [0], [1], [0, 0, 1, 1], [], []>} : vector<8x128xf32>, vector<128x512xf32>, vector<8x512xf32> -> vector<8x512xf32>
    %439 = arith.addf %437, %438 : vector<8x512xf32>
    %440 = vector.extract_strided_slice %439 {offsets = [0, 0], sizes = [8, 128], strides = [1, 1]} : vector<8x512xf32> to vector<8x128xf32>
    %441 = arith.negf %440 : vector<8x128xf32>
    %442 = math.exp %441 : vector<8x128xf32>
    %cst_135 = arith.constant 1.000000e+00 : f32
    %443 = vector.broadcast %cst_135 : f32 to vector<8x128xf32>
    %444 = arith.addf %443, %442 : vector<8x128xf32>
    %445 = arith.divf %443, %444 : vector<8x128xf32>
    %446 = vector.extract_strided_slice %439 {offsets = [0, 128], sizes = [8, 128], strides = [1, 1]} : vector<8x512xf32> to vector<8x128xf32>
    %447 = arith.negf %446 : vector<8x128xf32>
    %448 = math.exp %447 : vector<8x128xf32>
    %cst_136 = arith.constant 1.000000e+00 : f32
    %449 = vector.broadcast %cst_136 : f32 to vector<8x128xf32>
    %450 = arith.addf %449, %448 : vector<8x128xf32>
    %451 = arith.divf %449, %450 : vector<8x128xf32>
    %452 = vector.extract_strided_slice %439 {offsets = [0, 256], sizes = [8, 128], strides = [1, 1]} : vector<8x512xf32> to vector<8x128xf32>
    %453 = math.tanh %452 : vector<8x128xf32>
    %454 = vector.extract_strided_slice %439 {offsets = [0, 384], sizes = [8, 128], strides = [1, 1]} : vector<8x512xf32> to vector<8x128xf32>
    %455 = arith.negf %454 : vector<8x128xf32>
    %456 = math.exp %455 : vector<8x128xf32>
    %cst_137 = arith.constant 1.000000e+00 : f32
    %457 = vector.broadcast %cst_137 : f32 to vector<8x128xf32>
    %458 = arith.addf %457, %456 : vector<8x128xf32>
    %459 = arith.divf %457, %458 : vector<8x128xf32>
    %460 = arith.mulf %451, %427 : vector<8x128xf32>
    %461 = arith.mulf %445, %453 : vector<8x128xf32>
    %462 = arith.addf %460, %461 : vector<8x128xf32>
    %463 = math.tanh %462 : vector<8x128xf32>
    %464 = arith.mulf %459, %463 : vector<8x128xf32>
    %465 = arith.index_cast %c4_i32_131 : i32 to index
    %c0_138 = arith.constant 0 : index
    %c0_139 = arith.constant 0 : index
    %466 = vector.load %arg7[%465, %c0_138, %c0_139] : memref<8x128x128xf32, #tpu.memory_space<vmem>>, vector<1x128x128xf32>
    %467 = vector.shape_cast %466 : vector<1x128x128xf32> to vector<128x128xf32>
    %cst_140 = arith.constant dense<0.000000e+00> : vector<8x128xf32>
    %468 = tpu.matmul %464, %467, %cst_140 {dimension_numbers = #tpu.dot_dimension_numbers<[1], [0], [0], [1], [0, 0, 1, 1], [], []>} : vector<8x128xf32>, vector<128x128xf32>, vector<8x128xf32> -> vector<8x128xf32>
    %469 = arith.addf %434, %468 : vector<8x128xf32>
    %c5_i32_141 = arith.constant 5 : i32
    %470 = arith.index_cast %c5_i32_141 : i32 to index
    %c0_142 = arith.constant 0 : index
    %c0_143 = arith.constant 0 : index
    %471 = vector.load %arg11[%470, %c0_142, %c0_143] : memref<8x8x512xf32, #tpu.memory_space<vmem>>, vector<1x8x512xf32>
    %472 = vector.shape_cast %471 : vector<1x8x512xf32> to vector<8x512xf32>
    %cst_144 = arith.constant dense<0.000000e+00> : vector<8x512xf32>
    %473 = tpu.matmul %464, %292, %cst_144 {dimension_numbers = #tpu.dot_dimension_numbers<[1], [0], [0], [1], [0, 0, 1, 1], [], []>} : vector<8x128xf32>, vector<128x512xf32>, vector<8x512xf32> -> vector<8x512xf32>
    %474 = arith.addf %472, %473 : vector<8x512xf32>
    %475 = vector.extract_strided_slice %474 {offsets = [0, 0], sizes = [8, 128], strides = [1, 1]} : vector<8x512xf32> to vector<8x128xf32>
    %476 = arith.negf %475 : vector<8x128xf32>
    %477 = math.exp %476 : vector<8x128xf32>
    %cst_145 = arith.constant 1.000000e+00 : f32
    %478 = vector.broadcast %cst_145 : f32 to vector<8x128xf32>
    %479 = arith.addf %478, %477 : vector<8x128xf32>
    %480 = arith.divf %478, %479 : vector<8x128xf32>
    %481 = vector.extract_strided_slice %474 {offsets = [0, 128], sizes = [8, 128], strides = [1, 1]} : vector<8x512xf32> to vector<8x128xf32>
    %482 = arith.negf %481 : vector<8x128xf32>
    %483 = math.exp %482 : vector<8x128xf32>
    %cst_146 = arith.constant 1.000000e+00 : f32
    %484 = vector.broadcast %cst_146 : f32 to vector<8x128xf32>
    %485 = arith.addf %484, %483 : vector<8x128xf32>
    %486 = arith.divf %484, %485 : vector<8x128xf32>
    %487 = vector.extract_strided_slice %474 {offsets = [0, 256], sizes = [8, 128], strides = [1, 1]} : vector<8x512xf32> to vector<8x128xf32>
    %488 = math.tanh %487 : vector<8x128xf32>
    %489 = vector.extract_strided_slice %474 {offsets = [0, 384], sizes = [8, 128], strides = [1, 1]} : vector<8x512xf32> to vector<8x128xf32>
    %490 = arith.negf %489 : vector<8x128xf32>
    %491 = math.exp %490 : vector<8x128xf32>
    %cst_147 = arith.constant 1.000000e+00 : f32
    %492 = vector.broadcast %cst_147 : f32 to vector<8x128xf32>
    %493 = arith.addf %492, %491 : vector<8x128xf32>
    %494 = arith.divf %492, %493 : vector<8x128xf32>
    %495 = arith.mulf %486, %462 : vector<8x128xf32>
    %496 = arith.mulf %480, %488 : vector<8x128xf32>
    %497 = arith.addf %495, %496 : vector<8x128xf32>
    %498 = math.tanh %497 : vector<8x128xf32>
    %499 = arith.mulf %494, %498 : vector<8x128xf32>
    %500 = arith.index_cast %c5_i32_141 : i32 to index
    %c0_148 = arith.constant 0 : index
    %c0_149 = arith.constant 0 : index
    %501 = vector.load %arg7[%500, %c0_148, %c0_149] : memref<8x128x128xf32, #tpu.memory_space<vmem>>, vector<1x128x128xf32>
    %502 = vector.shape_cast %501 : vector<1x128x128xf32> to vector<128x128xf32>
    %cst_150 = arith.constant dense<0.000000e+00> : vector<8x128xf32>
    %503 = tpu.matmul %499, %502, %cst_150 {dimension_numbers = #tpu.dot_dimension_numbers<[1], [0], [0], [1], [0, 0, 1, 1], [], []>} : vector<8x128xf32>, vector<128x128xf32>, vector<8x128xf32> -> vector<8x128xf32>
    %504 = arith.addf %469, %503 : vector<8x128xf32>
    %c6_i32_151 = arith.constant 6 : i32
    %505 = arith.index_cast %c6_i32_151 : i32 to index
    %c0_152 = arith.constant 0 : index
    %c0_153 = arith.constant 0 : index
    %506 = vector.load %arg11[%505, %c0_152, %c0_153] : memref<8x8x512xf32, #tpu.memory_space<vmem>>, vector<1x8x512xf32>
    %507 = vector.shape_cast %506 : vector<1x8x512xf32> to vector<8x512xf32>
    %cst_154 = arith.constant dense<0.000000e+00> : vector<8x512xf32>
    %508 = tpu.matmul %499, %292, %cst_154 {dimension_numbers = #tpu.dot_dimension_numbers<[1], [0], [0], [1], [0, 0, 1, 1], [], []>} : vector<8x128xf32>, vector<128x512xf32>, vector<8x512xf32> -> vector<8x512xf32>
    %509 = arith.addf %507, %508 : vector<8x512xf32>
    %510 = vector.extract_strided_slice %509 {offsets = [0, 0], sizes = [8, 128], strides = [1, 1]} : vector<8x512xf32> to vector<8x128xf32>
    %511 = arith.negf %510 : vector<8x128xf32>
    %512 = math.exp %511 : vector<8x128xf32>
    %cst_155 = arith.constant 1.000000e+00 : f32
    %513 = vector.broadcast %cst_155 : f32 to vector<8x128xf32>
    %514 = arith.addf %513, %512 : vector<8x128xf32>
    %515 = arith.divf %513, %514 : vector<8x128xf32>
    %516 = vector.extract_strided_slice %509 {offsets = [0, 128], sizes = [8, 128], strides = [1, 1]} : vector<8x512xf32> to vector<8x128xf32>
    %517 = arith.negf %516 : vector<8x128xf32>
    %518 = math.exp %517 : vector<8x128xf32>
    %cst_156 = arith.constant 1.000000e+00 : f32
    %519 = vector.broadcast %cst_156 : f32 to vector<8x128xf32>
    %520 = arith.addf %519, %518 : vector<8x128xf32>
    %521 = arith.divf %519, %520 : vector<8x128xf32>
    %522 = vector.extract_strided_slice %509 {offsets = [0, 256], sizes = [8, 128], strides = [1, 1]} : vector<8x512xf32> to vector<8x128xf32>
    %523 = math.tanh %522 : vector<8x128xf32>
    %524 = vector.extract_strided_slice %509 {offsets = [0, 384], sizes = [8, 128], strides = [1, 1]} : vector<8x512xf32> to vector<8x128xf32>
    %525 = arith.negf %524 : vector<8x128xf32>
    %526 = math.exp %525 : vector<8x128xf32>
    %cst_157 = arith.constant 1.000000e+00 : f32
    %527 = vector.broadcast %cst_157 : f32 to vector<8x128xf32>
    %528 = arith.addf %527, %526 : vector<8x128xf32>
    %529 = arith.divf %527, %528 : vector<8x128xf32>
    %530 = arith.mulf %521, %497 : vector<8x128xf32>
    %531 = arith.mulf %515, %523 : vector<8x128xf32>
    %532 = arith.addf %530, %531 : vector<8x128xf32>
    %533 = math.tanh %532 : vector<8x128xf32>
    %534 = arith.mulf %529, %533 : vector<8x128xf32>
    %535 = arith.index_cast %c6_i32_151 : i32 to index
    %c0_158 = arith.constant 0 : index
    %c0_159 = arith.constant 0 : index
    %536 = vector.load %arg7[%535, %c0_158, %c0_159] : memref<8x128x128xf32, #tpu.memory_space<vmem>>, vector<1x128x128xf32>
    %537 = vector.shape_cast %536 : vector<1x128x128xf32> to vector<128x128xf32>
    %cst_160 = arith.constant dense<0.000000e+00> : vector<8x128xf32>
    %538 = tpu.matmul %534, %537, %cst_160 {dimension_numbers = #tpu.dot_dimension_numbers<[1], [0], [0], [1], [0, 0, 1, 1], [], []>} : vector<8x128xf32>, vector<128x128xf32>, vector<8x128xf32> -> vector<8x128xf32>
    %539 = arith.addf %504, %538 : vector<8x128xf32>
    %c7_i32_161 = arith.constant 7 : i32
    %540 = arith.index_cast %c7_i32_161 : i32 to index
    %c0_162 = arith.constant 0 : index
    %c0_163 = arith.constant 0 : index
    %541 = vector.load %arg11[%540, %c0_162, %c0_163] : memref<8x8x512xf32, #tpu.memory_space<vmem>>, vector<1x8x512xf32>
    %542 = vector.shape_cast %541 : vector<1x8x512xf32> to vector<8x512xf32>
    %cst_164 = arith.constant dense<0.000000e+00> : vector<8x512xf32>
    %543 = tpu.matmul %534, %292, %cst_164 {dimension_numbers = #tpu.dot_dimension_numbers<[1], [0], [0], [1], [0, 0, 1, 1], [], []>} : vector<8x128xf32>, vector<128x512xf32>, vector<8x512xf32> -> vector<8x512xf32>
    %544 = arith.addf %542, %543 : vector<8x512xf32>
    %545 = vector.extract_strided_slice %544 {offsets = [0, 0], sizes = [8, 128], strides = [1, 1]} : vector<8x512xf32> to vector<8x128xf32>
    %546 = arith.negf %545 : vector<8x128xf32>
    %547 = math.exp %546 : vector<8x128xf32>
    %cst_165 = arith.constant 1.000000e+00 : f32
    %548 = vector.broadcast %cst_165 : f32 to vector<8x128xf32>
    %549 = arith.addf %548, %547 : vector<8x128xf32>
    %550 = arith.divf %548, %549 : vector<8x128xf32>
    %551 = vector.extract_strided_slice %544 {offsets = [0, 128], sizes = [8, 128], strides = [1, 1]} : vector<8x512xf32> to vector<8x128xf32>
    %552 = arith.negf %551 : vector<8x128xf32>
    %553 = math.exp %552 : vector<8x128xf32>
    %cst_166 = arith.constant 1.000000e+00 : f32
    %554 = vector.broadcast %cst_166 : f32 to vector<8x128xf32>
    %555 = arith.addf %554, %553 : vector<8x128xf32>
    %556 = arith.divf %554, %555 : vector<8x128xf32>
    %557 = vector.extract_strided_slice %544 {offsets = [0, 256], sizes = [8, 128], strides = [1, 1]} : vector<8x512xf32> to vector<8x128xf32>
    %558 = math.tanh %557 : vector<8x128xf32>
    %559 = vector.extract_strided_slice %544 {offsets = [0, 384], sizes = [8, 128], strides = [1, 1]} : vector<8x512xf32> to vector<8x128xf32>
    %560 = arith.negf %559 : vector<8x128xf32>
    %561 = math.exp %560 : vector<8x128xf32>
    %cst_167 = arith.constant 1.000000e+00 : f32
    %562 = vector.broadcast %cst_167 : f32 to vector<8x128xf32>
    %563 = arith.addf %562, %561 : vector<8x128xf32>
    %564 = arith.divf %562, %563 : vector<8x128xf32>
    %565 = arith.mulf %556, %532 : vector<8x128xf32>
    %566 = arith.mulf %550, %558 : vector<8x128xf32>
    %567 = arith.addf %565, %566 : vector<8x128xf32>
    %568 = math.tanh %567 : vector<8x128xf32>
    %569 = arith.mulf %564, %568 : vector<8x128xf32>
    %570 = arith.index_cast %c7_i32_161 : i32 to index
    %c0_168 = arith.constant 0 : index
    %c0_169 = arith.constant 0 : index
    %571 = vector.load %arg7[%570, %c0_168, %c0_169] : memref<8x128x128xf32, #tpu.memory_space<vmem>>, vector<1x128x128xf32>
    %572 = vector.shape_cast %571 : vector<1x128x128xf32> to vector<128x128xf32>
    %cst_170 = arith.constant dense<0.000000e+00> : vector<8x128xf32>
    %573 = tpu.matmul %569, %572, %cst_170 {dimension_numbers = #tpu.dot_dimension_numbers<[1], [0], [0], [1], [0, 0, 1, 1], [], []>} : vector<8x128xf32>, vector<128x128xf32>, vector<8x128xf32> -> vector<8x128xf32>
    %574 = arith.addf %539, %573 : vector<8x128xf32>
    %c8_i32_171 = arith.constant 8 : i32
    %c0_172 = arith.constant 0 : index
    %c0_173 = arith.constant 0 : index
    %575 = vector.load %arg8[%c0_172, %c0_173] : memref<1x128xf32, #tpu.memory_space<vmem>>, vector<1x128xf32>
    %576 = vector.broadcast %575 : vector<1x128xf32> to vector<8x128xf32>
    %577 = arith.addf %574, %576 : vector<8x128xf32>
    %c0_174 = arith.constant 0 : index
    %c0_175 = arith.constant 0 : index
    %578 = vector.load %arg9[%c0_174, %c0_175] : memref<8x128xf32, #tpu.memory_space<vmem>>, vector<8x128xf32>
    tpu.vector_store %arg9[%c0_174, %c0_175], %577 {strides = array<i32>} : memref<8x128xf32, #tpu.memory_space<vmem>>, vector<8x128xf32>,
    return
  }
}

</mosaic_0001>

<bundles_post_ra>
// kernel: tpu_custom_call.1
= control target key start
LH: loop header
LB: loop body
LE: loop exit
PB: predicated region body
PF: predicated region fallthrough
CT: control target
= control target key end

     0   :  { %14 = vsyncpa [#allocation5], 0  ;;  %s8033_s0 = inlined_call_operand.hbm [shape: f32[8,8,128], index: 0, kind: input, shape index: {}]   ;;  %s8034_s1 = inlined_call_operand.hbm [shape: f32[128,512], index: 1, kind: input, shape index: {}]   ;;  %s8035_s2 = inlined_call_operand.hbm [shape: f32[128,512], index: 2, kind: input, shape index: {}]   ;;  %s8036_s3 = inlined_call_operand.vmem [shape: f32[1,512], index: 3, kind: input, shape index: {}]   ;;  %s8037_s4 = inlined_call_operand.hbm [shape: f32[128,512], index: 4, kind: input, shape index: {}]   ;;  %s8038_s5 = inlined_call_operand.hbm [shape: f32[128,512], index: 5, kind: input, shape index: {}]   ;;  %s8039_s6 = inlined_call_operand.vmem [shape: f32[1,512], index: 6, kind: input, shape index: {}]   ;;  %s8040_s7 = inlined_call_operand.hbm [shape: f32[8,128,128], index: 7, kind: input, shape index: {}]   ;;  %s8041_s8 = inlined_call_operand.vmem [shape: f32[1,128], index: 8, kind: input, shape index: {}]   ;;  %s8042_s9 = inlined_call_operand.hbm [shape: f32[8,128], index: 9, kind: output, shape index: {}]  }
   0x1   :  { %15 = vsyncpa [#allocation8], 0 }
   0x2   :  { %16 = vsyncpa [#allocation11], 0 }
   0x3   :  { %17 = vsyncpa [#allocation14], 0 }
   0x4   :  { %18 = vsyncpa [#allocation6], 0  ;;  %s6852_s30 = smov [#allocation7]   ;;  %s6688_s13 = scalar_lea.hbm %s8034_s1, 8192 }
   0x5   :  { %s36_s10 = sshll.u32 %s6852_s30, 4  ;;  %p6689_p0 = scmp.ne.s32.totalorder %s8034_s1, %s6688_s13  ;;  %s37_s10 = int_to_ptr.vmem [resolvable:$true] %s36_s10 }
   0x6   :  { %p6692_p1 = scmp.lt.u32.totalorder %s6688_s13, %s8034_s1 }
   0x8   :  { %p6694_p2 = pnand %p6692_p1, %p6689_p0 }
   0xa   :  { %6697 = shalt.err (!%p6694_p2)
}
   0xb   :  { %s6698_s18 = scalar_lea.vmem %s37_s10, 8192  ;;  %p6703_p4 = scmp.lt.s32.totalorder %s37_s10, %s37_s10 }
   0xc   :  { %p6699_p3 = scmp.ne.s32.totalorder %s37_s10, %s6698_s18  ;;  %p6704_p5 = scmp.lt.s32.totalorder %s6698_s18, %s6698_s18 }
   0xe   :  { %p6705_p6 = por %p6704_p5, %p6703_p4 }
  0x10   :  { %p6706_p7 = pnand %p6705_p6, %p6699_p3 }
  0x12   :  { %6709 = shalt.err (!%p6706_p7)
}
  0x13   :  { %s6853_s19 = smov 512   ;;  %s6854_s20 = smov 32  }
  0x14   :  { %42 = dma.hbm_to_vmem [thread:$0]  %s8034_s1, 8192, %s37_s10, [#allocation8], %s6853_s19, %s6853_s19, %s6854_s20  }
  0x15   :  { %s6855_s23 = smov [#allocation10]   ;;  %s6856_s25 = smov [#allocation4]  }
  0x16   :  { %s62_s24 = sshll.u32 %s6855_s23, 4  ;;  %s24_s26 = sshll.u32 %s6856_s25, 4  ;;  %s63_s24 = int_to_ptr.vmem [resolvable:$true] %s62_s24  ;;  %s25_s26 = int_to_ptr.vmem [resolvable:$true] %s24_s26 }
  0x17   :  { %s6710_s29 = scalar_lea.hbm %s8037_s4, 8192 }
  0x18   :  { %p6711_p8 = scmp.ne.s32.totalorder %s8037_s4, %s6710_s29  ;;  %p6714_p9 = scmp.lt.u32.totalorder %s6710_s29, %s8037_s4 }
  0x1a   :  { %p6716_p10 = pnand %p6714_p9, %p6711_p8 }
  0x1c   :  { %6719 = shalt.err (!%p6716_p10)
}
  0x1d   :  { %s6720_s1 = scalar_lea.vmem %s63_s24, 8192  ;;  %p6725_p12 = scmp.lt.s32.totalorder %s63_s24, %s63_s24 }
  0x1e   :  { %p6721_p11 = scmp.ne.s32.totalorder %s63_s24, %s6720_s1  ;;  %p6726_p13 = scmp.lt.s32.totalorder %s6720_s1, %s6720_s1 }
  0x20   :  { %p6727_p0 = por %p6726_p13, %p6725_p12 }
  0x22   :  { %p6728_p1 = pnand %p6727_p0, %p6721_p11 }
  0x24   :  { %6731 = shalt.err (!%p6728_p1)
}
  0x25   :  { %68 = dma.hbm_to_vmem [thread:$0]  %s8037_s4, 8192, %s63_s24, [#allocation11], %s6853_s19, %s6853_s19, %s6854_s20  }
  0x26   :  { %s6732_s17 = scalar_lea.hbm %s8033_s0, 1024 }
  0x27   :  { %p6733_p2 = scmp.ne.s32.totalorder %s8033_s0, %s6732_s17  ;;  %p6736_p3 = scmp.lt.u32.totalorder %s6732_s17, %s8033_s0 }
  0x29   :  { %p6738_p4 = pnand %p6736_p3, %p6733_p2 }
  0x2b   :  { %6741 = shalt.err (!%p6738_p4)
}
  0x2c   :  { %s6742_s25 = scalar_lea.vmem %s25_s26, 1024  ;;  %p6747_p6 = scmp.lt.s32.totalorder %s25_s26, %s25_s26 }
  0x2d   :  { %p6743_p5 = scmp.ne.s32.totalorder %s25_s26, %s6742_s25  ;;  %p6748_p7 = scmp.lt.s32.totalorder %s6742_s25, %s6742_s25 }
  0x2f   :  { %p6749_p8 = por %p6748_p7, %p6747_p6 }
  0x31   :  { %p6750_p9 = pnand %p6749_p8, %p6743_p5 }
  0x33   :  { %6753 = shalt.err (!%p6750_p9)
}
  0x34   :  { %s6857_s4 = smov 128   ;;  %s6858_s24 = smov 8  }
  0x35   :  { %30 = dma.hbm_to_vmem [thread:$0]  %s8033_s0, 1024, %s25_s26, [#allocation5], %s6857_s4, %s6857_s4, %s6858_s24  }
  0x36   :  { %s6859_s29 = smov [#allocation9]   ;;  %s6860_s11 = smov [#allocation12]  }
  0x37   :  { %s48_s30 = sshll.u32 %s6859_s29, 4  ;;  %s74_s12 = sshll.u32 %s6860_s11, 4  ;;  %s49_s30 = int_to_ptr.vmem [resolvable:$true] %s48_s30  ;;  %s75_s12 = int_to_ptr.vmem [resolvable:$true] %s74_s12 }
  0x38   :  { %s6754_s10 = scalar_lea.hbm %s8035_s2, 8192 }
  0x39   :  { %p6755_p10 = scmp.ne.s32.totalorder %s8035_s2, %s6754_s10  ;;  %p6758_p11 = scmp.lt.u32.totalorder %s6754_s10, %s8035_s2 }
  0x3b   :  { %p6760_p12 = pnand %p6758_p11, %p6755_p10 }
  0x3d   :  { %6763 = shalt.err (!%p6760_p12)
}
  0x3e   :  { %s6764_s0 = scalar_lea.vmem %s49_s30, 8192  ;;  %p6769_p0 = scmp.lt.s32.totalorder %s49_s30, %s49_s30 }
  0x3f   :  { %p6765_p13 = scmp.ne.s32.totalorder %s49_s30, %s6764_s0  ;;  %p6770_p1 = scmp.lt.s32.totalorder %s6764_s0, %s6764_s0 }
  0x41   :  { %p6771_p2 = por %p6770_p1, %p6769_p0 }
  0x43   :  { %p6772_p3 = pnand %p6771_p2, %p6765_p13 }
  0x45   :  { %6775 = shalt.err (!%p6772_p3)
}
  0x46   :  { %54 = dma.hbm_to_vmem [thread:$0]  %s8035_s2, 8192, %s49_s30, [#allocation8], %s6853_s19, %s6853_s19, %s6854_s20  }
  0x47   :  { %s6776_s23 = scalar_lea.hbm %s8038_s5, 8192 }
  0x48   :  { %p6777_p4 = scmp.ne.s32.totalorder %s8038_s5, %s6776_s23  ;;  %p6780_p5 = scmp.lt.u32.totalorder %s6776_s23, %s8038_s5 }
  0x4a   :  { %p6782_p6 = pnand %p6780_p5, %p6777_p4 }
  0x4c   :  { %6785 = shalt.err (!%p6782_p6)
}
  0x4d   :  { %s6786_s11 = scalar_lea.vmem %s75_s12, 8192  ;;  %p6791_p8 = scmp.lt.s32.totalorder %s75_s12, %s75_s12 }
  0x4e   :  { %p6787_p7 = scmp.ne.s32.totalorder %s75_s12, %s6786_s11  ;;  %p6792_p9 = scmp.lt.s32.totalorder %s6786_s11, %s6786_s11 }
  0x50   :  { %p6793_p10 = por %p6792_p9, %p6791_p8 }
  0x52   :  { %p6794_p11 = pnand %p6793_p10, %p6787_p7 }
  0x54   :  { %6797 = shalt.err (!%p6794_p11)
}
  0x55   :  { %80 = dma.hbm_to_vmem [thread:$0]  %s8038_s5, 8192, %s75_s12, [#allocation11], %s6853_s19, %s6853_s19, %s6854_s20  }
  0x56   :  { %s6861_s13 = smov [#allocation13]   ;;  %s6798_s15 = scalar_lea.hbm %s8040_s7, 16384 }
  0x57   :  { %s88_s1 = sshll.u32 %s6861_s13, 4  ;;  %p6799_p12 = scmp.ne.s32.totalorder %s8040_s7, %s6798_s15  ;;  %s89_s1 = int_to_ptr.vmem [resolvable:$true] %s88_s1 }
  0x58   :  { %p6802_p13 = scmp.lt.u32.totalorder %s6798_s15, %s8040_s7 }
  0x5a   :  { %p6804_p0 = pnand %p6802_p13, %p6799_p12 }
  0x5c   :  { %6807 = shalt.err (!%p6804_p0)
}
  0x5d   :  { %s6808_s18 = scalar_lea.vmem %s89_s1, 16384  ;;  %p6813_p2 = scmp.lt.s32.totalorder %s89_s1, %s89_s1 }
  0x5e   :  { %p6809_p1 = scmp.ne.s32.totalorder %s89_s1, %s6808_s18  ;;  %p6814_p3 = scmp.lt.s32.totalorder %s6808_s18, %s6808_s18 }
  0x60   :  { %p6815_p4 = por %p6814_p3, %p6813_p2 }
  0x62   :  { %p6816_p5 = pnand %p6815_p4, %p6809_p1 }
  0x64   :  { %6819 = shalt.err (!%p6816_p5)
}
  0x65   :  { %94 = dma.hbm_to_vmem [thread:$0]  %s8040_s7, 16384, %s89_s1, [#allocation14], %s6857_s4, %s6857_s4, %s6858_s24  }
  0x66   :  { %6842 = dma.done.wait [#allocation5], 1024  }
  0x67   :  { %6843 = vsyncadd [#allocation5], 4294966272 }
  0x68   :  { %6844 = dma.done.wait [#allocation8], 16384  }
  0x69   :  { %6845 = vsyncadd [#allocation8], 4294950912 }
  0x6a   :  { %6846 = dma.done.wait [#allocation11], 16384  }
  0x6b   :  { %6847 = vsyncadd [#allocation11], 4294950912 }
  0x6c   :  { %6848 = dma.done.wait [#allocation14], 16384  }
  0x6d   :  { %6849 = vsyncadd [#allocation14], 4294950912  ;;  %v6862_v0 = vmov 0.0   ;;  %v124_v1 = vld [vmem:[#allocation7 + $0x8] sm:$0xff]  ;;  %v126_v3 = vld [vmem:[#allocation7 + $0x18] sm:$0xff]  ;;  %vm6864_vm0 = vmmov 0  }
  0x6e   :  { %273 = vmatprep.mubr.f32.mxu0 %v6862_v0  ;;  %386 = vmatprep.mubr.f32.mxu1 %v6862_v0  ;;  %v128_v2 = vld [vmem:[#allocation7 + $0x28] sm:$0xff]  ;;  %v130_v5 = vld [vmem:[#allocation7 + $0x38] sm:$0xff]  ;;  %v123_v6 = vld [vmem:[#allocation7] sm:$0xff]  ;;  %s6865_s12 = smov [#allocation15]  }
  0x6f   :  { %v4946_v4 = vpack.c.bf16 %v128_v2, %v124_v1  ;;  %v127_v7 = vld [vmem:[#allocation7 + $0x20] sm:$0xff]  ;;  %v4978_v8 = vpack.c.bf16 %v130_v5, %v126_v3  ;;  %v125_v10 = vld [vmem:[#allocation7 + $0x10] sm:$0xff]  ;;  %v132_v12 = vld [vmem:[#allocation7 + $0x48] sm:$0xff]  ;;  %s4469_s21 = sshll.u32 %s6865_s12, 4  ;;  %s4470_s21 = int_to_ptr.vmem [resolvable:$true] %s4469_s21 }
  0x70   :  { %v4948_v9 = vpack.c.bf16 %v127_v7, %v123_v6  ;;  %v129_v11 = vld [vmem:[#allocation7 + $0x30] sm:$0xff]  ;;  %v136_v14 = vld [vmem:[#allocation7 + $0x68] sm:$0xff]  ;;  %v134_v15 = vld [vmem:[#allocation7 + $0x58] sm:$0xff]  ;;  %s6820_s22 = scalar_lea.vmem %s4470_s21, 128  ;;  %p6825_p7 = scmp.lt.s32.totalorder %s4470_s21, %s4470_s21 }
  0x71   :  { %4947 = vmatprep.subr.bf16.mxu0 %v4946_v4  ;;  %v4980_v13 = vpack.c.bf16 %v129_v11, %v125_v10  ;;  %v138_v16 = vld [vmem:[#allocation7 + $0x78] sm:$0xff]  ;;  %4979 = vmatprep.subr.bf16.mxu1 %v4978_v8  ;;  %v4950_v17 = vpack.c.bf16 %v136_v14, %v132_v12  ;;  %v131_v19 = vld [vmem:[#allocation7 + $0x40] sm:$0xff]  ;;  %v133_v21 = vld [vmem:[#allocation7 + $0x50] sm:$0xff]  ;;  %p6821_p6 = scmp.ne.s32.totalorder %s4470_s21, %s6820_s22  ;;  %p6826_p8 = scmp.lt.s32.totalorder %s6820_s22, %s6820_s22 }
  0x72   :  { %4949 = vmatpush1.bf16.msra.mxu0 %v4948_v9  ;;  %v4982_v18 = vpack.c.bf16 %v138_v16, %v134_v15  ;;  %v135_v20 = vld [vmem:[#allocation7 + $0x60] sm:$0xff]  ;;  %v137_v23 = vld [vmem:[#allocation7 + $0x70] sm:$0xff]  ;;  %v140_v24 = vld [vmem:[#allocation7 + $0x88] sm:$0xff] }
  0x73   :  { %4981 = vmatpush1.bf16.msra.mxu1 %v4980_v13  ;;  %v4952_v22 = vpack.c.bf16 %v135_v20, %v131_v19  ;;  %v144_v25 = vld [vmem:[#allocation7 + $0xa8] sm:$0xff]  ;;  %4951 = vmatprep.subr.bf16.mxu0 %v4950_v17  ;;  %v4984_v26 = vpack.c.bf16 %v137_v23, %v133_v21  ;;  %v142_v28 = vld [vmem:[#allocation7 + $0x98] sm:$0xff]  ;;  %v139_v30 = vld [vmem:[#allocation7 + $0x80] sm:$0xff]  ;;  %p6827_p9 = por %p6826_p8, %p6825_p7 }
  0x74   :  { %4983 = vmatprep.subr.bf16.mxu1 %v4982_v18  ;;  %v4954_v27 = vpack.c.bf16 %v144_v25, %v140_v24  ;;  %v146_v29 = vld [vmem:[#allocation7 + $0xb8] sm:$0xff]  ;;  %v143_v32 = vld [vmem:[#allocation7 + $0xa0] sm:$0xff]  ;;  %v141_v33 = vld [vmem:[#allocation7 + $0x90] sm:$0xff] }
  0x75   :  { %v4986_v31 = vpack.c.bf16 %v146_v29, %v142_v28  ;;  %v145_v34 = vld [vmem:[#allocation7 + $0xb0] sm:$0xff]  ;;  %v4956_v35 = vpack.c.bf16 %v143_v32, %v139_v30  ;;  %v148_v36 = vld [vmem:[#allocation7 + $0xc8] sm:$0xff]  ;;  %v150_v38 = vld [vmem:[#allocation7 + $0xd8] sm:$0xff]  ;;  %p6828_p10 = pnand %p6827_p9, %p6821_p6 }
  0x76   :  { %4953 = vmatpush1.bf16.msra.mxu0 %v4952_v22  ;;  %v152_v37 = vld [vmem:[#allocation7 + $0xe8] sm:$0xff]  ;;  %v4988_v39 = vpack.c.bf16 %v145_v34, %v141_v33  ;;  %v154_v41 = vld [vmem:[#allocation7 + $0xf8] sm:$0xff]  ;;  %v147_v42 = vld [vmem:[#allocation7 + $0xc0] sm:$0xff] }
  0x77   :  { %4985 = vmatpush1.bf16.msra.mxu1 %v4984_v26  ;;  %4955 = vmatprep.subr.bf16.mxu0 %v4954_v27  ;;  %v4958_v40 = vpack.c.bf16 %v152_v37, %v148_v36  ;;  %v151_v43 = vld [vmem:[#allocation7 + $0xe0] sm:$0xff]  ;;  %v4990_v44 = vpack.c.bf16 %v154_v41, %v150_v38  ;;  %v149_v45 = vld [vmem:[#allocation7 + $0xd0] sm:$0xff]  ;;  %v156_v47 = vld [vmem:[#allocation7 + $0x108] sm:$0xff] }
  0x78   :  { %4987 = vmatprep.subr.bf16.mxu1 %v4986_v31  ;;  %v153_v46 = vld [vmem:[#allocation7 + $0xf0] sm:$0xff]  ;;  %v160_v48 = vld [vmem:[#allocation7 + $0x128] sm:$0xff]  ;;  %v158_v49 = vld [vmem:[#allocation7 + $0x118] sm:$0xff]  ;;  %v4960_v51 = vpack.c.bf16 %v151_v43, %v147_v42 }
  0x79   :  { %v162_v50 = vld [vmem:[#allocation7 + $0x138] sm:$0xff]  ;;  %v4992_v52 = vpack.c.bf16 %v153_v46, %v149_v45  ;;  %v4962_v53 = vpack.c.bf16 %v160_v48, %v156_v47  ;;  %v155_v54 = vld [vmem:[#allocation7 + $0x100] sm:$0xff]  ;;  %v157_v56 = vld [vmem:[#allocation7 + $0x110] sm:$0xff] }
  0x7a   :  { %4957 = vmatpush1.bf16.msra.mxu0 %v4956_v35  ;;  %v159_v55 = vld [vmem:[#allocation7 + $0x120] sm:$0xff]  ;;  %v4994_v57 = vpack.c.bf16 %v162_v50, %v158_v49  ;;  %v161_v58 = vld [vmem:[#allocation7 + $0x130] sm:$0xff]  ;;  %v164_v59 = vld [vmem:[#allocation7 + $0x148] sm:$0xff] }
  0x7b   :  { %4989 = vmatpush1.bf16.msra.mxu1 %v4988_v39  ;;  %4959 = vmatprep.subr.bf16.mxu0 %v4958_v40  ;;  %v168_v60 = vld [vmem:[#allocation7 + $0x168] sm:$0xff]  ;;  %v166_v61 = vld [vmem:[#allocation7 + $0x158] sm:$0xff]  ;;  %v4964_v63 = vpack.c.bf16 %v159_v55, %v155_v54  ;;  %v4996_v1 = vpack.c.bf16 %v161_v58, %v157_v56  ;;  %v163_v3 = vld [vmem:[#allocation7 + $0x140] sm:$0xff] }
  0x7c   :  { %4991 = vmatprep.subr.bf16.mxu1 %v4990_v44  ;;  %v170_v62 = vld [vmem:[#allocation7 + $0x178] sm:$0xff]  ;;  %v4966_v2 = vpack.c.bf16 %v168_v60, %v164_v59  ;;  %v167_v4 = vld [vmem:[#allocation7 + $0x160] sm:$0xff]  ;;  %v165_v5 = vld [vmem:[#allocation7 + $0x150] sm:$0xff] }
  0x7d   :  { %v4998_v6 = vpack.c.bf16 %v170_v62, %v166_v61  ;;  %v169_v7 = vld [vmem:[#allocation7 + $0x170] sm:$0xff]  ;;  %v172_v8 = vld [vmem:[#allocation7 + $0x188] sm:$0xff]  ;;  %v174_v10 = vld [vmem:[#allocation7 + $0x198] sm:$0xff]  ;;  %v4968_v12 = vpack.c.bf16 %v167_v4, %v163_v3 }
  0x7e   :  { %4961 = vmatpush1.bf16.msra.mxu0 %v4960_v51  ;;  %v176_v9 = vld [vmem:[#allocation7 + $0x1a8] sm:$0xff]  ;;  %v178_v11 = vld [vmem:[#allocation7 + $0x1b8] sm:$0xff]  ;;  %v5000_v13 = vpack.c.bf16 %v169_v7, %v165_v5  ;;  %v171_v15 = vld [vmem:[#allocation7 + $0x180] sm:$0xff] }
  0x7f   :  { %4993 = vmatpush1.bf16.msra.mxu1 %v4992_v52  ;;  %4963 = vmatprep.subr.bf16.mxu0 %v4962_v53  ;;  %v4970_v14 = vpack.c.bf16 %v176_v9, %v172_v8  ;;  %v175_v16 = vld [vmem:[#allocation7 + $0x1a0] sm:$0xff]  ;;  %v173_v17 = vld [vmem:[#allocation7 + $0x190] sm:$0xff]  ;;  %v5002_v18 = vpack.c.bf16 %v178_v11, %v174_v10  ;;  %v180_v20 = vld [vmem:[#allocation7 + $0x1c8] sm:$0xff] }
  0x80   :  { %4995 = vmatprep.subr.bf16.mxu1 %v4994_v57  ;;  %v177_v19 = vld [vmem:[#allocation7 + $0x1b0] sm:$0xff]  ;;  %v184_v21 = vld [vmem:[#allocation7 + $0x1e8] sm:$0xff]  ;;  %v182_v22 = vld [vmem:[#allocation7 + $0x1d8] sm:$0xff]  ;;  %v4972_v24 = vpack.c.bf16 %v175_v16, %v171_v15 }
  0x81   :  { %v186_v23 = vld [vmem:[#allocation7 + $0x1f8] sm:$0xff]  ;;  %v5004_v25 = vpack.c.bf16 %v177_v19, %v173_v17  ;;  %v4974_v26 = vpack.c.bf16 %v184_v21, %v180_v20  ;;  %v179_v27 = vld [vmem:[#allocation7 + $0x1c0] sm:$0xff]  ;;  %v181_v29 = vld [vmem:[#allocation7 + $0x1d0] sm:$0xff] }
  0x82   :  { %4965 = vmatpush1.bf16.msra.mxu0 %v4964_v63  ;;  %v183_v28 = vld [vmem:[#allocation7 + $0x1e0] sm:$0xff]  ;;  %v5006_v30 = vpack.c.bf16 %v186_v23, %v182_v22  ;;  %v185_v31 = vld [vmem:[#allocation7 + $0x1f0] sm:$0xff]  ;;  %v468_v32 = vld [vmem:[#allocation9 + $0x8] sm:$0xff] }
  0x83   :  { %4997 = vmatpush1.bf16.msra.mxu1 %v4996_v1  ;;  %4967 = vmatprep.subr.bf16.mxu0 %v4966_v2  ;;  %v472_v33 = vld [vmem:[#allocation9 + $0x28] sm:$0xff]  ;;  %v470_v34 = vld [vmem:[#allocation9 + $0x18] sm:$0xff]  ;;  %v4976_v36 = vpack.c.bf16 %v183_v28, %v179_v27  ;;  %v5008_v37 = vpack.c.bf16 %v185_v31, %v181_v29  ;;  %v467_v39 = vld [vmem:[#allocation9] sm:$0xff] }
  0x84   :  { %4999 = vmatprep.subr.bf16.mxu1 %v4998_v6  ;;  %v474_v35 = vld [vmem:[#allocation9 + $0x38] sm:$0xff]  ;;  %v7008_v38 = vpack.c.bf16 %v472_v33, %v468_v32  ;;  %v471_v40 = vld [vmem:[#allocation9 + $0x20] sm:$0xff]  ;;  %v469_v42 = vld [vmem:[#allocation9 + $0x10] sm:$0xff] }
  0x85   :  { %v7010_v41 = vpack.c.bf16 %v474_v35, %v470_v34  ;;  %v473_v43 = vld [vmem:[#allocation9 + $0x30] sm:$0xff]  ;;  %v476_v44 = vld [vmem:[#allocation9 + $0x48] sm:$0xff]  ;;  %v115_v46 = vld [vmem:[#allocation4] sm:$0xff]  ;;  %v7012_v47 = vpack.c.bf16 %v471_v40, %v467_v39 }
  0x86   :  { %4969 = vmatpush1.bf16.msra.mxu0 %v4968_v12  ;;  %v480_v45 = vld [vmem:[#allocation9 + $0x68] sm:$0xff]  ;;  %v478_v48 = vld [vmem:[#allocation9 + $0x58] sm:$0xff]  ;;  %v7015_v50 = vpack.c.bf16 %v473_v43, %v469_v42  ;;  %v475_v51 = vld [vmem:[#allocation9 + $0x40] sm:$0xff] }
  0x87   :  { %5001 = vmatpush1.bf16.msra.mxu1 %v5000_v13  ;;  %4971 = vmatprep.subr.bf16.mxu0 %v4970_v14  ;;  %v482_v49 = vld [vmem:[#allocation9 + $0x78] sm:$0xff]  ;;  %v479_v52 = vld [vmem:[#allocation9 + $0x60] sm:$0xff]  ;;  %v7018_v53 = vpack.c.bf16 %v480_v45, %v476_v44  ;;  %v477_v54 = vld [vmem:[#allocation9 + $0x50] sm:$0xff] }
  0x88   :  { %5003 = vmatprep.subr.bf16.mxu1 %v5002_v18  ;;  %v481_v55 = vld [vmem:[#allocation9 + $0x70] sm:$0xff]  ;;  %v7020_v56 = vpack.c.bf16 %v482_v49, %v478_v48  ;;  %v484_v57 = vld [vmem:[#allocation9 + $0x88] sm:$0xff]  ;;  %v7023_v60 = vpack.c.bf16 %v479_v52, %v475_v51  ;;  %v486_v61 = vld [vmem:[#allocation9 + $0x98] sm:$0xff] }
  0x89   :  { %v488_v58 = vld [vmem:[#allocation9 + $0xa8] sm:$0xff]  ;;  %v490_v62 = vld [vmem:[#allocation9 + $0xb8] sm:$0xff]  ;;  %v7027_v63 = vpack.c.bf16 %v481_v55, %v477_v54  ;;  %v483_v1 = vld [vmem:[#allocation9 + $0x80] sm:$0xff] }
  0x8a   :  { %4973 = vmatpush1.bf16.msra.mxu0 %v4972_v24  ;;  %v116_v59 = vld [vmem:[#allocation4 + $0x8] sm:$0xff]  ;;  %v487_v2 = vld [vmem:[#allocation9 + $0xa0] sm:$0xff]  ;;  %v7031_v3 = vpack.c.bf16 %v488_v58, %v484_v57  ;;  %v485_v4 = vld [vmem:[#allocation9 + $0x90] sm:$0xff]  ;;  %v7034_v6 = vpack.c.bf16 %v490_v62, %v486_v61 }
  0x8b   :  { %5005 = vmatpush1.bf16.msra.mxu1 %v5004_v25  ;;  %4975 = vmatprep.subr.bf16.mxu0 %v4974_v26  ;;  %v489_v5 = vld [vmem:[#allocation9 + $0xb0] sm:$0xff]  ;;  %v492_v7 = vld [vmem:[#allocation9 + $0xc8] sm:$0xff]  ;;  %v7037_v10 = vpack.c.bf16 %v487_v2, %v483_v1  ;;  %v494_v11 = vld [vmem:[#allocation9 + $0xd8] sm:$0xff] }
  0x8c   :  { %5007 = vmatprep.subr.bf16.mxu1 %v5006_v30  ;;  %v496_v8 = vld [vmem:[#allocation9 + $0xe8] sm:$0xff]  ;;  %v117_v9 = vld [vmem:[#allocation4 + $0x10] sm:$0xff]  ;;  %v498_v12 = vld [vmem:[#allocation9 + $0xf8] sm:$0xff]  ;;  %v7041_v13 = vpack.c.bf16 %v489_v5, %v485_v4 }
  0x8d   :  { %v491_v14 = vld [vmem:[#allocation9 + $0xc0] sm:$0xff]  ;;  %v7045_v16 = vpack.c.bf16 %v496_v8, %v492_v7  ;;  %v493_v17 = vld [vmem:[#allocation9 + $0xd0] sm:$0xff]  ;;  %v7048_v19 = vpack.c.bf16 %v498_v12, %v494_v11  ;;  %v500_v20 = vld [vmem:[#allocation9 + $0x108] sm:$0xff] }
  0x8e   :  { %4977 = vmatpush1.bf16.msra.mxu0 %v4976_v36  ;;  %v495_v15 = vld [vmem:[#allocation9 + $0xe0] sm:$0xff]  ;;  %v497_v18 = vld [vmem:[#allocation9 + $0xf0] sm:$0xff]  ;;  %v504_v21 = vld [vmem:[#allocation9 + $0x128] sm:$0xff] }
  0x8f   :  { %5009 = vmatpush1.bf16.msra.mxu1 %v5008_v37  ;;  %5011 = vmatprep.subr.bf16.mxu0 %v7008_v38  ;;  %v118_v22 = vld [vmem:[#allocation4 + $0x18] sm:$0xff]  ;;  %v7051_v23 = vpack.c.bf16 %v495_v15, %v491_v14  ;;  %v7055_v26 = vpack.c.bf16 %v497_v18, %v493_v17  ;;  %v499_v27 = vld [vmem:[#allocation9 + $0x100] sm:$0xff]  ;;  %v7059_v29 = vpack.c.bf16 %v504_v21, %v500_v20  ;;  %v501_v30 = vld [vmem:[#allocation9 + $0x110] sm:$0xff] }
  0x90   :  { %5043 = vmatprep.subr.bf16.mxu1 %v7010_v41  ;;  %v502_v24 = vld [vmem:[#allocation9 + $0x118] sm:$0xff]  ;;  %v503_v28 = vld [vmem:[#allocation9 + $0x120] sm:$0xff]  ;;  %v505_v31 = vld [vmem:[#allocation9 + $0x130] sm:$0xff] }
  0x91   :  { %274 = vmatmul.mubr.f32.vlgmr.msra.gmra.mrb[0].mxu0 %v115_v46  ;;  %v506_v25 = vld [vmem:[#allocation9 + $0x138] sm:$0xff]  ;;  %v508_v33 = vld [vmem:[#allocation9 + $0x148] sm:$0xff]  ;;  %v119_v35 = vld [vmem:[#allocation4 + $0x20] sm:$0xff]  ;;  %v7065_v36 = vpack.c.bf16 %v503_v28, %v499_v27  ;;  %v7069_v40 = vpack.c.bf16 %v505_v31, %v501_v30  ;;  %v189_v28 = vlaneseq }
  0x92   :  { %387 = vmatmul.mubr.f32.vlgmr.msra.gmra.mrb[0].mxu1 %v115_v46  ;;  %5013 = vmatpush1.bf16.msra.mxu0 %v7012_v47  ;;  %v7062_v32 = vpack.c.bf16 %v506_v25, %v502_v24  ;;  %v512_v34 = vld [vmem:[#allocation9 + $0x168] sm:$0xff]  ;;  %v510_v37 = vld [vmem:[#allocation9 + $0x158] sm:$0xff]  ;;  %v507_v42 = vld [vmem:[#allocation9 + $0x140] sm:$0xff] }
  0x93   :  { %5045 = vmatpush1.bf16.msra.mxu1 %v7015_v50  ;;  %279 = vmatprep.mubr.f32.mxu0 %v6862_v0  ;;  %v514_v39 = vld [vmem:[#allocation9 + $0x178] sm:$0xff]  ;;  %v511_v43 = vld [vmem:[#allocation9 + $0x160] sm:$0xff]  ;;  %v7073_v44 = vpack.c.bf16 %v512_v34, %v508_v33  ;;  %v509_v45 = vld [vmem:[#allocation9 + $0x150] sm:$0xff]  ;;  %v7158_v30 = vshrl.u32 %v189_v28, 7 }
  0x94   :  { %392 = vmatprep.mubr.f32.mxu1 %v6862_v0  ;;  %5015 = vmatprep.subr.bf16.mxu0 %v7018_v53  ;;  %v513_v46 = vld [vmem:[#allocation9 + $0x170] sm:$0xff]  ;;  %v7076_v48 = vpack.c.bf16 %v514_v39, %v510_v37  ;;  %v516_v49 = vld [vmem:[#allocation9 + $0x188] sm:$0xff]  ;;  %v7079_v54 = vpack.c.bf16 %v511_v43, %v507_v42  ;;  %v518_v55 = vld [vmem:[#allocation9 + $0x198] sm:$0xff] }
  0x95   :  { %280 = vmatmul.mubr.f32.gmra.mrb[2].mxu0 %v116_v59  ;;  %5047 = vmatprep.subr.bf16.mxu1 %v7020_v56  ;;  %v520_v51 = vld [vmem:[#allocation9 + $0x1a8] sm:$0xff]  ;;  %v522_v57 = vld [vmem:[#allocation9 + $0x1b8] sm:$0xff]  ;;  %v7083_v58 = vpack.c.bf16 %v513_v46, %v509_v45  ;;  %v519_v61 = vld [vmem:[#allocation9 + $0x1a0] sm:$0xff]  ;;  %v191_v31 = vsub.s32 0, %v7158_v30  ;;  %v195_v34 = vsub.s32 1, %v7158_v30  ;;  %v203_v42 = vsub.s32 3, %v7158_v30 }
  0x96   :  { %393 = vmatmul.mubr.f32.gmra.mrb[2].mxu1 %v116_v59  ;;  %5017 = vmatpush1.bf16.msra.mxu0 %v7023_v60  ;;  %v120_v52 = vld [vmem:[#allocation4 + $0x28] sm:$0xff]  ;;  %v515_v59 = vld [vmem:[#allocation9 + $0x180] sm:$0xff]  ;;  %v7087_v62 = vpack.c.bf16 %v520_v51, %v516_v49  ;;  %v517_v1 = vld [vmem:[#allocation9 + $0x190] sm:$0xff]  ;;  %v7090_v4 = vpack.c.bf16 %v522_v57, %v518_v55 }
  0x97   :  { %5049 = vmatpush1.bf16.msra.mxu1 %v7027_v63  ;;  %285 = vmatprep.mubr.f32.mxu0 %v6862_v0  ;;  %v521_v2 = vld [vmem:[#allocation9 + $0x1b0] sm:$0xff]  ;;  %v524_v5 = vld [vmem:[#allocation9 + $0x1c8] sm:$0xff]  ;;  %v526_v11 = vld [vmem:[#allocation9 + $0x1d8] sm:$0xff] }
  0x98   :  { %398 = vmatprep.mubr.f32.mxu1 %v6862_v0  ;;  %5019 = vmatprep.subr.bf16.mxu0 %v7031_v3  ;;  %v528_v7 = vld [vmem:[#allocation9 + $0x1e8] sm:$0xff]  ;;  %v121_v8 = vld [vmem:[#allocation4 + $0x30] sm:$0xff]  ;;  %v530_v12 = vld [vmem:[#allocation9 + $0x1f8] sm:$0xff]  ;;  %v7097_v14 = vpack.c.bf16 %v521_v2, %v517_v1 }
  0x99   :  { %286 = vmatmul.mubr.f32.gmra.mrb[4].mxu0 %v117_v9  ;;  %5051 = vmatprep.subr.bf16.mxu1 %v7034_v6  ;;  %v523_v15 = vld [vmem:[#allocation9 + $0x1c0] sm:$0xff]  ;;  %v7101_v18 = vpack.c.bf16 %v528_v7, %v524_v5  ;;  %v525_v20 = vld [vmem:[#allocation9 + $0x1d0] sm:$0xff]  ;;  %v122_v24 = vld [vmem:[#allocation4 + $0x38] sm:$0xff] }
  0x9a   :  { %399 = vmatmul.mubr.f32.gmra.mrb[4].mxu1 %v117_v9  ;;  %5021 = vmatpush1.bf16.msra.mxu0 %v7037_v10  ;;  %v7093_v9 = vpack.c.bf16 %v519_v61, %v515_v59  ;;  %v527_v17 = vld [vmem:[#allocation9 + $0x1e0] sm:$0xff]  ;;  %v529_v21 = vld [vmem:[#allocation9 + $0x1f0] sm:$0xff]  ;;  %v199_v59 = vsub.s32 2, %v7158_v30 }
  0x9b   :  { %5053 = vmatpush1.bf16.msra.mxu1 %v7041_v13  ;;  %291 = vmatprep.mubr.f32.mxu0 %v6862_v0  ;;  %v7107_v25 = vpack.c.bf16 %v527_v17, %v523_v15  ;;  %v7111_v27 = vpack.c.bf16 %v529_v21, %v525_v20  ;;  %v187_v33 = vld [vmem:[%s8036_s3] sm:$0xf] }
  0x9c   :  { %404 = vmatprep.mubr.f32.mxu1 %v6862_v0  ;;  %5023 = vmatprep.subr.bf16.mxu0 %v7045_v16  ;;  %v7171_v37 = vrot.slane %v187_v33, %v195_v34  ;;  %v7178_v57 = vrot.slane %v187_v33, %v203_v42  ;;  %v7184_v1 = vrot.slane %v187_v33, %v199_v59 }
  0x9d   :  { %292 = vmatmul.mubr.f32.gmra.mrb[6].mxu0 %v118_v22  ;;  %5055 = vmatprep.subr.bf16.mxu1 %v7048_v19 }
  0x9e   :  { %405 = vmatmul.mubr.f32.gmra.mrb[6].mxu1 %v118_v22  ;;  %5025 = vmatpush1.bf16.msra.mxu0 %v7051_v23  ;;  %v7104_v22 = vpack.c.bf16 %v530_v12, %v526_v11 }
  0x9f   :  { %5057 = vmatpush1.bf16.msra.mxu1 %v7055_v26  ;;  %297 = vmatprep.mubr.f32.mxu0 %v6862_v0 }
  0xa0   :  { %410 = vmatprep.mubr.f32.mxu1 %v6862_v0  ;;  %5027 = vmatprep.subr.bf16.mxu0 %v7059_v29 }
  0xa1   :  { %298 = vmatmul.mubr.f32.gmra.mrb[8].mxu0 %v119_v35  ;;  %5059 = vmatprep.subr.bf16.mxu1 %v7062_v32 }
  0xa2   :  { %411 = vmatmul.mubr.f32.gmra.mrb[8].mxu1 %v119_v35  ;;  %5029 = vmatpush1.bf16.msra.mxu0 %v7065_v36  ;;  %v7167_v35 = vrot.slane %v187_v33, %v191_v31 }
  0xa3   :  { %5061 = vmatpush1.bf16.msra.mxu1 %v7069_v40  ;;  %303 = vmatprep.mubr.f32.mxu0 %v6862_v0 }
  0xa4   :  { %416 = vmatprep.mubr.f32.mxu1 %v6862_v0  ;;  %5031 = vmatprep.subr.bf16.mxu0 %v7073_v44 }
  0xa5   :  { %304 = vmatmul.mubr.f32.gmra.mrb[10].mxu0 %v120_v52  ;;  %5063 = vmatprep.subr.bf16.mxu1 %v7076_v48 }
  0xa6   :  { %417 = vmatmul.mubr.f32.gmra.mrb[10].mxu1 %v120_v52  ;;  %5033 = vmatpush1.bf16.msra.mxu0 %v7079_v54 }
  0xa7   :  { %5065 = vmatpush1.bf16.msra.mxu1 %v7083_v58  ;;  %309 = vmatprep.mubr.f32.mxu0 %v6862_v0 }
  0xa8   :  { %422 = vmatprep.mubr.f32.mxu1 %v6862_v0  ;;  %5035 = vmatprep.subr.bf16.mxu0 %v7087_v62 }
  0xa9   :  { %310 = vmatmul.mubr.f32.gmra.mrb[12].mxu0 %v121_v8  ;;  %5067 = vmatprep.subr.bf16.mxu1 %v7090_v4 }
  0xaa   :  { %423 = vmatmul.mubr.f32.gmra.mrb[12].mxu1 %v121_v8  ;;  %5037 = vmatpush1.bf16.msra.mxu0 %v7093_v9 }
  0xab   :  { %5069 = vmatpush1.bf16.msra.mxu1 %v7097_v14  ;;  %315 = vmatprep.mubr.f32.mxu0 %v6862_v0 }
  0xac   :  { %428 = vmatprep.mubr.f32.mxu1 %v6862_v0  ;;  %5039 = vmatprep.subr.bf16.mxu0 %v7101_v18 }
  0xad   :  { %316 = vmatmul.mubr.f32.gmra.mrb[14].mxu0 %v122_v24  ;;  %5071 = vmatprep.subr.bf16.mxu1 %v7104_v22 }
  0xae   :  { %429 = vmatmul.mubr.f32.gmra.mrb[14].mxu1 %v122_v24  ;;  %5041 = vmatpush1.bf16.msra.mxu0 %v7107_v25 }
  0xaf   :  { %5073 = vmatpush1.bf16.msra.mxu1 %v7111_v27  ;;  %599 = vmatprep.mubr.f32.mxu0 %v6862_v0 }
  0xb0   :  { %670 = vmatprep.mubr.f32.mxu1 %v6862_v0  ;;  %5075 = vmatprep.subr.bf16.mxu0 %v7008_v38 }
  0xb1   :  { %600 = vmatmul.mubr.f32.vlgmr.msra.gmra.mrb[0].mxu0 %v6862_v0  ;;  %5107 = vmatprep.subr.bf16.mxu1 %v7010_v41 }
  0xb2   :  { %671 = vmatmul.mubr.f32.vlgmr.msra.gmra.mrb[0].mxu1 %v6862_v0  ;;  %5077 = vmatpush1.bf16.msra.mxu0 %v7012_v47 }
  0xb3   :  { %5109 = vmatpush1.bf16.msra.mxu1 %v7015_v50  ;;  %5079 = vmatprep.subr.bf16.mxu0 %v7018_v53 }
  0xb4   :  { %5111 = vmatprep.subr.bf16.mxu1 %v7020_v56  ;;  %775 = vmatprep.mubr.f32.mxu0 %v6862_v0 }
  0xb5   :  { %846 = vmatprep.mubr.f32.mxu1 %v6862_v0 }
  0xb6   :  { %5081 = vmatpush1.bf16.msra.mxu0 %v7023_v60 }
  0xb7   :  { %5113 = vmatpush1.bf16.msra.mxu1 %v7027_v63  ;;  %5083 = vmatprep.subr.bf16.mxu0 %v7031_v3 }
  0xb8   :  { %5115 = vmatprep.subr.bf16.mxu1 %v7034_v6 }
  0xba   :  { %5085 = vmatpush1.bf16.msra.mxu0 %v7037_v10 }
  0xbb   :  { %5117 = vmatpush1.bf16.msra.mxu1 %v7041_v13  ;;  %5087 = vmatprep.subr.bf16.mxu0 %v7045_v16 }
  0xbc   :  { %5119 = vmatprep.subr.bf16.mxu1 %v7048_v19 }
  0xbe   :  { %5089 = vmatpush1.bf16.msra.mxu0 %v7051_v23 }
  0xbf   :  { %5121 = vmatpush1.bf16.msra.mxu1 %v7055_v26  ;;  %5091 = vmatprep.subr.bf16.mxu0 %v7059_v29 }
  0xc0   :  { %5123 = vmatprep.subr.bf16.mxu1 %v7062_v32 }
  0xc2   :  { %5093 = vmatpush1.bf16.msra.mxu0 %v7065_v36 }
  0xc3   :  { %5125 = vmatpush1.bf16.msra.mxu1 %v7069_v40  ;;  %5095 = vmatprep.subr.bf16.mxu0 %v7073_v44 }
  0xc4   :  { %5127 = vmatprep.subr.bf16.mxu1 %v7076_v48 }
  0xc6   :  { %5097 = vmatpush1.bf16.msra.mxu0 %v7079_v54 }
  0xc7   :  { %5129 = vmatpush1.bf16.msra.mxu1 %v7083_v58  ;;  %5099 = vmatprep.subr.bf16.mxu0 %v7087_v62 }
  0xc8   :  { %5131 = vmatprep.subr.bf16.mxu1 %v7090_v4 }
  0xca   :  { %5101 = vmatpush1.bf16.msra.mxu0 %v7093_v9 }
  0xcb   :  { %5133 = vmatpush1.bf16.msra.mxu1 %v7097_v14  ;;  %5103 = vmatprep.subr.bf16.mxu0 %v7101_v18 }
  0xcc   :  { %5135 = vmatprep.subr.bf16.mxu1 %v7104_v22 }
  0xce   :  { %5105 = vmatpush1.bf16.msra.mxu0 %v7107_v25 }
  0xcf   :  { %5137 = vmatpush1.bf16.msra.mxu1 %v7111_v27  ;;  %5139 = vmatprep.subr.bf16.mxu0 %v7008_v38 }
  0xd0   :  { %5171 = vmatprep.subr.bf16.mxu1 %v7010_v41 }
 0x184   :  { %v601_v39 = vpop.f32.mrb[0].mxu0 }
 0x185   :  { %v6290_v43 = vadd.f32 %v601_v39, %v7167_v35  ;;  %v672_v45 = vpop.f32.mrb[0].mxu1  ;;  %v603_v46 = vpop.f32.mrb[1].mxu0 }
 0x186   :  { %v6291_v49 = vadd.f32 %v603_v46, %v7171_v37  ;;  %v674_v51 = vpop.f32.mrb[1].mxu1  ;;  %v6306_v5 = vadd.f32 %v672_v45, %v7184_v1 }
 0x187   :  { %v4481_v52 = vmul.f32 -1.442695, %v6290_v43  ;;  %v6307_v61 = vadd.f32 %v674_v51, %v7178_v57 }
 0x188   :  { %v4482_v55 = vmul.f32 -1.442695, %v6291_v49 }
 0x189   :  { %6432 = vpow2.f32 %v4481_v52  ;;  %v4483_v2 = vmul.f32 -1.442695, %v6307_v61 }
 0x18a   :  { %6434 = vpow2.f32 %v4482_v55 }
 0x18b   :  { %6436 = vpow2.f32 %v4483_v2 }
 0x18c   :  { %6438 = vtanh.f32 %v6306_v5 }
 0x193   :  { %v6433_v7 = vpop.eup %6432 }
 0x194   :  { %v6435_v8 = vpop.eup %6434  ;;  %v684_v11 = vadd.f32 1.0, %v6433_v7 }
 0x195   :  { %v690_v12 = vadd.f32 1.0, %v6435_v8  ;;  %v6437_v15 = vpop.eup %6436 }
 0x196   :  { %6440 = vrcp.f32 %v684_v11  ;;  %v6439_v17 = vpop.eup %6438  ;;  %v697_v28 = vadd.f32 1.0, %v6437_v15 }
 0x197   :  { %6442 = vrcp.f32 %v690_v12 }
 0x198   :  { %6444 = vrcp.f32 %v697_v28 }
 0x1a0   :  { %v6441_v20 = vpop.eup %6440 }
 0x1a1   :  { %v6443_v21 = vpop.eup %6442  ;;  %v701_v24 = vmul.f32 %v6441_v20, %v6439_v17 }
 0x1a2   :  { %v700_v39 = vmul.f32 0.0, %v6443_v21  ;;  %v6445_v43 = vpop.eup %6444 }
 0x1a4   :  { %v7187_v33 = vadd.f32 %v701_v24, %v700_v39 }
 0x1a6   :  { %6446 = vtanh.f32 %v7187_v33 }
 0x1b0   :  { %v6447_v45 = vpop.eup %6446 }
 0x1b1   :  { %v7190_v46 = vmul.f32 %v6447_v45, %v6445_v43 }
 0x1b3   :  { %776 = vmatmul.mubr.f32.vlgmr.msra.gmra.mrb[2].mxu0 %v7190_v46  ;;  %847 = vmatmul.mubr.f32.vlgmr.msra.gmra.mrb[2].mxu1 %v7190_v46 }
 0x1b4   :  { %5141 = vmatpush1.bf16.msra.mxu0 %v7012_v47  ;;  %5173 = vmatpush1.bf16.msra.mxu1 %v7015_v50 }
 0x1b5   :  { %5143 = vmatprep.subr.bf16.mxu0 %v7018_v53  ;;  %5175 = vmatprep.subr.bf16.mxu1 %v7020_v56 }
 0x1b6   :  { %952 = vmatprep.mubr.f32.mxu0 %v6862_v0  ;;  %1023 = vmatprep.mubr.f32.mxu1 %v6862_v0 }
 0x1b8   :  { %5145 = vmatpush1.bf16.msra.mxu0 %v7023_v60  ;;  %5177 = vmatpush1.bf16.msra.mxu1 %v7027_v63 }
 0x1b9   :  { %5147 = vmatprep.subr.bf16.mxu0 %v7031_v3  ;;  %5179 = vmatprep.subr.bf16.mxu1 %v7034_v6 }
 0x1bc   :  { %5149 = vmatpush1.bf16.msra.mxu0 %v7037_v10  ;;  %5181 = vmatpush1.bf16.msra.mxu1 %v7041_v13 }
 0x1bd   :  { %5151 = vmatprep.subr.bf16.mxu0 %v7045_v16  ;;  %5183 = vmatprep.subr.bf16.mxu1 %v7048_v19 }
 0x1c0   :  { %5153 = vmatpush1.bf16.msra.mxu0 %v7051_v23  ;;  %5185 = vmatpush1.bf16.msra.mxu1 %v7055_v26 }
 0x1c1   :  { %5155 = vmatprep.subr.bf16.mxu0 %v7059_v29  ;;  %5187 = vmatprep.subr.bf16.mxu1 %v7062_v32 }
 0x1c4   :  { %5157 = vmatpush1.bf16.msra.mxu0 %v7065_v36  ;;  %5189 = vmatpush1.bf16.msra.mxu1 %v7069_v40 }
 0x1c5   :  { %5159 = vmatprep.subr.bf16.mxu0 %v7073_v44  ;;  %5191 = vmatprep.subr.bf16.mxu1 %v7076_v48 }
 0x1c8   :  { %5161 = vmatpush1.bf16.msra.mxu0 %v7079_v54  ;;  %5193 = vmatpush1.bf16.msra.mxu1 %v7083_v58 }
 0x1c9   :  { %5163 = vmatprep.subr.bf16.mxu0 %v7087_v62  ;;  %5195 = vmatprep.subr.bf16.mxu1 %v7090_v4 }
 0x1cc   :  { %5165 = vmatpush1.bf16.msra.mxu0 %v7093_v9  ;;  %5197 = vmatpush1.bf16.msra.mxu1 %v7097_v14 }
 0x1cd   :  { %5167 = vmatprep.subr.bf16.mxu0 %v7101_v18  ;;  %5199 = vmatprep.subr.bf16.mxu1 %v7104_v22 }
 0x1d0   :  { %5169 = vmatpush1.bf16.msra.mxu0 %v7107_v25  ;;  %5201 = vmatpush1.bf16.msra.mxu1 %v7111_v27 }
 0x1d1   :  { %5203 = vmatprep.subr.bf16.mxu0 %v7008_v38  ;;  %5235 = vmatprep.subr.bf16.mxu1 %v7010_v41 }
 0x286   :  { %v777_v49 = vpop.f32.mrb[2].mxu0  ;;  %v848_v51 = vpop.f32.mrb[2].mxu1 }
 0x287   :  { %v6292_v52 = vadd.f32 %v777_v49, %v7167_v35  ;;  %v779_v55 = vpop.f32.mrb[3].mxu0  ;;  %v850_v61 = vpop.f32.mrb[3].mxu1  ;;  %v6308_v12 = vadd.f32 %v848_v51, %v7184_v1 }
 0x288   :  { %v6293_v2 = vadd.f32 %v779_v55, %v7171_v37  ;;  %v6309_v8 = vadd.f32 %v850_v61, %v7178_v57 }
 0x289   :  { %v4484_v5 = vmul.f32 -1.442695, %v6292_v52 }
 0x28a   :  { %v4485_v7 = vmul.f32 -1.442695, %v6293_v2  ;;  %v4486_v11 = vmul.f32 -1.442695, %v6309_v8 }
 0x28b   :  { %6448 = vpow2.f32 %v4484_v5 }
 0x28c   :  { %6450 = vpow2.f32 %v4485_v7 }
 0x28d   :  { %6452 = vpow2.f32 %v4486_v11 }
 0x28e   :  { %6454 = vtanh.f32 %v6308_v12 }
 0x295   :  { %v6449_v15 = vpop.eup %6448 }
 0x296   :  { %v6451_v17 = vpop.eup %6450  ;;  %v860_v20 = vadd.f32 1.0, %v6449_v15 }
 0x297   :  { %v866_v21 = vadd.f32 1.0, %v6451_v17  ;;  %v6453_v24 = vpop.eup %6452 }
 0x298   :  { %6456 = vrcp.f32 %v860_v20  ;;  %v6455_v28 = vpop.eup %6454  ;;  %v873_v49 = vadd.f32 1.0, %v6453_v24 }
 0x299   :  { %6458 = vrcp.f32 %v866_v21 }
 0x29a   :  { %6460 = vrcp.f32 %v873_v49 }
 0x2a2   :  { %v6457_v39 = vpop.eup %6456 }
 0x2a3   :  { %v6459_v43 = vpop.eup %6458  ;;  %v877_v45 = vmul.f32 %v6457_v39, %v6455_v28 }
 0x2a4   :  { %v876_v52 = vmul.f32 %v6459_v43, %v7187_v33  ;;  %v6461_v51 = vpop.eup %6460 }
 0x2a6   :  { %v7233_v55 = vadd.f32 %v877_v45, %v876_v52 }
 0x2a8   :  { %6462 = vtanh.f32 %v7233_v55 }
 0x2b2   :  { %v6463_v61 = vpop.eup %6462 }
 0x2b3   :  { %v7236_v2 = vmul.f32 %v6463_v61, %v6461_v51 }
 0x2b5   :  { %953 = vmatmul.mubr.f32.vlgmr.msra.gmra.mrb[4].mxu0 %v7236_v2  ;;  %1024 = vmatmul.mubr.f32.vlgmr.msra.gmra.mrb[4].mxu1 %v7236_v2 }
 0x2b6   :  { %5205 = vmatpush1.bf16.msra.mxu0 %v7012_v47  ;;  %5237 = vmatpush1.bf16.msra.mxu1 %v7015_v50 }
 0x2b7   :  { %5207 = vmatprep.subr.bf16.mxu0 %v7018_v53  ;;  %5239 = vmatprep.subr.bf16.mxu1 %v7020_v56 }
 0x2b8   :  { %1129 = vmatprep.mubr.f32.mxu0 %v6862_v0  ;;  %1200 = vmatprep.mubr.f32.mxu1 %v6862_v0 }
 0x2ba   :  { %5209 = vmatpush1.bf16.msra.mxu0 %v7023_v60  ;;  %5241 = vmatpush1.bf16.msra.mxu1 %v7027_v63 }
 0x2bb   :  { %5211 = vmatprep.subr.bf16.mxu0 %v7031_v3  ;;  %5243 = vmatprep.subr.bf16.mxu1 %v7034_v6 }
 0x2be   :  { %5213 = vmatpush1.bf16.msra.mxu0 %v7037_v10  ;;  %5245 = vmatpush1.bf16.msra.mxu1 %v7041_v13 }
 0x2bf   :  { %5215 = vmatprep.subr.bf16.mxu0 %v7045_v16  ;;  %5247 = vmatprep.subr.bf16.mxu1 %v7048_v19 }
 0x2c2   :  { %5217 = vmatpush1.bf16.msra.mxu0 %v7051_v23  ;;  %5249 = vmatpush1.bf16.msra.mxu1 %v7055_v26 }
 0x2c3   :  { %5219 = vmatprep.subr.bf16.mxu0 %v7059_v29  ;;  %5251 = vmatprep.subr.bf16.mxu1 %v7062_v32 }
 0x2c6   :  { %5221 = vmatpush1.bf16.msra.mxu0 %v7065_v36  ;;  %5253 = vmatpush1.bf16.msra.mxu1 %v7069_v40 }
 0x2c7   :  { %5223 = vmatprep.subr.bf16.mxu0 %v7073_v44  ;;  %5255 = vmatprep.subr.bf16.mxu1 %v7076_v48 }
 0x2ca   :  { %5225 = vmatpush1.bf16.msra.mxu0 %v7079_v54  ;;  %5257 = vmatpush1.bf16.msra.mxu1 %v7083_v58 }
 0x2cb   :  { %5227 = vmatprep.subr.bf16.mxu0 %v7087_v62  ;;  %5259 = vmatprep.subr.bf16.mxu1 %v7090_v4 }
 0x2ce   :  { %5229 = vmatpush1.bf16.msra.mxu0 %v7093_v9  ;;  %5261 = vmatpush1.bf16.msra.mxu1 %v7097_v14 }
 0x2cf   :  { %5231 = vmatprep.subr.bf16.mxu0 %v7101_v18  ;;  %5263 = vmatprep.subr.bf16.mxu1 %v7104_v22 }
 0x2d2   :  { %5233 = vmatpush1.bf16.msra.mxu0 %v7107_v25  ;;  %5265 = vmatpush1.bf16.msra.mxu1 %v7111_v27 }
 0x2d3   :  { %5267 = vmatprep.subr.bf16.mxu0 %v7008_v38  ;;  %5299 = vmatprep.subr.bf16.mxu1 %v7010_v41 }
 0x388   :  { %v954_v33 = vpop.f32.mrb[4].mxu0  ;;  %v1025_v5 = vpop.f32.mrb[4].mxu1 }
 0x389   :  { %v6294_v7 = vadd.f32 %v954_v33, %v7167_v35  ;;  %v956_v8 = vpop.f32.mrb[5].mxu0  ;;  %v1027_v11 = vpop.f32.mrb[5].mxu1  ;;  %v6310_v24 = vadd.f32 %v1025_v5, %v7184_v1 }
 0x38a   :  { %v6295_v12 = vadd.f32 %v956_v8, %v7171_v37  ;;  %v6311_v20 = vadd.f32 %v1027_v11, %v7178_v57 }
 0x38b   :  { %v4487_v15 = vmul.f32 -1.442695, %v6294_v7 }
 0x38c   :  { %v4488_v17 = vmul.f32 -1.442695, %v6295_v12  ;;  %v4489_v21 = vmul.f32 -1.442695, %v6311_v20 }
 0x38d   :  { %6464 = vpow2.f32 %v4487_v15 }
 0x38e   :  { %6466 = vpow2.f32 %v4488_v17 }
 0x38f   :  { %6468 = vpow2.f32 %v4489_v21 }
 0x390   :  { %6470 = vtanh.f32 %v6310_v24 }
 0x397   :  { %v6465_v28 = vpop.eup %6464 }
 0x398   :  { %v6467_v39 = vpop.eup %6466  ;;  %v1037_v43 = vadd.f32 1.0, %v6465_v28 }
 0x399   :  { %v1043_v45 = vadd.f32 1.0, %v6467_v39  ;;  %v6469_v49 = vpop.eup %6468 }
 0x39a   :  { %6472 = vrcp.f32 %v1037_v43  ;;  %v6471_v52 = vpop.eup %6470  ;;  %v1050_v7 = vadd.f32 1.0, %v6469_v49 }
 0x39b   :  { %6474 = vrcp.f32 %v1043_v45 }
 0x39c   :  { %6476 = vrcp.f32 %v1050_v7 }
 0x3a4   :  { %v6473_v51 = vpop.eup %6472 }
 0x3a5   :  { %v6475_v61 = vpop.eup %6474  ;;  %v1054_v33 = vmul.f32 %v6473_v51, %v6471_v52 }
 0x3a6   :  { %v1053_v8 = vmul.f32 %v6475_v61, %v7233_v55  ;;  %v6477_v5 = vpop.eup %6476 }
 0x3a8   :  { %v7279_v11 = vadd.f32 %v1054_v33, %v1053_v8 }
 0x3aa   :  { %6478 = vtanh.f32 %v7279_v11 }
 0x3b4   :  { %v6479_v12 = vpop.eup %6478 }
 0x3b5   :  { %v7282_v15 = vmul.f32 %v6479_v12, %v6477_v5 }
 0x3b7   :  { %1130 = vmatmul.mubr.f32.vlgmr.msra.gmra.mrb[6].mxu0 %v7282_v15  ;;  %1201 = vmatmul.mubr.f32.vlgmr.msra.gmra.mrb[6].mxu1 %v7282_v15 }
 0x3b8   :  { %5269 = vmatpush1.bf16.msra.mxu0 %v7012_v47  ;;  %5301 = vmatpush1.bf16.msra.mxu1 %v7015_v50 }
 0x3b9   :  { %5271 = vmatprep.subr.bf16.mxu0 %v7018_v53  ;;  %5303 = vmatprep.subr.bf16.mxu1 %v7020_v56 }
 0x3ba   :  { %1306 = vmatprep.mubr.f32.mxu0 %v6862_v0  ;;  %1377 = vmatprep.mubr.f32.mxu1 %v6862_v0 }
 0x3bc   :  { %5273 = vmatpush1.bf16.msra.mxu0 %v7023_v60  ;;  %5305 = vmatpush1.bf16.msra.mxu1 %v7027_v63 }
 0x3bd   :  { %5275 = vmatprep.subr.bf16.mxu0 %v7031_v3  ;;  %5307 = vmatprep.subr.bf16.mxu1 %v7034_v6 }
 0x3c0   :  { %5277 = vmatpush1.bf16.msra.mxu0 %v7037_v10  ;;  %5309 = vmatpush1.bf16.msra.mxu1 %v7041_v13 }
 0x3c1   :  { %5279 = vmatprep.subr.bf16.mxu0 %v7045_v16  ;;  %5311 = vmatprep.subr.bf16.mxu1 %v7048_v19 }
 0x3c4   :  { %5281 = vmatpush1.bf16.msra.mxu0 %v7051_v23  ;;  %5313 = vmatpush1.bf16.msra.mxu1 %v7055_v26 }
 0x3c5   :  { %5283 = vmatprep.subr.bf16.mxu0 %v7059_v29  ;;  %5315 = vmatprep.subr.bf16.mxu1 %v7062_v32 }
 0x3c8   :  { %5285 = vmatpush1.bf16.msra.mxu0 %v7065_v36  ;;  %5317 = vmatpush1.bf16.msra.mxu1 %v7069_v40 }
 0x3c9   :  { %5287 = vmatprep.subr.bf16.mxu0 %v7073_v44  ;;  %5319 = vmatprep.subr.bf16.mxu1 %v7076_v48 }
 0x3cc   :  { %5289 = vmatpush1.bf16.msra.mxu0 %v7079_v54  ;;  %5321 = vmatpush1.bf16.msra.mxu1 %v7083_v58 }
 0x3cd   :  { %5291 = vmatprep.subr.bf16.mxu0 %v7087_v62  ;;  %5323 = vmatprep.subr.bf16.mxu1 %v7090_v4 }
 0x3d0   :  { %5293 = vmatpush1.bf16.msra.mxu0 %v7093_v9  ;;  %5325 = vmatpush1.bf16.msra.mxu1 %v7097_v14 }
 0x3d1   :  { %5295 = vmatprep.subr.bf16.mxu0 %v7101_v18  ;;  %5327 = vmatprep.subr.bf16.mxu1 %v7104_v22 }
 0x3d4   :  { %5297 = vmatpush1.bf16.msra.mxu0 %v7107_v25  ;;  %5329 = vmatpush1.bf16.msra.mxu1 %v7111_v27 }
 0x3d5   :  { %5331 = vmatprep.subr.bf16.mxu0 %v7008_v38  ;;  %5363 = vmatprep.subr.bf16.mxu1 %v7010_v41 }
 0x48a   :  { %v1131_v55 = vpop.f32.mrb[6].mxu0  ;;  %v1202_v17 = vpop.f32.mrb[6].mxu1 }
 0x48b   :  { %v6296_v20 = vadd.f32 %v1131_v55, %v7167_v35  ;;  %v1133_v21 = vpop.f32.mrb[7].mxu0  ;;  %v1204_v24 = vpop.f32.mrb[7].mxu1  ;;  %v6312_v52 = vadd.f32 %v1202_v17, %v7184_v1 }
 0x48c   :  { %v6297_v28 = vadd.f32 %v1133_v21, %v7171_v37  ;;  %v6313_v45 = vadd.f32 %v1204_v24, %v7178_v57 }
 0x48d   :  { %v4490_v39 = vmul.f32 -1.442695, %v6296_v20 }
 0x48e   :  { %v4491_v43 = vmul.f32 -1.442695, %v6297_v28  ;;  %v4492_v49 = vmul.f32 -1.442695, %v6313_v45 }
 0x48f   :  { %6480 = vpow2.f32 %v4490_v39 }
 0x490   :  { %6482 = vpow2.f32 %v4491_v43 }
 0x491   :  { %6484 = vpow2.f32 %v4492_v49 }
 0x492   :  { %6486 = vtanh.f32 %v6312_v52 }
 0x499   :  { %v6481_v51 = vpop.eup %6480 }
 0x49a   :  { %v6483_v61 = vpop.eup %6482  ;;  %v1214_v33 = vadd.f32 1.0, %v6481_v51 }
 0x49b   :  { %v1220_v7 = vadd.f32 1.0, %v6483_v61  ;;  %v6485_v8 = vpop.eup %6484 }
 0x49c   :  { %6488 = vrcp.f32 %v1214_v33  ;;  %v6487_v5 = vpop.eup %6486  ;;  %v1227_v21 = vadd.f32 1.0, %v6485_v8 }
 0x49d   :  { %6490 = vrcp.f32 %v1220_v7 }
 0x49e   :  { %6492 = vrcp.f32 %v1227_v21 }
 0x4a6   :  { %v6489_v12 = vpop.eup %6488 }
 0x4a7   :  { %v6491_v55 = vpop.eup %6490  ;;  %v1231_v20 = vmul.f32 %v6489_v12, %v6487_v5 }
 0x4a8   :  { %v1230_v28 = vmul.f32 %v6491_v55, %v7279_v11  ;;  %v6493_v17 = vpop.eup %6492 }
 0x4aa   :  { %v7325_v24 = vadd.f32 %v1231_v20, %v1230_v28 }
 0x4ac   :  { %6494 = vtanh.f32 %v7325_v24 }
 0x4b6   :  { %v6495_v39 = vpop.eup %6494 }
 0x4b7   :  { %v7328_v43 = vmul.f32 %v6495_v39, %v6493_v17 }
 0x4b9   :  { %1307 = vmatmul.mubr.f32.vlgmr.msra.gmra.mrb[8].mxu0 %v7328_v43  ;;  %1378 = vmatmul.mubr.f32.vlgmr.msra.gmra.mrb[8].mxu1 %v7328_v43 }
 0x4ba   :  { %5333 = vmatpush1.bf16.msra.mxu0 %v7012_v47  ;;  %5365 = vmatpush1.bf16.msra.mxu1 %v7015_v50 }
 0x4bb   :  { %5335 = vmatprep.subr.bf16.mxu0 %v7018_v53  ;;  %5367 = vmatprep.subr.bf16.mxu1 %v7020_v56 }
 0x4bc   :  { %1483 = vmatprep.mubr.f32.mxu0 %v6862_v0  ;;  %1554 = vmatprep.mubr.f32.mxu1 %v6862_v0 }
 0x4be   :  { %5337 = vmatpush1.bf16.msra.mxu0 %v7023_v60  ;;  %5369 = vmatpush1.bf16.msra.mxu1 %v7027_v63 }
 0x4bf   :  { %5339 = vmatprep.subr.bf16.mxu0 %v7031_v3  ;;  %5371 = vmatprep.subr.bf16.mxu1 %v7034_v6 }
 0x4c2   :  { %5341 = vmatpush1.bf16.msra.mxu0 %v7037_v10  ;;  %5373 = vmatpush1.bf16.msra.mxu1 %v7041_v13 }
 0x4c3   :  { %5343 = vmatprep.subr.bf16.mxu0 %v7045_v16  ;;  %5375 = vmatprep.subr.bf16.mxu1 %v7048_v19 }
 0x4c6   :  { %5345 = vmatpush1.bf16.msra.mxu0 %v7051_v23  ;;  %5377 = vmatpush1.bf16.msra.mxu1 %v7055_v26 }
 0x4c7   :  { %5347 = vmatprep.subr.bf16.mxu0 %v7059_v29  ;;  %5379 = vmatprep.subr.bf16.mxu1 %v7062_v32 }
 0x4ca   :  { %5349 = vmatpush1.bf16.msra.mxu0 %v7065_v36  ;;  %5381 = vmatpush1.bf16.msra.mxu1 %v7069_v40 }
 0x4cb   :  { %5351 = vmatprep.subr.bf16.mxu0 %v7073_v44  ;;  %5383 = vmatprep.subr.bf16.mxu1 %v7076_v48 }
 0x4ce   :  { %5353 = vmatpush1.bf16.msra.mxu0 %v7079_v54  ;;  %5385 = vmatpush1.bf16.msra.mxu1 %v7083_v58 }
 0x4cf   :  { %5355 = vmatprep.subr.bf16.mxu0 %v7087_v62  ;;  %5387 = vmatprep.subr.bf16.mxu1 %v7090_v4 }
 0x4d2   :  { %5357 = vmatpush1.bf16.msra.mxu0 %v7093_v9  ;;  %5389 = vmatpush1.bf16.msra.mxu1 %v7097_v14 }
 0x4d3   :  { %5359 = vmatprep.subr.bf16.mxu0 %v7101_v18  ;;  %5391 = vmatprep.subr.bf16.mxu1 %v7104_v22 }
 0x4d6   :  { %5361 = vmatpush1.bf16.msra.mxu0 %v7107_v25  ;;  %5393 = vmatpush1.bf16.msra.mxu1 %v7111_v27 }
 0x4d7   :  { %5395 = vmatprep.subr.bf16.mxu0 %v7008_v38  ;;  %5427 = vmatprep.subr.bf16.mxu1 %v7010_v41 }
 0x58c   :  { %v1308_v11 = vpop.f32.mrb[8].mxu0  ;;  %v1379_v45 = vpop.f32.mrb[8].mxu1 }
 0x58d   :  { %v6298_v49 = vadd.f32 %v1308_v11, %v7167_v35  ;;  %v1310_v52 = vpop.f32.mrb[9].mxu0  ;;  %v1381_v51 = vpop.f32.mrb[9].mxu1  ;;  %v6314_v12 = vadd.f32 %v1379_v45, %v7184_v1 }
 0x58e   :  { %v6299_v61 = vadd.f32 %v1310_v52, %v7171_v37  ;;  %v6315_v8 = vadd.f32 %v1381_v51, %v7178_v57 }
 0x58f   :  { %v4493_v33 = vmul.f32 -1.442695, %v6298_v49 }
 0x590   :  { %v4494_v7 = vmul.f32 -1.442695, %v6299_v61  ;;  %v4495_v5 = vmul.f32 -1.442695, %v6315_v8 }
 0x591   :  { %6496 = vpow2.f32 %v4493_v33 }
 0x592   :  { %6498 = vpow2.f32 %v4494_v7 }
 0x593   :  { %6500 = vpow2.f32 %v4495_v5 }
 0x594   :  { %6502 = vtanh.f32 %v6314_v12 }
 0x59b   :  { %v6497_v55 = vpop.eup %6496 }
 0x59c   :  { %v6499_v20 = vpop.eup %6498  ;;  %v1391_v21 = vadd.f32 1.0, %v6497_v55 }
 0x59d   :  { %v1397_v28 = vadd.f32 1.0, %v6499_v20  ;;  %v6501_v17 = vpop.eup %6500 }
 0x59e   :  { %6504 = vrcp.f32 %v1391_v21  ;;  %v6503_v39 = vpop.eup %6502  ;;  %v1404_v61 = vadd.f32 1.0, %v6501_v17 }
 0x59f   :  { %6506 = vrcp.f32 %v1397_v28 }
 0x5a0   :  { %6508 = vrcp.f32 %v1404_v61 }
 0x5a8   :  { %v6505_v11 = vpop.eup %6504 }
 0x5a9   :  { %v6507_v49 = vpop.eup %6506  ;;  %v1408_v52 = vmul.f32 %v6505_v11, %v6503_v39 }
 0x5aa   :  { %v1407_v33 = vmul.f32 %v6507_v49, %v7325_v24  ;;  %v6509_v45 = vpop.eup %6508 }
 0x5ac   :  { %v7371_v51 = vadd.f32 %v1408_v52, %v1407_v33 }
 0x5ae   :  { %6510 = vtanh.f32 %v7371_v51 }
 0x5b8   :  { %v6511_v7 = vpop.eup %6510 }
 0x5b9   :  { %v7374_v8 = vmul.f32 %v6511_v7, %v6509_v45 }
 0x5bb   :  { %1484 = vmatmul.mubr.f32.vlgmr.msra.gmra.mrb[10].mxu0 %v7374_v8  ;;  %1555 = vmatmul.mubr.f32.vlgmr.msra.gmra.mrb[10].mxu1 %v7374_v8 }
 0x5bc   :  { %5397 = vmatpush1.bf16.msra.mxu0 %v7012_v47  ;;  %5429 = vmatpush1.bf16.msra.mxu1 %v7015_v50 }
 0x5bd   :  { %5399 = vmatprep.subr.bf16.mxu0 %v7018_v53  ;;  %5431 = vmatprep.subr.bf16.mxu1 %v7020_v56 }
 0x5be   :  { %1660 = vmatprep.mubr.f32.mxu0 %v6862_v0  ;;  %1731 = vmatprep.mubr.f32.mxu1 %v6862_v0 }
 0x5c0   :  { %5401 = vmatpush1.bf16.msra.mxu0 %v7023_v60  ;;  %5433 = vmatpush1.bf16.msra.mxu1 %v7027_v63 }
 0x5c1   :  { %5403 = vmatprep.subr.bf16.mxu0 %v7031_v3  ;;  %5435 = vmatprep.subr.bf16.mxu1 %v7034_v6 }
 0x5c4   :  { %5405 = vmatpush1.bf16.msra.mxu0 %v7037_v10  ;;  %5437 = vmatpush1.bf16.msra.mxu1 %v7041_v13 }
 0x5c5   :  { %5407 = vmatprep.subr.bf16.mxu0 %v7045_v16  ;;  %5439 = vmatprep.subr.bf16.mxu1 %v7048_v19 }
 0x5c8   :  { %5409 = vmatpush1.bf16.msra.mxu0 %v7051_v23  ;;  %5441 = vmatpush1.bf16.msra.mxu1 %v7055_v26 }
 0x5c9   :  { %5411 = vmatprep.subr.bf16.mxu0 %v7059_v29  ;;  %5443 = vmatprep.subr.bf16.mxu1 %v7062_v32 }
 0x5cc   :  { %5413 = vmatpush1.bf16.msra.mxu0 %v7065_v36  ;;  %5445 = vmatpush1.bf16.msra.mxu1 %v7069_v40 }
 0x5cd   :  { %5415 = vmatprep.subr.bf16.mxu0 %v7073_v44  ;;  %5447 = vmatprep.subr.bf16.mxu1 %v7076_v48 }
 0x5d0   :  { %5417 = vmatpush1.bf16.msra.mxu0 %v7079_v54  ;;  %5449 = vmatpush1.bf16.msra.mxu1 %v7083_v58 }
 0x5d1   :  { %5419 = vmatprep.subr.bf16.mxu0 %v7087_v62  ;;  %5451 = vmatprep.subr.bf16.mxu1 %v7090_v4 }
 0x5d4   :  { %5421 = vmatpush1.bf16.msra.mxu0 %v7093_v9  ;;  %5453 = vmatpush1.bf16.msra.mxu1 %v7097_v14 }
 0x5d5   :  { %5423 = vmatprep.subr.bf16.mxu0 %v7101_v18  ;;  %5455 = vmatprep.subr.bf16.mxu1 %v7104_v22 }
 0x5d8   :  { %5425 = vmatpush1.bf16.msra.mxu0 %v7107_v25  ;;  %5457 = vmatpush1.bf16.msra.mxu1 %v7111_v27 }
 0x5d9   :  { %5459 = vmatprep.subr.bf16.mxu0 %v7008_v38  ;;  %5491 = vmatprep.subr.bf16.mxu1 %v7010_v41 }
 0x68e   :  { %v1485_v24 = vpop.f32.mrb[10].mxu0  ;;  %v1556_v5 = vpop.f32.mrb[10].mxu1 }
 0x68f   :  { %v6300_v12 = vadd.f32 %v1485_v24, %v7167_v35  ;;  %v1487_v55 = vpop.f32.mrb[11].mxu0  ;;  %v1558_v20 = vpop.f32.mrb[11].mxu1  ;;  %v6316_v49 = vadd.f32 %v1556_v5, %v7184_v1 }
 0x690   :  { %v6301_v21 = vadd.f32 %v1487_v55, %v7171_v37  ;;  %v6317_v39 = vadd.f32 %v1558_v20, %v7178_v57 }
 0x691   :  { %v4496_v28 = vmul.f32 -1.442695, %v6300_v12 }
 0x692   :  { %v4497_v17 = vmul.f32 -1.442695, %v6301_v21  ;;  %v4498_v11 = vmul.f32 -1.442695, %v6317_v39  ;;  %v1955_v39 = vld [vmem:[#allocation10 + $0x10] sm:$0xff] }
 0x693   :  { %6512 = vpow2.f32 %v4496_v28 }
 0x694   :  { %6514 = vpow2.f32 %v4497_v17 }
 0x695   :  { %6516 = vpow2.f32 %v4498_v11  ;;  %v1959_v11 = vld [vmem:[#allocation10 + $0x30] sm:$0xff] }
 0x696   :  { %6518 = vtanh.f32 %v6316_v49  ;;  %v1962_v49 = vld [vmem:[#allocation10 + $0x48] sm:$0xff] }
 0x69d   :  { %v6513_v38 = vpop.eup %6512 }
 0x69e   :  { %v6515_v52 = vpop.eup %6514  ;;  %v1568_v41 = vadd.f32 1.0, %v6513_v38  ;;  %v1966_v38 = vld [vmem:[#allocation10 + $0x68] sm:$0xff] }
 0x69f   :  { %v1574_v61 = vadd.f32 1.0, %v6515_v52  ;;  %v6517_v33 = vpop.eup %6516  ;;  %v1964_v52 = vld [vmem:[#allocation10 + $0x58] sm:$0xff] }
 0x6a0   :  { %6520 = vrcp.f32 %v1568_v41  ;;  %v6519_v45 = vpop.eup %6518  ;;  %v1581_v55 = vadd.f32 1.0, %v6517_v33  ;;  %v1968_v41 = vld [vmem:[#allocation10 + $0x78] sm:$0xff] }
 0x6a1   :  { %6522 = vrcp.f32 %v1574_v61 }
 0x6a2   :  { %6524 = vrcp.f32 %v1581_v55 }
 0x6aa   :  { %v6521_v7 = vpop.eup %6520 }
 0x6ab   :  { %v6523_v24 = vpop.eup %6522  ;;  %v1585_v12 = vmul.f32 %v6521_v7, %v6519_v45  ;;  %v5556_v7 = vpack.c.bf16 %v1959_v11, %v1955_v39  ;;  %v1985_v39 = vld [vmem:[#allocation10 + $0x100] sm:$0xff] }
 0x6ac   :  { %v1584_v21 = vmul.f32 %v6523_v24, %v7371_v51  ;;  %v6525_v5 = vpop.eup %6524  ;;  %v1957_v51 = vld [vmem:[#allocation10 + $0x20] sm:$0xff] }
 0x6ad   :  { %v1961_v24 = vld [vmem:[#allocation10 + $0x40] sm:$0xff] }
 0x6ae   :  { %v7417_v20 = vadd.f32 %v1585_v12, %v1584_v21  ;;  %v1965_v12 = vld [vmem:[#allocation10 + $0x60] sm:$0xff]  ;;  %v5526_v21 = vpack.c.bf16 %v1966_v38, %v1962_v49 }
 0x6af   :  { %v1989_v11 = vld [vmem:[#allocation10 + $0x120] sm:$0xff] }
 0x6b0   :  { %6526 = vtanh.f32 %v7417_v20 }
 0x6ba   :  { %v6527_v28 = vpop.eup %6526 }
 0x6bb   :  { %v7420_v17 = vmul.f32 %v6527_v28, %v6525_v5  ;;  %v1963_v5 = vld [vmem:[#allocation10 + $0x50] sm:$0xff] }
 0x6bc   :  { %v1967_v28 = vld [vmem:[#allocation10 + $0x70] sm:$0xff] }
 0x6bd   :  { %1661 = vmatmul.mubr.f32.vlgmr.msra.gmra.mrb[12].mxu0 %v7420_v17  ;;  %1732 = vmatmul.mubr.f32.vlgmr.msra.gmra.mrb[12].mxu1 %v7420_v17 }
 0x6be   :  { %5461 = vmatpush1.bf16.msra.mxu0 %v7012_v47  ;;  %5493 = vmatpush1.bf16.msra.mxu1 %v7015_v50  ;;  %v1954_v47 = vld [vmem:[#allocation10 + $0x8] sm:$0xff] }
 0x6bf   :  { %5463 = vmatprep.subr.bf16.mxu0 %v7018_v53  ;;  %5495 = vmatprep.subr.bf16.mxu1 %v7020_v56  ;;  %v1958_v50 = vld [vmem:[#allocation10 + $0x28] sm:$0xff]  ;;  %v1956_v53 = vld [vmem:[#allocation10 + $0x18] sm:$0xff] }
 0x6c0   :  { %1837 = vmatprep.mubr.f32.mxu0 %v6862_v0  ;;  %1908 = vmatprep.mubr.f32.mxu1 %v6862_v0  ;;  %v5522_v56 = vpack.c.bf16 %v1958_v50, %v1954_v47  ;;  %v1970_v47 = vld [vmem:[#allocation10 + $0x88] sm:$0xff] }
 0x6c1   :  { %v1974_v50 = vld [vmem:[#allocation10 + $0xa8] sm:$0xff] }
 0x6c2   :  { %5465 = vmatpush1.bf16.msra.mxu0 %v7023_v60  ;;  %5497 = vmatpush1.bf16.msra.mxu1 %v7027_v63  ;;  %v1960_v60 = vld [vmem:[#allocation10 + $0x38] sm:$0xff] }
 0x6c3   :  { %5467 = vmatprep.subr.bf16.mxu0 %v7031_v3  ;;  %5499 = vmatprep.subr.bf16.mxu1 %v7034_v6  ;;  %v5554_v63 = vpack.c.bf16 %v1960_v60, %v1956_v53  ;;  %v1972_v53 = vld [vmem:[#allocation10 + $0x98] sm:$0xff]  ;;  %v5528_v60 = vpack.c.bf16 %v1965_v12, %v1961_v24  ;;  %v5540_v24 = vpack.c.bf16 %v1989_v11, %v1985_v39  ;;  %v2299_v11 = vld [vmem:[#allocation12 + $0x10] sm:$0xff] }
 0x6c6   :  { %5469 = vmatpush1.bf16.msra.mxu0 %v7037_v10  ;;  %5501 = vmatpush1.bf16.msra.mxu1 %v7041_v13 }
 0x6c7   :  { %5471 = vmatprep.subr.bf16.mxu0 %v7045_v16  ;;  %5503 = vmatprep.subr.bf16.mxu1 %v7048_v19 }
 0x6ca   :  { %5473 = vmatpush1.bf16.msra.mxu0 %v7051_v23  ;;  %5505 = vmatpush1.bf16.msra.mxu1 %v7055_v26 }
 0x6cb   :  { %5475 = vmatprep.subr.bf16.mxu0 %v7059_v29  ;;  %5507 = vmatprep.subr.bf16.mxu1 %v7062_v32 }
 0x6ce   :  { %5477 = vmatpush1.bf16.msra.mxu0 %v7065_v36  ;;  %5509 = vmatpush1.bf16.msra.mxu1 %v7069_v40 }
 0x6cf   :  { %5479 = vmatprep.subr.bf16.mxu0 %v7073_v44  ;;  %5511 = vmatprep.subr.bf16.mxu1 %v7076_v48 }
 0x6d2   :  { %5481 = vmatpush1.bf16.msra.mxu0 %v7079_v54  ;;  %5513 = vmatpush1.bf16.msra.mxu1 %v7083_v58 }
 0x6d3   :  { %5483 = vmatprep.subr.bf16.mxu0 %v7087_v62  ;;  %5515 = vmatprep.subr.bf16.mxu1 %v7090_v4 }
 0x6d6   :  { %5485 = vmatpush1.bf16.msra.mxu0 %v7093_v9  ;;  %5517 = vmatpush1.bf16.msra.mxu1 %v7097_v14 }
 0x6d7   :  { %5487 = vmatprep.subr.bf16.mxu0 %v7101_v18  ;;  %5519 = vmatprep.subr.bf16.mxu1 %v7104_v22 }
 0x6da   :  { %5489 = vmatpush1.bf16.msra.mxu0 %v7107_v25  ;;  %5521 = vmatpush1.bf16.msra.mxu1 %v7111_v27  ;;  %v1953_v27 = vld [vmem:[#allocation10] sm:$0xff] }
 0x6db   :  { %5523 = vmatprep.subr.bf16.mxu0 %v5522_v56  ;;  %5555 = vmatprep.subr.bf16.mxu1 %v5554_v63  ;;  %v5524_v45 = vpack.c.bf16 %v1957_v51, %v1953_v27  ;;  %v1976_v56 = vld [vmem:[#allocation10 + $0xb8] sm:$0xff]  ;;  %v5560_v63 = vpack.c.bf16 %v1967_v28, %v1963_v5 }
 0x790   :  { %v1662_v3 = vpop.f32.mrb[12].mxu0  ;;  %v1733_v6 = vpop.f32.mrb[12].mxu1 }
 0x791   :  { %v6302_v10 = vadd.f32 %v1662_v3, %v7167_v35  ;;  %v1664_v13 = vpop.f32.mrb[13].mxu0  ;;  %v1735_v16 = vpop.f32.mrb[13].mxu1  ;;  %v6318_v36 = vadd.f32 %v1733_v6, %v7184_v1  ;;  %v1969_v3 = vld [vmem:[#allocation10 + $0x80] sm:$0xff] }
 0x792   :  { %v6303_v19 = vadd.f32 %v1664_v13, %v7171_v37  ;;  %v6319_v29 = vadd.f32 %v1735_v16, %v7178_v57  ;;  %v1973_v6 = vld [vmem:[#allocation10 + $0xa0] sm:$0xff]  ;;  %v5562_v13 = vpack.c.bf16 %v1976_v56, %v1972_v53  ;;  %v1971_v16 = vld [vmem:[#allocation10 + $0x90] sm:$0xff]  ;;  %v2002_v53 = vld [vmem:[#allocation10 + $0x188] sm:$0xff] }
 0x793   :  { %v4499_v23 = vmul.f32 -1.442695, %v6302_v10  ;;  %v5530_v10 = vpack.c.bf16 %v1974_v50, %v1970_v47  ;;  %v1995_v47 = vld [vmem:[#allocation10 + $0x150] sm:$0xff]  ;;  %v2006_v56 = vld [vmem:[#allocation10 + $0x1a8] sm:$0xff] }
 0x794   :  { %v4500_v26 = vmul.f32 -1.442695, %v6303_v19  ;;  %v4501_v32 = vmul.f32 -1.442695, %v6319_v29  ;;  %v1975_v19 = vld [vmem:[#allocation10 + $0xb0] sm:$0xff]  ;;  %v1980_v29 = vld [vmem:[#allocation10 + $0xd8] sm:$0xff] }
 0x795   :  { %6528 = vpow2.f32 %v4499_v23  ;;  %v1978_v23 = vld [vmem:[#allocation10 + $0xc8] sm:$0xff]  ;;  %v1999_v50 = vld [vmem:[#allocation10 + $0x170] sm:$0xff] }
 0x796   :  { %6530 = vpow2.f32 %v4500_v26  ;;  %v1982_v26 = vld [vmem:[#allocation10 + $0xe8] sm:$0xff] }
 0x797   :  { %6532 = vpow2.f32 %v4501_v32  ;;  %v1984_v32 = vld [vmem:[#allocation10 + $0xf8] sm:$0xff] }
 0x798   :  { %6534 = vtanh.f32 %v6318_v36  ;;  %v5532_v36 = vpack.c.bf16 %v1973_v6, %v1969_v3  ;;  %v5576_v6 = vpack.c.bf16 %v1999_v50, %v1995_v47  ;;  %v2318_v47 = vld [vmem:[#allocation12 + $0xa8] sm:$0xff]  ;;  %v2316_v50 = vld [vmem:[#allocation12 + $0x98] sm:$0xff] }
 0x79f   :  { %v6529_v40 = vpop.eup %6528 }
 0x7a0   :  { %v6531_v44 = vpop.eup %6530  ;;  %v1745_v48 = vadd.f32 1.0, %v6529_v40  ;;  %v5564_v40 = vpack.c.bf16 %v1975_v19, %v1971_v16  ;;  %v5546_v16 = vpack.c.bf16 %v2006_v56, %v2002_v53  ;;  %v2320_v56 = vld [vmem:[#allocation12 + $0xb8] sm:$0xff] }
 0x7a1   :  { %v1751_v54 = vadd.f32 1.0, %v6531_v44  ;;  %v6533_v58 = vpop.eup %6532  ;;  %v1977_v44 = vld [vmem:[#allocation10 + $0xc0] sm:$0xff] }
 0x7a2   :  { %6536 = vrcp.f32 %v1745_v48  ;;  %v6535_v62 = vpop.eup %6534  ;;  %v1758_v18 = vadd.f32 1.0, %v6533_v58  ;;  %v1981_v48 = vld [vmem:[#allocation10 + $0xe0] sm:$0xff]  ;;  %v5566_v58 = vpack.c.bf16 %v1984_v32, %v1980_v29  ;;  %v2010_v29 = vld [vmem:[#allocation10 + $0x1c8] sm:$0xff] }
 0x7a3   :  { %6538 = vrcp.f32 %v1751_v54  ;;  %v5534_v54 = vpack.c.bf16 %v1982_v26, %v1978_v23  ;;  %v5536_v27 = vpack.c.bf16 %v1981_v48, %v1977_v44  ;;  %v2003_v23 = vld [vmem:[#allocation10 + $0x190] sm:$0xff]  ;;  %v2014_v32 = vld [vmem:[#allocation10 + $0x1e8] sm:$0xff] }
 0x7a4   :  { %6540 = vrcp.f32 %v1758_v18  ;;  %v1988_v18 = vld [vmem:[#allocation10 + $0x118] sm:$0xff]  ;;  %v2007_v26 = vld [vmem:[#allocation10 + $0x1b0] sm:$0xff] }
 0x7a5   :  { %v5580_v48 = vpack.c.bf16 %v2007_v26, %v2003_v23  ;;  %v2326_v23 = vld [vmem:[#allocation12 + $0xe8] sm:$0xff]  ;;  %v2324_v26 = vld [vmem:[#allocation12 + $0xd8] sm:$0xff] }
 0x7ac   :  { %v6537_v4 = vpop.eup %6536 }
 0x7ad   :  { %v6539_v9 = vpop.eup %6538  ;;  %v1762_v14 = vmul.f32 %v6537_v4, %v6535_v62  ;;  %v1979_v62 = vld [vmem:[#allocation10 + $0xd0] sm:$0xff] }
 0x7ae   :  { %v1761_v22 = vmul.f32 %v6539_v9, %v7417_v20  ;;  %v6541_v61 = vpop.eup %6540  ;;  %v5558_v20 = vpack.c.bf16 %v1968_v41, %v1964_v52  ;;  %v1983_v4 = vld [vmem:[#allocation10 + $0xf0] sm:$0xff]  ;;  %v1986_v9 = vld [vmem:[#allocation10 + $0x108] sm:$0xff] }
 0x7af   :  { %v5568_v51 = vpack.c.bf16 %v1983_v4, %v1979_v62  ;;  %v1987_v52 = vld [vmem:[#allocation10 + $0x110] sm:$0xff]  ;;  %v2013_v4 = vld [vmem:[#allocation10 + $0x1e0] sm:$0xff] }
 0x7b0   :  { %v7461_v25 = vadd.f32 %v1762_v14, %v1761_v22  ;;  %v1990_v14 = vld [vmem:[#allocation10 + $0x128] sm:$0xff]  ;;  %v1992_v22 = vld [vmem:[#allocation10 + $0x138] sm:$0xff]  ;;  %v1991_v41 = vld [vmem:[#allocation10 + $0x130] sm:$0xff] }
 0x7b1   :  { %v5538_v49 = vpack.c.bf16 %v1990_v14, %v1986_v9  ;;  %v5570_v38 = vpack.c.bf16 %v1992_v22, %v1988_v18  ;;  %v5572_v12 = vpack.c.bf16 %v1991_v41, %v1987_v52  ;;  %v2011_v9 = vld [vmem:[#allocation10 + $0x1d0] sm:$0xff]  ;;  %v2310_v52 = vld [vmem:[#allocation12 + $0x68] sm:$0xff]  ;;  %v2308_v41 = vld [vmem:[#allocation12 + $0x58] sm:$0xff] }
 0x7b2   :  { %6542 = vtanh.f32 %v7461_v25  ;;  %v2015_v14 = vld [vmem:[#allocation10 + $0x1f0] sm:$0xff] }
 0x7b3   :  { %v5584_v22 = vpack.c.bf16 %v2015_v14, %v2011_v9  ;;  %v2334_v9 = vld [vmem:[#allocation12 + $0x128] sm:$0xff]  ;;  %v2332_v14 = vld [vmem:[#allocation12 + $0x118] sm:$0xff] }
 0x7bc   :  { %v6543_v33 = vpop.eup %6542 }
 0x7bd   :  { %v7464_v55 = vmul.f32 %v6543_v33, %v6541_v61  ;;  %v1994_v61 = vld [vmem:[#allocation10 + $0x148] sm:$0xff] }
 0x7be   :  { %v1998_v33 = vld [vmem:[#allocation10 + $0x168] sm:$0xff] }
 0x7bf   :  { %1838 = vmatmul.mubr.f32.vlgmr.msra.gmra.mrb[14].mxu0 %v7464_v55  ;;  %1909 = vmatmul.mubr.f32.vlgmr.msra.gmra.mrb[14].mxu1 %v7464_v55  ;;  %v5542_v5 = vpack.c.bf16 %v1998_v33, %v1994_v61  ;;  %v2312_v33 = vld [vmem:[#allocation12 + $0x78] sm:$0xff] }
 0x7c0   :  { %5525 = vmatpush1.bf16.msra.mxu0 %v5524_v45  ;;  %5557 = vmatpush1.bf16.msra.mxu1 %v5556_v7  ;;  %v1996_v45 = vld [vmem:[#allocation10 + $0x158] sm:$0xff] }
 0x7c1   :  { %5527 = vmatprep.subr.bf16.mxu0 %v5526_v21  ;;  %5559 = vmatprep.subr.bf16.mxu1 %v5558_v20  ;;  %v2000_v7 = vld [vmem:[#allocation10 + $0x178] sm:$0xff]  ;;  %v1993_v21 = vld [vmem:[#allocation10 + $0x140] sm:$0xff] }
 0x7c2   :  { %2103 = vmatprep.mubr.f32.mxu0 %v6862_v0  ;;  %2216 = vmatprep.mubr.f32.mxu1 %v6862_v0  ;;  %v1997_v20 = vld [vmem:[#allocation10 + $0x160] sm:$0xff]  ;;  %v5574_v28 = vpack.c.bf16 %v2000_v7, %v1996_v45 }
 0x7c3   :  { %v5544_v3 = vpack.c.bf16 %v1997_v20, %v1993_v21  ;;  %v2305_v45 = vld [vmem:[#allocation12 + $0x40] sm:$0xff]  ;;  %v2307_v21 = vld [vmem:[#allocation12 + $0x50] sm:$0xff] }
 0x7c4   :  { %5529 = vmatpush1.bf16.msra.mxu0 %v5528_v60  ;;  %5561 = vmatpush1.bf16.msra.mxu1 %v5560_v63  ;;  %v2004_v60 = vld [vmem:[#allocation10 + $0x198] sm:$0xff]  ;;  %v2309_v7 = vld [vmem:[#allocation12 + $0x60] sm:$0xff]  ;;  %v2311_v20 = vld [vmem:[#allocation12 + $0x70] sm:$0xff] }
 0x7c5   :  { %5531 = vmatprep.subr.bf16.mxu0 %v5530_v10  ;;  %5563 = vmatprep.subr.bf16.mxu1 %v5562_v13  ;;  %v2008_v63 = vld [vmem:[#allocation10 + $0x1b8] sm:$0xff]  ;;  %v2001_v10 = vld [vmem:[#allocation10 + $0x180] sm:$0xff] }
 0x7c6   :  { %v2005_v13 = vld [vmem:[#allocation10 + $0x1a0] sm:$0xff]  ;;  %v5578_v19 = vpack.c.bf16 %v2008_v63, %v2004_v60 }
 0x7c7   :  { %v5548_v44 = vpack.c.bf16 %v2005_v13, %v2001_v10  ;;  %v2313_v60 = vld [vmem:[#allocation12 + $0x80] sm:$0xff]  ;;  %v2315_v10 = vld [vmem:[#allocation12 + $0x90] sm:$0xff] }
 0x7c8   :  { %5533 = vmatpush1.bf16.msra.mxu0 %v5532_v36  ;;  %5565 = vmatpush1.bf16.msra.mxu1 %v5564_v40  ;;  %v2012_v36 = vld [vmem:[#allocation10 + $0x1d8] sm:$0xff]  ;;  %v2317_v63 = vld [vmem:[#allocation12 + $0xa0] sm:$0xff]  ;;  %v2319_v13 = vld [vmem:[#allocation12 + $0xb0] sm:$0xff] }
 0x7c9   :  { %5535 = vmatprep.subr.bf16.mxu0 %v5534_v54  ;;  %5567 = vmatprep.subr.bf16.mxu1 %v5566_v58  ;;  %v2016_v40 = vld [vmem:[#allocation10 + $0x1f8] sm:$0xff]  ;;  %v2009_v54 = vld [vmem:[#allocation10 + $0x1c0] sm:$0xff]  ;;  %v5550_v58 = vpack.c.bf16 %v2014_v32, %v2010_v29 }
 0x7ca   :  { %v5582_v62 = vpack.c.bf16 %v2016_v40, %v2012_v36  ;;  %v5552_v18 = vpack.c.bf16 %v2013_v4, %v2009_v54  ;;  %v2328_v32 = vld [vmem:[#allocation12 + $0xf8] sm:$0xff]  ;;  %v2321_v36 = vld [vmem:[#allocation12 + $0xc0] sm:$0xff]  ;;  %v2323_v54 = vld [vmem:[#allocation12 + $0xd0] sm:$0xff] }
 0x7cb   :  { %v2325_v40 = vld [vmem:[#allocation12 + $0xe0] sm:$0xff] }
 0x7cc   :  { %5537 = vmatpush1.bf16.msra.mxu0 %v5536_v27  ;;  %5569 = vmatpush1.bf16.msra.mxu1 %v5568_v51  ;;  %v2297_v27 = vld [vmem:[#allocation12] sm:$0xff] }
 0x7cd   :  { %5539 = vmatprep.subr.bf16.mxu0 %v5538_v49  ;;  %5571 = vmatprep.subr.bf16.mxu1 %v5570_v38  ;;  %v2303_v49 = vld [vmem:[#allocation12 + $0x30] sm:$0xff]  ;;  %v2306_v38 = vld [vmem:[#allocation12 + $0x48] sm:$0xff] }
 0x7ce   :  { %v7510_v61 = vpack.c.bf16 %v2310_v52, %v2306_v38 }
 0x7d0   :  { %5541 = vmatpush1.bf16.msra.mxu0 %v5540_v24  ;;  %5573 = vmatpush1.bf16.msra.mxu1 %v5572_v12  ;;  %v7512_v24 = vpack.c.bf16 %v2312_v33, %v2308_v41  ;;  %v7514_v12 = vpack.c.bf16 %v2309_v7, %v2305_v45  ;;  %v2340_v41 = vld [vmem:[#allocation12 + $0x158] sm:$0xff]  ;;  %v2337_v45 = vld [vmem:[#allocation12 + $0x140] sm:$0xff] }
 0x7d1   :  { %5543 = vmatprep.subr.bf16.mxu0 %v5542_v5  ;;  %5575 = vmatprep.subr.bf16.mxu1 %v5574_v28  ;;  %v7517_v5 = vpack.c.bf16 %v2311_v20, %v2307_v21  ;;  %v2314_v28 = vld [vmem:[#allocation12 + $0x88] sm:$0xff]  ;;  %v2344_v33 = vld [vmem:[#allocation12 + $0x178] sm:$0xff]  ;;  %v2341_v21 = vld [vmem:[#allocation12 + $0x160] sm:$0xff] }
 0x7d2   :  { %v7522_v53 = vpack.c.bf16 %v2318_v47, %v2314_v28  ;;  %v7558_v7 = vpack.c.bf16 %v2344_v33, %v2340_v41  ;;  %v2339_v20 = vld [vmem:[#allocation12 + $0x150] sm:$0xff]  ;;  %v7561_v47 = vpack.c.bf16 %v2341_v21, %v2337_v45 }
 0x7d3   :  { %v2343_v28 = vld [vmem:[#allocation12 + $0x170] sm:$0xff] }
 0x7d4   :  { %5545 = vmatpush1.bf16.msra.mxu0 %v5544_v3  ;;  %5577 = vmatpush1.bf16.msra.mxu1 %v5576_v6  ;;  %v7524_v3 = vpack.c.bf16 %v2320_v56, %v2316_v50  ;;  %v7526_v6 = vpack.c.bf16 %v2317_v63, %v2313_v60  ;;  %v2346_v50 = vld [vmem:[#allocation12 + $0x188] sm:$0xff]  ;;  %v2348_v60 = vld [vmem:[#allocation12 + $0x198] sm:$0xff]  ;;  %v7565_v63 = vpack.c.bf16 %v2343_v28, %v2339_v20 }
 0x7d5   :  { %5547 = vmatprep.subr.bf16.mxu0 %v5546_v16  ;;  %5579 = vmatprep.subr.bf16.mxu1 %v5578_v19  ;;  %v7529_v16 = vpack.c.bf16 %v2319_v13, %v2315_v10  ;;  %v2322_v19 = vld [vmem:[#allocation12 + $0xc8] sm:$0xff]  ;;  %v2352_v13 = vld [vmem:[#allocation12 + $0x1b8] sm:$0xff] }
 0x7d6   :  { %v7534_v29 = vpack.c.bf16 %v2326_v23, %v2322_v19  ;;  %v2350_v56 = vld [vmem:[#allocation12 + $0x1a8] sm:$0xff]  ;;  %v2345_v19 = vld [vmem:[#allocation12 + $0x180] sm:$0xff] }
 0x7d7   :  { %v7567_v10 = vpack.c.bf16 %v2350_v56, %v2346_v50  ;;  %v2349_v23 = vld [vmem:[#allocation12 + $0x1a0] sm:$0xff] }
 0x7d8   :  { %5549 = vmatpush1.bf16.msra.mxu0 %v5548_v44  ;;  %5581 = vmatpush1.bf16.msra.mxu1 %v5580_v48  ;;  %v7536_v44 = vpack.c.bf16 %v2328_v32, %v2324_v26  ;;  %v7538_v48 = vpack.c.bf16 %v2325_v40, %v2321_v36  ;;  %v7570_v26 = vpack.c.bf16 %v2352_v13, %v2348_v60  ;;  %v2347_v32 = vld [vmem:[#allocation12 + $0x190] sm:$0xff] }
 0x7d9   :  { %5551 = vmatprep.subr.bf16.mxu0 %v5550_v58  ;;  %5583 = vmatprep.subr.bf16.mxu1 %v5582_v62  ;;  %v2327_v58 = vld [vmem:[#allocation12 + $0xf0] sm:$0xff]  ;;  %v2330_v62 = vld [vmem:[#allocation12 + $0x108] sm:$0xff]  ;;  %v7573_v40 = vpack.c.bf16 %v2349_v23, %v2345_v19 }
 0x7da   :  { %v7541_v4 = vpack.c.bf16 %v2327_v58, %v2323_v54  ;;  %v2351_v36 = vld [vmem:[#allocation12 + $0x1b0] sm:$0xff]  ;;  %v2354_v58 = vld [vmem:[#allocation12 + $0x1c8] sm:$0xff] }
 0x7db   :  { %v7577_v54 = vpack.c.bf16 %v2351_v36, %v2347_v32 }
 0x7dc   :  { %5553 = vmatpush1.bf16.msra.mxu0 %v5552_v18  ;;  %5585 = vmatpush1.bf16.msra.mxu1 %v5584_v22  ;;  %v2336_v18 = vld [vmem:[#allocation12 + $0x138] sm:$0xff]  ;;  %v7545_v22 = vpack.c.bf16 %v2334_v9, %v2330_v62  ;;  %v2358_v62 = vld [vmem:[#allocation12 + $0x1e8] sm:$0xff] }
 0x7dd   :  { %v2356_v9 = vld [vmem:[#allocation12 + $0x1d8] sm:$0xff] }
 0x7df   :  { %2104 = vmatmul.mubr.f32.vlgmr.msra.gmra.mrb[16].mxu0 %v7190_v46  ;;  %2217 = vmatmul.mubr.f32.vlgmr.msra.gmra.mrb[16].mxu1 %v7190_v46  ;;  %v2298_v46 = vld [vmem:[#allocation12 + $0x8] sm:$0xff] }
 0x7e0   :  { %2109 = vmatprep.mubr.f32.mxu0 %v6862_v0  ;;  %2222 = vmatprep.mubr.f32.mxu1 %v6862_v0 }
 0x7e3   :  { %2110 = vmatmul.mubr.f32.gmra.mrb[18].mxu0 %v7236_v2  ;;  %2223 = vmatmul.mubr.f32.gmra.mrb[18].mxu1 %v7236_v2  ;;  %v2302_v2 = vld [vmem:[#allocation12 + $0x28] sm:$0xff] }
 0x7e4   :  { %2115 = vmatprep.mubr.f32.mxu0 %v6862_v0  ;;  %2228 = vmatprep.mubr.f32.mxu1 %v6862_v0 }
 0x7e7   :  { %2116 = vmatmul.mubr.f32.gmra.mrb[20].mxu0 %v7282_v15  ;;  %2229 = vmatmul.mubr.f32.gmra.mrb[20].mxu1 %v7282_v15  ;;  %v2300_v15 = vld [vmem:[#allocation12 + $0x18] sm:$0xff] }
 0x7e8   :  { %2121 = vmatprep.mubr.f32.mxu0 %v6862_v0  ;;  %2234 = vmatprep.mubr.f32.mxu1 %v6862_v0 }
 0x7eb   :  { %2122 = vmatmul.mubr.f32.gmra.mrb[22].mxu0 %v7328_v43  ;;  %2235 = vmatmul.mubr.f32.gmra.mrb[22].mxu1 %v7328_v43  ;;  %v7498_v43 = vpack.c.bf16 %v2302_v2, %v2298_v46  ;;  %v7547_v46 = vpack.c.bf16 %v2336_v18, %v2332_v14  ;;  %v2329_v2 = vld [vmem:[#allocation12 + $0x100] sm:$0xff]  ;;  %v7582_v14 = vpack.c.bf16 %v2358_v62, %v2354_v58  ;;  %v2360_v18 = vld [vmem:[#allocation12 + $0x1f8] sm:$0xff] }
 0x7ec   :  { %2127 = vmatprep.mubr.f32.mxu0 %v6862_v0  ;;  %2240 = vmatprep.mubr.f32.mxu1 %v6862_v0 }
 0x7ed   :  { %5587 = vmatprep.subr.bf16.mxu0 %v7498_v43 }
 0x7ef   :  { %2128 = vmatmul.mubr.f32.gmra.mrb[24].mxu0 %v7374_v8  ;;  %2241 = vmatmul.mubr.f32.gmra.mrb[24].mxu1 %v7374_v8  ;;  %v2304_v8 = vld [vmem:[#allocation12 + $0x38] sm:$0xff] }
 0x7f0   :  { %2133 = vmatprep.mubr.f32.mxu0 %v6862_v0  ;;  %2246 = vmatprep.mubr.f32.mxu1 %v6862_v0  ;;  %v7500_v51 = vpack.c.bf16 %v2304_v8, %v2300_v15  ;;  %v2333_v15 = vld [vmem:[#allocation12 + $0x120] sm:$0xff]  ;;  %v2331_v8 = vld [vmem:[#allocation12 + $0x110] sm:$0xff] }
 0x7f2   :  { %5619 = vmatprep.subr.bf16.mxu1 %v7500_v51 }
 0x7f3   :  { %2134 = vmatmul.mubr.f32.gmra.mrb[26].mxu0 %v7420_v17  ;;  %2247 = vmatmul.mubr.f32.gmra.mrb[26].mxu1 %v7420_v17  ;;  %v2301_v17 = vld [vmem:[#allocation12 + $0x20] sm:$0xff] }
 0x7f4   :  { %2139 = vmatprep.mubr.f32.mxu0 %v6862_v0  ;;  %2252 = vmatprep.mubr.f32.mxu1 %v6862_v0  ;;  %v7502_v39 = vpack.c.bf16 %v2301_v17, %v2297_v27  ;;  %v7550_v27 = vpack.c.bf16 %v2333_v15, %v2329_v2  ;;  %v2335_v17 = vld [vmem:[#allocation12 + $0x130] sm:$0xff]  ;;  %v2353_v2 = vld [vmem:[#allocation12 + $0x1c0] sm:$0xff] }
 0x7f5   :  { %v7554_v38 = vpack.c.bf16 %v2335_v17, %v2331_v8  ;;  %v2357_v15 = vld [vmem:[#allocation12 + $0x1e0] sm:$0xff]  ;;  %v7584_v8 = vpack.c.bf16 %v2360_v18, %v2356_v9 }
 0x7f6   :  { %5589 = vmatpush1.bf16.msra.mxu0 %v7502_v39  ;;  %v7586_v17 = vpack.c.bf16 %v2357_v15, %v2353_v2 }
 0x7f7   :  { %2140 = vmatmul.mubr.f32.gmra.mrb[28].mxu0 %v7464_v55  ;;  %2253 = vmatmul.mubr.f32.gmra.mrb[28].mxu1 %v7464_v55  ;;  %v7505_v55 = vpack.c.bf16 %v2303_v49, %v2299_v11  ;;  %v2338_v11 = vld [vmem:[#allocation12 + $0x148] sm:$0xff] }
 0x7f8   :  { %2145 = vmatprep.mubr.f32.mxu0 %v6862_v0  ;;  %2258 = vmatprep.mubr.f32.mxu1 %v6862_v0  ;;  %v2342_v49 = vld [vmem:[#allocation12 + $0x168] sm:$0xff] }
 0x7f9   :  { %5621 = vmatpush1.bf16.msra.mxu1 %v7505_v55  ;;  %5591 = vmatprep.subr.bf16.mxu0 %v7510_v61  ;;  %v7556_v52 = vpack.c.bf16 %v2342_v49, %v2338_v11  ;;  %v2355_v11 = vld [vmem:[#allocation12 + $0x1d0] sm:$0xff] }
 0x7fa   :  { %5623 = vmatprep.subr.bf16.mxu1 %v7512_v24  ;;  %5593 = vmatpush1.bf16.msra.mxu0 %v7514_v12  ;;  %v2359_v49 = vld [vmem:[#allocation12 + $0x1f0] sm:$0xff] }
 0x7fb   :  { %5595 = vmatprep.subr.bf16.mxu0 %v7522_v53  ;;  %v7589_v41 = vpack.c.bf16 %v2359_v49, %v2355_v11 }
 0x7fd   :  { %5625 = vmatpush1.bf16.msra.mxu1 %v7517_v5 }
 0x7fe   :  { %5627 = vmatprep.subr.bf16.mxu1 %v7524_v3  ;;  %5597 = vmatpush1.bf16.msra.mxu0 %v7526_v6 }
 0x7ff   :  { %5599 = vmatprep.subr.bf16.mxu0 %v7534_v29 }
 0x801   :  { %5629 = vmatpush1.bf16.msra.mxu1 %v7529_v16 }
 0x802   :  { %5631 = vmatprep.subr.bf16.mxu1 %v7536_v44  ;;  %5601 = vmatpush1.bf16.msra.mxu0 %v7538_v48 }
 0x803   :  { %5603 = vmatprep.subr.bf16.mxu0 %v7545_v22 }
 0x805   :  { %5633 = vmatpush1.bf16.msra.mxu1 %v7541_v4 }
 0x806   :  { %5635 = vmatprep.subr.bf16.mxu1 %v7547_v46  ;;  %5605 = vmatpush1.bf16.msra.mxu0 %v7550_v27 }
 0x807   :  { %5607 = vmatprep.subr.bf16.mxu0 %v7556_v52 }
 0x809   :  { %5637 = vmatpush1.bf16.msra.mxu1 %v7554_v38 }
 0x80a   :  { %5639 = vmatprep.subr.bf16.mxu1 %v7558_v7  ;;  %5609 = vmatpush1.bf16.msra.mxu0 %v7561_v47 }
 0x80b   :  { %5611 = vmatprep.subr.bf16.mxu0 %v7567_v10 }
 0x80d   :  { %5641 = vmatpush1.bf16.msra.mxu1 %v7565_v63 }
 0x80e   :  { %5643 = vmatprep.subr.bf16.mxu1 %v7570_v26  ;;  %5613 = vmatpush1.bf16.msra.mxu0 %v7573_v40 }
 0x80f   :  { %5615 = vmatprep.subr.bf16.mxu0 %v7582_v14 }
 0x811   :  { %5645 = vmatpush1.bf16.msra.mxu1 %v7577_v54 }
 0x812   :  { %5647 = vmatprep.subr.bf16.mxu1 %v7584_v8  ;;  %5617 = vmatpush1.bf16.msra.mxu0 %v7586_v17 }
 0x813   :  { %5651 = vmatprep.subr.bf16.mxu0 %v7498_v43 }
 0x815   :  { %5649 = vmatpush1.bf16.msra.mxu1 %v7589_v41 }
 0x816   :  { %5683 = vmatprep.subr.bf16.mxu1 %v7500_v51 }
 0x892   :  { %v1839_v33 = vpop.f32.mrb[14].mxu0  ;;  %v1910_v45 = vpop.f32.mrb[14].mxu1 }
 0x893   :  { %v6304_v21 = vadd.f32 %v1839_v33, %v7167_v35  ;;  %v1841_v20 = vpop.f32.mrb[15].mxu0  ;;  %v1912_v28 = vpop.f32.mrb[15].mxu1  ;;  %v6320_v23 = vadd.f32 %v1910_v45, %v7184_v1  ;;  %v2017_v45 = vld [vmem:[%s8039_s6] sm:$0xf] }
 0x894   :  { %v6305_v50 = vadd.f32 %v1841_v20, %v7171_v37  ;;  %v6321_v13 = vadd.f32 %v1912_v28, %v7178_v57  ;;  %v7648_v20 = vrot.slane %v2017_v45, %v195_v34  ;;  %v7659_v34 = vrot.slane %v2017_v45, %v199_v59 }
 0x895   :  { %v4502_v56 = vmul.f32 -1.442695, %v6304_v21  ;;  %v7644_v21 = vrot.slane %v2017_v45, %v191_v31 }
 0x896   :  { %v4503_v60 = vmul.f32 -1.442695, %v6305_v50  ;;  %v4504_v19 = vmul.f32 -1.442695, %v6321_v13 }
 0x897   :  { %6544 = vpow2.f32 %v4502_v56 }
 0x898   :  { %6546 = vpow2.f32 %v4503_v60 }
 0x899   :  { %6548 = vpow2.f32 %v4504_v19 }
 0x89a   :  { %6550 = vtanh.f32 %v6320_v23 }
 0x8a1   :  { %v6545_v32 = vpop.eup %6544 }
 0x8a2   :  { %v6547_v36 = vpop.eup %6546  ;;  %v1922_v58 = vadd.f32 1.0, %v6545_v32 }
 0x8a3   :  { %v1928_v62 = vadd.f32 1.0, %v6547_v36  ;;  %v6549_v35 = vpop.eup %6548  ;;  %v7654_v36 = vrot.slane %v2017_v45, %v203_v42 }
 0x8a4   :  { %6552 = vrcp.f32 %v1922_v58  ;;  %v6551_v9 = vpop.eup %6550  ;;  %v1935_v15 = vadd.f32 1.0, %v6549_v35 }
 0x8a5   :  { %6554 = vrcp.f32 %v1928_v62 }
 0x8a6   :  { %6556 = vrcp.f32 %v1935_v15 }
 0x8ae   :  { %v6553_v37 = vpop.eup %6552 }
 0x8af   :  { %v6555_v18 = vpop.eup %6554  ;;  %v1939_v2 = vmul.f32 %v6553_v37, %v6551_v9 }
 0x8b0   :  { %v1938_v11 = vmul.f32 %v6555_v18, %v7461_v25  ;;  %v6557_v1 = vpop.eup %6556  ;;  %v6863_v25 = vmov 0.0|0.0  }
 0x8b2   :  { %v1940_v57 = vadd.f32 %v1939_v2, %v1938_v11 }
 0x8b4   :  { %6558 = vtanh.f32 %v1940_v57 }
 0x8be   :  { %v6559_v49 = vpop.eup %6558 }
 0x8bf   :  { %v1942_v33 = vmul.f32 %v6559_v49, %v6557_v1  ;;  %v2535_v49 = vld [vmem:[#allocation13] sm:$0xff] }
 0x8c1   :  { %2146 = vmatmul.mubr.f32.gmra.mrb[30].mxu0 %v1942_v33  ;;  %2259 = vmatmul.mubr.f32.gmra.mrb[30].mxu1 %v1942_v33  ;;  %v2536_v33 = vld [vmem:[#allocation13 + $0x8] sm:$0xff] }
 0x8c2   :  { %2429 = vmatprep.mubr.f32.mxu0 %v6862_v0  ;;  %2500 = vmatprep.mubr.f32.mxu1 %v6862_v0 }
 0x8c5   :  { %2430 = vmatmul.mubr.f32.vlgmr.msra.gmra.mrb[16].mxu0 %v6862_v0  ;;  %2501 = vmatmul.mubr.f32.vlgmr.msra.gmra.mrb[16].mxu1 %v6862_v0 }
 0x8c6   :  { %5685 = vmatpush1.bf16.msra.mxu1 %v7505_v55  ;;  %5653 = vmatpush1.bf16.msra.mxu0 %v7502_v39 }
 0x8c7   :  { %5687 = vmatprep.subr.bf16.mxu1 %v7512_v24  ;;  %5655 = vmatprep.subr.bf16.mxu0 %v7510_v61 }
 0x8c8   :  { %2619 = vmatprep.mubr.f32.mxu0 %v6862_v0  ;;  %2690 = vmatprep.mubr.f32.mxu1 %v6862_v0 }
 0x8ca   :  { %5689 = vmatpush1.bf16.msra.mxu1 %v7517_v5  ;;  %5657 = vmatpush1.bf16.msra.mxu0 %v7514_v12 }
 0x8cb   :  { %5691 = vmatprep.subr.bf16.mxu1 %v7524_v3  ;;  %5659 = vmatprep.subr.bf16.mxu0 %v7522_v53 }
 0x8ce   :  { %5693 = vmatpush1.bf16.msra.mxu1 %v7529_v16  ;;  %5661 = vmatpush1.bf16.msra.mxu0 %v7526_v6 }
 0x8cf   :  { %5695 = vmatprep.subr.bf16.mxu1 %v7536_v44  ;;  %5663 = vmatprep.subr.bf16.mxu0 %v7534_v29 }
 0x8d2   :  { %5697 = vmatpush1.bf16.msra.mxu1 %v7541_v4  ;;  %5665 = vmatpush1.bf16.msra.mxu0 %v7538_v48 }
 0x8d3   :  { %5699 = vmatprep.subr.bf16.mxu1 %v7547_v46  ;;  %5667 = vmatprep.subr.bf16.mxu0 %v7545_v22 }
 0x8d6   :  { %5701 = vmatpush1.bf16.msra.mxu1 %v7554_v38  ;;  %5669 = vmatpush1.bf16.msra.mxu0 %v7550_v27 }
 0x8d7   :  { %5703 = vmatprep.subr.bf16.mxu1 %v7558_v7  ;;  %5671 = vmatprep.subr.bf16.mxu0 %v7556_v52 }
 0x8da   :  { %5705 = vmatpush1.bf16.msra.mxu1 %v7565_v63  ;;  %5673 = vmatpush1.bf16.msra.mxu0 %v7561_v47 }
 0x8db   :  { %5707 = vmatprep.subr.bf16.mxu1 %v7570_v26  ;;  %5675 = vmatprep.subr.bf16.mxu0 %v7567_v10 }
 0x8de   :  { %5709 = vmatpush1.bf16.msra.mxu1 %v7577_v54  ;;  %5677 = vmatpush1.bf16.msra.mxu0 %v7573_v40 }
 0x8df   :  { %5711 = vmatprep.subr.bf16.mxu1 %v7584_v8  ;;  %5679 = vmatprep.subr.bf16.mxu0 %v7582_v14 }
 0x8e2   :  { %5713 = vmatpush1.bf16.msra.mxu1 %v7589_v41  ;;  %5681 = vmatpush1.bf16.msra.mxu0 %v7586_v17 }
 0x8e3   :  { %5738 = vmatprep.subr.bf16.mxu1 %v6863_v25  ;;  %5714 = vmatprep.subr.bf16.mxu0 %v6863_v25 }
 0x998   :  { %v2431_v28 = vpop.f32.mrb[16].mxu0  ;;  %v2502_v50 = vpop.f32.mrb[16].mxu1 }
 0x999   :  { %v6322_v56 = vadd.f32 %v2431_v28, %v7644_v21  ;;  %v2433_v60 = vpop.f32.mrb[17].mxu0  ;;  %v2504_v13 = vpop.f32.mrb[17].mxu1  ;;  %v6338_v62 = vadd.f32 %v2502_v50, %v7659_v34  ;;  %v5739_v50 = vpack.c.bf16 %v2536_v33, %v2535_v49  ;;  %v2550_v49 = vld [vmem:[#allocation13 + $0x78] sm:$0xff] }
 0x99a   :  { %v6323_v19 = vadd.f32 %v2433_v60, %v7648_v20  ;;  %v6339_v31 = vadd.f32 %v2504_v13, %v7654_v36  ;;  %v2537_v60 = vld [vmem:[#allocation13 + $0x10] sm:$0xff]  ;;  %v2538_v13 = vld [vmem:[#allocation13 + $0x18] sm:$0xff] }
 0x99b   :  { %v4505_v23 = vmul.f32 -1.442695, %v6322_v56 }
 0x99c   :  { %v4506_v32 = vmul.f32 -1.442695, %v6323_v19  ;;  %v4507_v58 = vmul.f32 -1.442695, %v6339_v31  ;;  %v5742_v19 = vpack.c.bf16 %v2538_v13, %v2537_v60  ;;  %v2729_v60 = vld [vmem:[#allocation13 + $0x98] sm:$0xff] }
 0x99d   :  { %6560 = vpow2.f32 %v4505_v23  ;;  %v2539_v23 = vld [vmem:[#allocation13 + $0x20] sm:$0xff] }
 0x99e   :  { %6562 = vpow2.f32 %v4506_v32  ;;  %v2540_v32 = vld [vmem:[#allocation13 + $0x28] sm:$0xff] }
 0x99f   :  { %6564 = vpow2.f32 %v4507_v58  ;;  %v5745_v31 = vpack.c.bf16 %v2540_v32, %v2539_v23  ;;  %v2541_v58 = vld [vmem:[#allocation13 + $0x30] sm:$0xff]  ;;  %v2731_v23 = vld [vmem:[#allocation13 + $0xa8] sm:$0xff] }
 0x9a0   :  { %6566 = vtanh.f32 %v6338_v62  ;;  %v2542_v62 = vld [vmem:[#allocation13 + $0x38] sm:$0xff] }
 0x9a7   :  { %v6561_v35 = vpop.eup %6560 }
 0x9a8   :  { %v6563_v9 = vpop.eup %6562  ;;  %v2514_v37 = vadd.f32 1.0, %v6561_v35  ;;  %v5748_v35 = vpack.c.bf16 %v2542_v62, %v2541_v58  ;;  %v2733_v58 = vld [vmem:[#allocation13 + $0xb8] sm:$0xff] }
 0x9a9   :  { %v2520_v18 = vadd.f32 1.0, %v6563_v9  ;;  %v6565_v42 = vpop.eup %6564  ;;  %v2543_v9 = vld [vmem:[#allocation13 + $0x40] sm:$0xff] }
 0x9aa   :  { %6568 = vrcp.f32 %v2514_v37  ;;  %v6567_v2 = vpop.eup %6566  ;;  %v2527_v1 = vadd.f32 1.0, %v6565_v42  ;;  %v2544_v37 = vld [vmem:[#allocation13 + $0x48] sm:$0xff]  ;;  %v2545_v42 = vld [vmem:[#allocation13 + $0x50] sm:$0xff] }
 0x9ab   :  { %6570 = vrcp.f32 %v2520_v18  ;;  %v5751_v18 = vpack.c.bf16 %v2544_v37, %v2543_v9  ;;  %v2735_v9 = vld [vmem:[#allocation13 + $0xc8] sm:$0xff] }
 0x9ac   :  { %6572 = vrcp.f32 %v2527_v1 }
 0x9b4   :  { %v6569_v15 = vpop.eup %6568 }
 0x9b5   :  { %v6571_v11 = vpop.eup %6570  ;;  %v2531_v57 = vmul.f32 %v6569_v15, %v6567_v2  ;;  %v2546_v2 = vld [vmem:[#allocation13 + $0x58] sm:$0xff] }
 0x9b6   :  { %v2530_v30 = vmul.f32 0.0, %v6571_v11  ;;  %v6573_v45 = vpop.eup %6572  ;;  %v5754_v15 = vpack.c.bf16 %v2546_v2, %v2545_v42  ;;  %v2547_v11 = vld [vmem:[#allocation13 + $0x60] sm:$0xff]  ;;  %v2737_v42 = vld [vmem:[#allocation13 + $0xd8] sm:$0xff] }
 0x9b7   :  { %v2738_v2 = vld [vmem:[#allocation13 + $0xe0] sm:$0xff] }
 0x9b8   :  { %v7662_v59 = vadd.f32 %v2531_v57, %v2530_v30  ;;  %v2548_v57 = vld [vmem:[#allocation13 + $0x68] sm:$0xff]  ;;  %v2549_v30 = vld [vmem:[#allocation13 + $0x70] sm:$0xff] }
 0x9b9   :  { %v5757_v1 = vpack.c.bf16 %v2548_v57, %v2547_v11  ;;  %v5760_v33 = vpack.c.bf16 %v2550_v49, %v2549_v30  ;;  %v2739_v11 = vld [vmem:[#allocation13 + $0xe8] sm:$0xff]  ;;  %v2741_v30 = vld [vmem:[#allocation13 + $0xf8] sm:$0xff] }
 0x9ba   :  { %6574 = vtanh.f32 %v7662_v59  ;;  %v5733_v57 = vpack.c.bf16 %v2739_v11, %v2738_v2 }
 0x9c4   :  { %v6575_v28 = vpop.eup %6574 }
 0x9c5   :  { %v2534_v56 = vmul.f32 %v6575_v28, %v6573_v45  ;;  %v2726_v45 = vld [vmem:[#allocation13 + $0x80] sm:$0xff]  ;;  %v2727_v28 = vld [vmem:[#allocation13 + $0x88] sm:$0xff] }
 0x9c7   :  { %2620 = vmatmul.mubr.f32.vlgmr.msra.gmra.mrb[18].mxu0 %v2534_v56  ;;  %2691 = vmatmul.mubr.f32.vlgmr.msra.gmra.mrb[18].mxu1 %v2534_v56 }
 0x9c8   :  { %5740 = vmatpush3.bf16.msra.mxu1 %v5739_v50  ;;  %4733 = vmatprep.mubr.msk.f32.mxu1 %vm6864_vm0, %v6862_v0  ;;  %v5715_v50 = vpack.c.bf16 %v2727_v28, %v2726_v45 }
 0x9c9   :  { %5741 = vmatprep.subr.bf16.mxu1 %v6863_v25  ;;  %4698 = vmatprep.mubr.msk.f32.mxu0 %vm6864_vm0, %v6862_v0 }
 0x9ca   :  { %5716 = vmatpush3.bf16.msra.mxu0 %v5715_v50 }
 0x9cb   :  { %5717 = vmatprep.subr.bf16.mxu0 %v6863_v25 }
 0x9cc   :  { %5743 = vmatpush3.bf16.msra.mxu1 %v5742_v19  ;;  %v2730_v19 = vld [vmem:[#allocation13 + $0xa0] sm:$0xff] }
 0x9cd   :  { %5744 = vmatprep.subr.bf16.mxu1 %v6863_v25  ;;  %v5721_v32 = vpack.c.bf16 %v2731_v23, %v2730_v19 }
 0x9d0   :  { %5746 = vmatpush3.bf16.msra.mxu1 %v5745_v31  ;;  %v2732_v31 = vld [vmem:[#allocation13 + $0xb0] sm:$0xff] }
 0x9d1   :  { %5747 = vmatprep.subr.bf16.mxu1 %v6863_v25  ;;  %v5724_v62 = vpack.c.bf16 %v2733_v58, %v2732_v31 }
 0x9d4   :  { %5749 = vmatpush3.bf16.msra.mxu1 %v5748_v35  ;;  %v2734_v35 = vld [vmem:[#allocation13 + $0xc0] sm:$0xff] }
 0x9d5   :  { %5750 = vmatprep.subr.bf16.mxu1 %v6863_v25  ;;  %v5727_v37 = vpack.c.bf16 %v2735_v9, %v2734_v35 }
 0x9d8   :  { %5752 = vmatpush3.bf16.msra.mxu1 %v5751_v18  ;;  %v2736_v18 = vld [vmem:[#allocation13 + $0xd0] sm:$0xff] }
 0x9d9   :  { %5753 = vmatprep.subr.bf16.mxu1 %v6863_v25 }
 0x9dc   :  { %5755 = vmatpush3.bf16.msra.mxu1 %v5754_v15  ;;  %v5730_v15 = vpack.c.bf16 %v2737_v42, %v2736_v18 }
 0x9dd   :  { %5756 = vmatprep.subr.bf16.mxu1 %v6863_v25 }
 0x9e0   :  { %5758 = vmatpush3.bf16.msra.mxu1 %v5757_v1  ;;  %v2740_v1 = vld [vmem:[#allocation13 + $0xf0] sm:$0xff] }
 0x9e1   :  { %5759 = vmatprep.subr.bf16.mxu1 %v6863_v25  ;;  %v5736_v49 = vpack.c.bf16 %v2741_v30, %v2740_v1 }
 0x9e4   :  { %5761 = vmatpush3.bf16.msra.mxu1 %v5760_v33 }
 0x9e5   :  { %5795 = vmatprep.subr.bf16.mxu1 %v7500_v51 }
 0x9e7   :  { %4734 = vmatmul.mubr.f32.vlgmr.msra.gmra.mrb[32].mxu1 %v2534_v56  ;;  %v2728_v56 = vld [vmem:[#allocation13 + $0x90] sm:$0xff] }
 0x9e8   :  { %5797 = vmatpush1.bf16.msra.mxu1 %v7505_v55  ;;  %3021 = vmatprep.mubr.f32.mxu1 %v6862_v0  ;;  %v5718_v13 = vpack.c.bf16 %v2729_v60, %v2728_v56 }
 0x9e9   :  { %5799 = vmatprep.subr.bf16.mxu1 %v7512_v24 }
 0x9ea   :  { %5719 = vmatpush3.bf16.msra.mxu0 %v5718_v13 }
 0x9eb   :  { %5720 = vmatprep.subr.bf16.mxu0 %v6863_v25 }
 0x9ec   :  { %5801 = vmatpush1.bf16.msra.mxu1 %v7517_v5 }
 0x9ed   :  { %5803 = vmatprep.subr.bf16.mxu1 %v7524_v3 }
 0x9ee   :  { %5722 = vmatpush3.bf16.msra.mxu0 %v5721_v32 }
 0x9ef   :  { %5723 = vmatprep.subr.bf16.mxu0 %v6863_v25 }
 0x9f0   :  { %5805 = vmatpush1.bf16.msra.mxu1 %v7529_v16 }
 0x9f1   :  { %5807 = vmatprep.subr.bf16.mxu1 %v7536_v44 }
 0x9f2   :  { %5725 = vmatpush3.bf16.msra.mxu0 %v5724_v62 }
 0x9f3   :  { %5726 = vmatprep.subr.bf16.mxu0 %v6863_v25 }
 0x9f4   :  { %5809 = vmatpush1.bf16.msra.mxu1 %v7541_v4 }
 0x9f5   :  { %5811 = vmatprep.subr.bf16.mxu1 %v7547_v46 }
 0x9f6   :  { %5728 = vmatpush3.bf16.msra.mxu0 %v5727_v37 }
 0x9f7   :  { %5729 = vmatprep.subr.bf16.mxu0 %v6863_v25 }
 0x9f8   :  { %5813 = vmatpush1.bf16.msra.mxu1 %v7554_v38 }
 0x9f9   :  { %5815 = vmatprep.subr.bf16.mxu1 %v7558_v7 }
 0x9fa   :  { %5731 = vmatpush3.bf16.msra.mxu0 %v5730_v15 }
 0x9fb   :  { %5732 = vmatprep.subr.bf16.mxu0 %v6863_v25 }
 0x9fc   :  { %5817 = vmatpush1.bf16.msra.mxu1 %v7565_v63 }
 0x9fd   :  { %5819 = vmatprep.subr.bf16.mxu1 %v7570_v26 }
 0x9fe   :  { %5734 = vmatpush3.bf16.msra.mxu0 %v5733_v57 }
 0x9ff   :  { %5735 = vmatprep.subr.bf16.mxu0 %v6863_v25 }
 0xa00   :  { %5821 = vmatpush1.bf16.msra.mxu1 %v7577_v54 }
 0xa01   :  { %5823 = vmatprep.subr.bf16.mxu1 %v7584_v8 }
 0xa02   :  { %5737 = vmatpush3.bf16.msra.mxu0 %v5736_v49 }
 0xa03   :  { %5763 = vmatprep.subr.bf16.mxu0 %v7498_v43 }
 0xa04   :  { %5825 = vmatpush1.bf16.msra.mxu1 %v7589_v41 }
 0xa05   :  { %5883 = vmatprep.subr.bf16.mxu1 %v7500_v51 }
 0xa9a   :  { %v2621_v33 = vpop.f32.mrb[18].mxu0  ;;  %v2692_v45 = vpop.f32.mrb[18].mxu1 }
 0xa9b   :  { %v6324_v28 = vadd.f32 %v2621_v33, %v7644_v21  ;;  %v2623_v50 = vpop.f32.mrb[19].mxu0  ;;  %v2694_v56 = vpop.f32.mrb[19].mxu1  ;;  %v6340_v31 = vadd.f32 %v2692_v45, %v7659_v34 }
 0xa9c   :  { %v6325_v60 = vadd.f32 %v2623_v50, %v7648_v20  ;;  %v6341_v23 = vadd.f32 %v2694_v56, %v7654_v36  ;;  %v3058_v50 = vld [vmem:[#allocation13 + $0x108] sm:$0xff] }
 0xa9d   :  { %v4508_v13 = vmul.f32 -1.442695, %v6324_v28 }
 0xa9e   :  { %v4509_v19 = vmul.f32 -1.442695, %v6325_v60  ;;  %v4510_v32 = vmul.f32 -1.442695, %v6341_v23  ;;  %v3059_v60 = vld [vmem:[#allocation13 + $0x110] sm:$0xff]  ;;  %v3061_v23 = vld [vmem:[#allocation13 + $0x120] sm:$0xff] }
 0xa9f   :  { %6576 = vpow2.f32 %v4508_v13  ;;  %v3060_v13 = vld [vmem:[#allocation13 + $0x118] sm:$0xff] }
 0xaa0   :  { %6578 = vpow2.f32 %v4509_v19  ;;  %v5830_v19 = vpack.c.bf16 %v3060_v13, %v3059_v60 }
 0xaa1   :  { %6580 = vpow2.f32 %v4510_v32  ;;  %v3062_v32 = vld [vmem:[#allocation13 + $0x128] sm:$0xff] }
 0xaa2   :  { %6582 = vtanh.f32 %v6340_v31  ;;  %v5833_v31 = vpack.c.bf16 %v3062_v32, %v3061_v23 }
 0xaa9   :  { %v6577_v58 = vpop.eup %6576 }
 0xaaa   :  { %v6579_v62 = vpop.eup %6578  ;;  %v2704_v35 = vadd.f32 1.0, %v6577_v58  ;;  %v3063_v58 = vld [vmem:[#allocation13 + $0x130] sm:$0xff] }
 0xaab   :  { %v2710_v9 = vadd.f32 1.0, %v6579_v62  ;;  %v6581_v37 = vpop.eup %6580  ;;  %v3064_v62 = vld [vmem:[#allocation13 + $0x138] sm:$0xff] }
 0xaac   :  { %6584 = vrcp.f32 %v2704_v35  ;;  %v6583_v18 = vpop.eup %6582  ;;  %v2717_v11 = vadd.f32 1.0, %v6581_v37  ;;  %v5836_v35 = vpack.c.bf16 %v3064_v62, %v3063_v58  ;;  %v3066_v37 = vld [vmem:[#allocation13 + $0x148] sm:$0xff] }
 0xaad   :  { %6586 = vrcp.f32 %v2710_v9  ;;  %v3065_v9 = vld [vmem:[#allocation13 + $0x140] sm:$0xff] }
 0xaae   :  { %6588 = vrcp.f32 %v2717_v11 }
 0xab6   :  { %v6585_v42 = vpop.eup %6584 }
 0xab7   :  { %v6587_v2 = vpop.eup %6586  ;;  %v2721_v15 = vmul.f32 %v6585_v42, %v6583_v18  ;;  %v5839_v18 = vpack.c.bf16 %v3066_v37, %v3065_v9  ;;  %v3067_v42 = vld [vmem:[#allocation13 + $0x150] sm:$0xff] }
 0xab8   :  { %v2720_v57 = vmul.f32 %v6587_v2, %v7662_v59  ;;  %v6589_v33 = vpop.eup %6588  ;;  %v3057_v59 = vld [vmem:[#allocation13 + $0x100] sm:$0xff]  ;;  %v3068_v2 = vld [vmem:[#allocation13 + $0x158] sm:$0xff] }
 0xab9   :  { %v5827_v56 = vpack.c.bf16 %v3058_v50, %v3057_v59  ;;  %v5842_v11 = vpack.c.bf16 %v3068_v2, %v3067_v42 }
 0xaba   :  { %v7707_v1 = vadd.f32 %v2721_v15, %v2720_v57  ;;  %v7709_v30 = vpop.f32.mrb[32].mxu1  ;;  %v3069_v15 = vld [vmem:[#allocation13 + $0x160] sm:$0xff]  ;;  %v3070_v57 = vld [vmem:[#allocation13 + $0x168] sm:$0xff] }
 0xabb   :  { %v4735_v49 = vpop.f32.mrb[33].mxu1 }
 0xabc   :  { %6590 = vtanh.f32 %v7707_v1  ;;  %v5845_v49 = vpack.c.bf16 %v3070_v57, %v3069_v15 }
 0xac6   :  { %v6591_v45 = vpop.eup %6590 }
 0xac7   :  { %v2724_v28 = vmul.f32 %v6591_v45, %v6589_v33  ;;  %v3071_v33 = vld [vmem:[#allocation13 + $0x170] sm:$0xff]  ;;  %v3072_v45 = vld [vmem:[#allocation13 + $0x178] sm:$0xff] }
 0xac9   :  { %4699 = vmatmul.mubr.f32.vlgmr.msra.gmra.mrb[32].mxu0 %v2724_v28  ;;  %3022 = vmatmul.mubr.f32.vlgmr.msra.gmra.mrb[20].mxu1 %v2724_v28 }
 0xaca   :  { %5765 = vmatpush1.bf16.msra.mxu0 %v7502_v39  ;;  %2950 = vmatprep.mubr.f32.mxu0 %v6862_v0 }
 0xacb   :  { %5767 = vmatprep.subr.bf16.mxu0 %v7510_v61  ;;  %5885 = vmatpush1.bf16.msra.mxu1 %v7505_v55 }
 0xacc   :  { %5887 = vmatprep.subr.bf16.mxu1 %v7512_v24  ;;  %3283 = vmatprep.mubr.f32.mxu1 %v6862_v0 }
 0xace   :  { %5769 = vmatpush1.bf16.msra.mxu0 %v7514_v12 }
 0xacf   :  { %5771 = vmatprep.subr.bf16.mxu0 %v7522_v53  ;;  %5889 = vmatpush1.bf16.msra.mxu1 %v7517_v5 }
 0xad0   :  { %5891 = vmatprep.subr.bf16.mxu1 %v7524_v3 }
 0xad2   :  { %5773 = vmatpush1.bf16.msra.mxu0 %v7526_v6 }
 0xad3   :  { %5775 = vmatprep.subr.bf16.mxu0 %v7534_v29  ;;  %5893 = vmatpush1.bf16.msra.mxu1 %v7529_v16 }
 0xad4   :  { %5895 = vmatprep.subr.bf16.mxu1 %v7536_v44 }
 0xad6   :  { %5777 = vmatpush1.bf16.msra.mxu0 %v7538_v48 }
 0xad7   :  { %5779 = vmatprep.subr.bf16.mxu0 %v7545_v22  ;;  %5897 = vmatpush1.bf16.msra.mxu1 %v7541_v4 }
 0xad8   :  { %5899 = vmatprep.subr.bf16.mxu1 %v7547_v46 }
 0xada   :  { %5781 = vmatpush1.bf16.msra.mxu0 %v7550_v27 }
 0xadb   :  { %5783 = vmatprep.subr.bf16.mxu0 %v7556_v52  ;;  %5901 = vmatpush1.bf16.msra.mxu1 %v7554_v38 }
 0xadc   :  { %5903 = vmatprep.subr.bf16.mxu1 %v7558_v7 }
 0xade   :  { %5785 = vmatpush1.bf16.msra.mxu0 %v7561_v47 }
 0xadf   :  { %5787 = vmatprep.subr.bf16.mxu0 %v7567_v10  ;;  %5905 = vmatpush1.bf16.msra.mxu1 %v7565_v63 }
 0xae0   :  { %5907 = vmatprep.subr.bf16.mxu1 %v7570_v26 }
 0xae2   :  { %5789 = vmatpush1.bf16.msra.mxu0 %v7573_v40 }
 0xae3   :  { %5791 = vmatprep.subr.bf16.mxu0 %v7582_v14  ;;  %5909 = vmatpush1.bf16.msra.mxu1 %v7577_v54 }
 0xae4   :  { %5911 = vmatprep.subr.bf16.mxu1 %v7584_v8 }
 0xae6   :  { %5793 = vmatpush1.bf16.msra.mxu0 %v7586_v17 }
 0xae7   :  { %5826 = vmatprep.subr.bf16.mxu0 %v6863_v25  ;;  %5913 = vmatpush1.bf16.msra.mxu1 %v7589_v41 }
 0xae8   :  { %5914 = vmatprep.subr.bf16.mxu1 %v6863_v25 }
 0xae9   :  { %2951 = vmatmul.mubr.f32.vlgmr.msra.gmra.mrb[20].mxu0 %v2724_v28  ;;  %v5848_v28 = vpack.c.bf16 %v3072_v45, %v3071_v33 }
 0xaea   :  { %4768 = vmatprep.mubr.msk.f32.mxu0 %vm6864_vm0, %v6862_v0  ;;  %5828 = vmatpush3.bf16.msra.mxu0 %v5827_v56 }
 0xaeb   :  { %5829 = vmatprep.subr.bf16.mxu0 %v6863_v25 }
 0xaee   :  { %5831 = vmatpush3.bf16.msra.mxu0 %v5830_v19 }
 0xaef   :  { %5832 = vmatprep.subr.bf16.mxu0 %v6863_v25 }
 0xaf2   :  { %5834 = vmatpush3.bf16.msra.mxu0 %v5833_v31 }
 0xaf3   :  { %5835 = vmatprep.subr.bf16.mxu0 %v6863_v25 }
 0xaf6   :  { %5837 = vmatpush3.bf16.msra.mxu0 %v5836_v35 }
 0xaf7   :  { %5838 = vmatprep.subr.bf16.mxu0 %v6863_v25 }
 0xafa   :  { %5840 = vmatpush3.bf16.msra.mxu0 %v5839_v18 }
 0xafb   :  { %5841 = vmatprep.subr.bf16.mxu0 %v6863_v25 }
 0xafe   :  { %5843 = vmatpush3.bf16.msra.mxu0 %v5842_v11 }
 0xaff   :  { %5844 = vmatprep.subr.bf16.mxu0 %v6863_v25 }
 0xb02   :  { %5846 = vmatpush3.bf16.msra.mxu0 %v5845_v49 }
 0xb03   :  { %5847 = vmatprep.subr.bf16.mxu0 %v6863_v25 }
 0xb06   :  { %5849 = vmatpush3.bf16.msra.mxu0 %v5848_v28 }
 0xb07   :  { %5851 = vmatprep.subr.bf16.mxu0 %v7498_v43 }
 0xb9c   :  { %v2808_v59 = vpop.f32.mrb[32].mxu0  ;;  %v3023_v50 = vpop.f32.mrb[20].mxu1 }
 0xb9d   :  { %v7757_v56 = vadd.f32 %v7709_v30, %v2808_v59  ;;  %v4700_v60 = vpop.f32.mrb[33].mxu0  ;;  %v3025_v13 = vpop.f32.mrb[21].mxu1  ;;  %v6342_v37 = vadd.f32 %v3023_v50, %v7659_v34 }
 0xb9e   :  { %v6343_v35 = vadd.f32 %v3025_v13, %v7654_v36 }
 0xba0   :  { %v4513_v9 = vmul.f32 -1.442695, %v6343_v35  ;;  %v3324_v35 = vld [vmem:[#allocation13 + $0x1a8] sm:$0xff] }
 0xbbc   :  { %v2952_v19 = vpop.f32.mrb[20].mxu0 }
 0xbbd   :  { %v6326_v23 = vadd.f32 %v2952_v19, %v7644_v21  ;;  %v2954_v32 = vpop.f32.mrb[21].mxu0  ;;  %v3320_v19 = vld [vmem:[#allocation13 + $0x188] sm:$0xff] }
 0xbbe   :  { %v6327_v31 = vadd.f32 %v2954_v32, %v7648_v20  ;;  %v3321_v32 = vld [vmem:[#allocation13 + $0x190] sm:$0xff] }
 0xbbf   :  { %v4511_v58 = vmul.f32 -1.442695, %v6326_v23 }
 0xbc0   :  { %v4512_v62 = vmul.f32 -1.442695, %v6327_v31  ;;  %v3322_v31 = vld [vmem:[#allocation13 + $0x198] sm:$0xff] }
 0xbc1   :  { %6592 = vpow2.f32 %v4511_v58  ;;  %v5918_v58 = vpack.c.bf16 %v3322_v31, %v3321_v32 }
 0xbc2   :  { %6594 = vpow2.f32 %v4512_v62  ;;  %v3323_v62 = vld [vmem:[#allocation13 + $0x1a0] sm:$0xff] }
 0xbc3   :  { %6596 = vpow2.f32 %v4513_v9  ;;  %v5921_v9 = vpack.c.bf16 %v3324_v35, %v3323_v62 }
 0xbc4   :  { %6598 = vtanh.f32 %v6342_v37  ;;  %v3325_v37 = vld [vmem:[#allocation13 + $0x1b0] sm:$0xff] }
 0xbcb   :  { %v6593_v18 = vpop.eup %6592 }
 0xbcc   :  { %v6595_v30 = vpop.eup %6594  ;;  %v3035_v42 = vadd.f32 1.0, %v6593_v18  ;;  %v3326_v18 = vld [vmem:[#allocation13 + $0x1b8] sm:$0xff] }
 0xbcd   :  { %v3041_v2 = vadd.f32 1.0, %v6595_v30  ;;  %v6597_v15 = vpop.eup %6596  ;;  %v5924_v30 = vpack.c.bf16 %v3326_v18, %v3325_v37 }
 0xbce   :  { %6600 = vrcp.f32 %v3035_v42  ;;  %v6599_v11 = vpop.eup %6598  ;;  %v3048_v33 = vadd.f32 1.0, %v6597_v15  ;;  %v3327_v42 = vld [vmem:[#allocation13 + $0x1c0] sm:$0xff] }
 0xbcf   :  { %6602 = vrcp.f32 %v3041_v2  ;;  %v3328_v2 = vld [vmem:[#allocation13 + $0x1c8] sm:$0xff] }
 0xbd0   :  { %6604 = vrcp.f32 %v3048_v33  ;;  %v5927_v15 = vpack.c.bf16 %v3328_v2, %v3327_v42 }
 0xbd8   :  { %v6601_v57 = vpop.eup %6600 }
 0xbd9   :  { %v6603_v49 = vpop.eup %6602  ;;  %v3052_v45 = vmul.f32 %v6601_v57, %v6599_v11  ;;  %v3329_v11 = vld [vmem:[#allocation13 + $0x1d0] sm:$0xff]  ;;  %v3330_v57 = vld [vmem:[#allocation13 + $0x1d8] sm:$0xff] }
 0xbda   :  { %v3051_v28 = vmul.f32 %v6603_v49, %v7707_v1  ;;  %v6605_v50 = vpop.eup %6604  ;;  %v3319_v1 = vld [vmem:[#allocation13 + $0x180] sm:$0xff]  ;;  %v5930_v33 = vpack.c.bf16 %v3330_v57, %v3329_v11 }
 0xbdb   :  { %v5915_v23 = vpack.c.bf16 %v3320_v19, %v3319_v1  ;;  %v3331_v49 = vld [vmem:[#allocation13 + $0x1e0] sm:$0xff] }
 0xbdc   :  { %v7764_v59 = vadd.f32 %v3052_v45, %v3051_v28  ;;  %v3332_v45 = vld [vmem:[#allocation13 + $0x1e8] sm:$0xff] }
 0xbdd   :  { %v5933_v28 = vpack.c.bf16 %v3332_v45, %v3331_v49 }
 0xbde   :  { %6606 = vtanh.f32 %v7764_v59 }
 0xbe8   :  { %v6607_v60 = vpop.eup %6606 }
 0xbe9   :  { %v3055_v13 = vmul.f32 %v6607_v60, %v6605_v50  ;;  %v3333_v50 = vld [vmem:[#allocation13 + $0x1f0] sm:$0xff]  ;;  %v3334_v60 = vld [vmem:[#allocation13 + $0x1f8] sm:$0xff] }
 0xbeb   :  { %4769 = vmatmul.mubr.f32.vlgmr.msra.gmra.mrb[34].mxu0 %v3055_v13  ;;  %3284 = vmatmul.mubr.f32.vlgmr.msra.gmra.mrb[22].mxu1 %v3055_v13 }
 0xbec   :  { %5853 = vmatpush1.bf16.msra.mxu0 %v7502_v39  ;;  %3212 = vmatprep.mubr.f32.mxu0 %v6862_v0 }
 0xbed   :  { %5855 = vmatprep.subr.bf16.mxu0 %v7510_v61  ;;  %4803 = vmatprep.mubr.msk.f32.mxu1 %vm6864_vm0, %v6862_v0 }
 0xbee   :  { %5916 = vmatpush3.bf16.msra.mxu1 %v5915_v23 }
 0xbef   :  { %5917 = vmatprep.subr.bf16.mxu1 %v6863_v25 }
 0xbf0   :  { %5857 = vmatpush1.bf16.msra.mxu0 %v7514_v12 }
 0xbf1   :  { %5859 = vmatprep.subr.bf16.mxu0 %v7522_v53 }
 0xbf2   :  { %5919 = vmatpush3.bf16.msra.mxu1 %v5918_v58 }
 0xbf3   :  { %5920 = vmatprep.subr.bf16.mxu1 %v6863_v25 }
 0xbf4   :  { %5861 = vmatpush1.bf16.msra.mxu0 %v7526_v6 }
 0xbf5   :  { %5863 = vmatprep.subr.bf16.mxu0 %v7534_v29 }
 0xbf6   :  { %5922 = vmatpush3.bf16.msra.mxu1 %v5921_v9 }
 0xbf7   :  { %5923 = vmatprep.subr.bf16.mxu1 %v6863_v25 }
 0xbf8   :  { %5865 = vmatpush1.bf16.msra.mxu0 %v7538_v48 }
 0xbf9   :  { %5867 = vmatprep.subr.bf16.mxu0 %v7545_v22 }
 0xbfa   :  { %5925 = vmatpush3.bf16.msra.mxu1 %v5924_v30 }
 0xbfb   :  { %5926 = vmatprep.subr.bf16.mxu1 %v6863_v25 }
 0xbfc   :  { %5869 = vmatpush1.bf16.msra.mxu0 %v7550_v27 }
 0xbfd   :  { %5871 = vmatprep.subr.bf16.mxu0 %v7556_v52 }
 0xbfe   :  { %5928 = vmatpush3.bf16.msra.mxu1 %v5927_v15 }
 0xbff   :  { %5929 = vmatprep.subr.bf16.mxu1 %v6863_v25 }
 0xc00   :  { %5873 = vmatpush1.bf16.msra.mxu0 %v7561_v47 }
 0xc01   :  { %5875 = vmatprep.subr.bf16.mxu0 %v7567_v10 }
 0xc02   :  { %5931 = vmatpush3.bf16.msra.mxu1 %v5930_v33 }
 0xc03   :  { %5932 = vmatprep.subr.bf16.mxu1 %v6863_v25 }
 0xc04   :  { %5877 = vmatpush1.bf16.msra.mxu0 %v7573_v40 }
 0xc05   :  { %5879 = vmatprep.subr.bf16.mxu0 %v7582_v14 }
 0xc06   :  { %5934 = vmatpush3.bf16.msra.mxu1 %v5933_v28 }
 0xc07   :  { %5935 = vmatprep.subr.bf16.mxu1 %v6863_v25 }
 0xc08   :  { %5881 = vmatpush1.bf16.msra.mxu0 %v7586_v17 }
 0xc09   :  { %5939 = vmatprep.subr.bf16.mxu0 %v7498_v43 }
 0xc0b   :  { %3213 = vmatmul.mubr.f32.vlgmr.msra.gmra.mrb[22].mxu0 %v3055_v13  ;;  %v5936_v13 = vpack.c.bf16 %v3334_v60, %v3333_v50 }
 0xc0c   :  { %5941 = vmatpush1.bf16.msra.mxu0 %v7502_v39  ;;  %3474 = vmatprep.mubr.f32.mxu0 %v6862_v0 }
 0xc0d   :  { %5943 = vmatprep.subr.bf16.mxu0 %v7510_v61  ;;  %5937 = vmatpush3.bf16.msra.mxu1 %v5936_v13 }
 0xc0e   :  { %5971 = vmatprep.subr.bf16.mxu1 %v7500_v51 }
 0xc10   :  { %5945 = vmatpush1.bf16.msra.mxu0 %v7514_v12 }
 0xc11   :  { %5947 = vmatprep.subr.bf16.mxu0 %v7522_v53 }
 0xc14   :  { %5949 = vmatpush1.bf16.msra.mxu0 %v7526_v6 }
 0xc15   :  { %5951 = vmatprep.subr.bf16.mxu0 %v7534_v29 }
 0xc18   :  { %5953 = vmatpush1.bf16.msra.mxu0 %v7538_v48 }
 0xc19   :  { %5955 = vmatprep.subr.bf16.mxu0 %v7545_v22 }
 0xc1c   :  { %5957 = vmatpush1.bf16.msra.mxu0 %v7550_v27 }
 0xc1d   :  { %5959 = vmatprep.subr.bf16.mxu0 %v7556_v52 }
 0xc20   :  { %5961 = vmatpush1.bf16.msra.mxu0 %v7561_v47 }
 0xc21   :  { %5963 = vmatprep.subr.bf16.mxu0 %v7567_v10 }
 0xc24   :  { %5965 = vmatpush1.bf16.msra.mxu0 %v7573_v40 }
 0xc25   :  { %5967 = vmatprep.subr.bf16.mxu0 %v7582_v14 }
 0xc28   :  { %5969 = vmatpush1.bf16.msra.mxu0 %v7586_v17 }
 0xc29   :  { %6002 = vmatprep.subr.bf16.mxu0 %v6863_v25 }
 0xcbe   :  { %v3139_v1 = vpop.f32.mrb[34].mxu0  ;;  %v3285_v19 = vpop.f32.mrb[22].mxu1 }
 0xcbf   :  { %v7812_v23 = vadd.f32 %v3139_v1, %v7757_v56  ;;  %v4770_v32 = vpop.f32.mrb[35].mxu0  ;;  %v3287_v31 = vpop.f32.mrb[23].mxu1  ;;  %v6344_v2 = vadd.f32 %v3285_v19, %v7659_v34 }
 0xcc0   :  { %v6345_v30 = vadd.f32 %v3287_v31, %v7654_v36 }
 0xcc2   :  { %v4516_v42 = vmul.f32 -1.442695, %v6345_v30  ;;  %v3586_v30 = vld [vmem:[#allocation13 + $0x228] sm:$0xff] }
 0xcde   :  { %v3214_v58 = vpop.f32.mrb[22].mxu0 }
 0xcdf   :  { %v6328_v62 = vadd.f32 %v3214_v58, %v7644_v21  ;;  %v3216_v35 = vpop.f32.mrb[23].mxu0  ;;  %v3582_v58 = vld [vmem:[#allocation13 + $0x208] sm:$0xff] }
 0xce0   :  { %v6329_v9 = vadd.f32 %v3216_v35, %v7648_v20  ;;  %v3583_v35 = vld [vmem:[#allocation13 + $0x210] sm:$0xff] }
 0xce1   :  { %v4514_v37 = vmul.f32 -1.442695, %v6328_v62 }
 0xce2   :  { %v4515_v18 = vmul.f32 -1.442695, %v6329_v9  ;;  %v3584_v9 = vld [vmem:[#allocation13 + $0x218] sm:$0xff] }
 0xce3   :  { %6608 = vpow2.f32 %v4514_v37  ;;  %v6006_v37 = vpack.c.bf16 %v3584_v9, %v3583_v35 }
 0xce4   :  { %6610 = vpow2.f32 %v4515_v18  ;;  %v3585_v18 = vld [vmem:[#allocation13 + $0x220] sm:$0xff] }
 0xce5   :  { %6612 = vpow2.f32 %v4516_v42  ;;  %v6009_v42 = vpack.c.bf16 %v3586_v30, %v3585_v18 }
 0xce6   :  { %6614 = vtanh.f32 %v6344_v2  ;;  %v3587_v2 = vld [vmem:[#allocation13 + $0x230] sm:$0xff] }
 0xced   :  { %v6609_v15 = vpop.eup %6608 }
 0xcee   :  { %v6611_v56 = vpop.eup %6610  ;;  %v3297_v11 = vadd.f32 1.0, %v6609_v15  ;;  %v3588_v15 = vld [vmem:[#allocation13 + $0x238] sm:$0xff] }
 0xcef   :  { %v3303_v57 = vadd.f32 1.0, %v6611_v56  ;;  %v6613_v49 = vpop.eup %6612  ;;  %v6012_v56 = vpack.c.bf16 %v3588_v15, %v3587_v2 }
 0xcf0   :  { %6616 = vrcp.f32 %v3297_v11  ;;  %v6615_v33 = vpop.eup %6614  ;;  %v3310_v50 = vadd.f32 1.0, %v6613_v49  ;;  %v3589_v11 = vld [vmem:[#allocation13 + $0x240] sm:$0xff] }
 0xcf1   :  { %6618 = vrcp.f32 %v3303_v57  ;;  %v3590_v57 = vld [vmem:[#allocation13 + $0x248] sm:$0xff] }
 0xcf2   :  { %6620 = vrcp.f32 %v3310_v50  ;;  %v6015_v49 = vpack.c.bf16 %v3590_v57, %v3589_v11  ;;  %v3593_v50 = vld [vmem:[#allocation13 + $0x260] sm:$0xff] }
 0xcfa   :  { %v6617_v45 = vpop.eup %6616 }
 0xcfb   :  { %v6619_v28 = vpop.eup %6618  ;;  %v3314_v60 = vmul.f32 %v6617_v45, %v6615_v33  ;;  %v3591_v33 = vld [vmem:[#allocation13 + $0x250] sm:$0xff]  ;;  %v3592_v45 = vld [vmem:[#allocation13 + $0x258] sm:$0xff] }
 0xcfc   :  { %v3313_v13 = vmul.f32 %v6619_v28, %v7764_v59  ;;  %v6621_v19 = vpop.eup %6620  ;;  %v3581_v59 = vld [vmem:[#allocation13 + $0x200] sm:$0xff]  ;;  %v6018_v28 = vpack.c.bf16 %v3592_v45, %v3591_v33 }
 0xcfd   :  { %v6003_v62 = vpack.c.bf16 %v3582_v58, %v3581_v59 }
 0xcfe   :  { %v7819_v1 = vadd.f32 %v3314_v60, %v3313_v13  ;;  %v3594_v60 = vld [vmem:[#allocation13 + $0x268] sm:$0xff] }
 0xcff   :  { %v6021_v13 = vpack.c.bf16 %v3594_v60, %v3593_v50 }
 0xd00   :  { %6622 = vtanh.f32 %v7819_v1 }
 0xd0a   :  { %v6623_v32 = vpop.eup %6622 }
 0xd0b   :  { %v3317_v31 = vmul.f32 %v6623_v32, %v6621_v19  ;;  %v3595_v19 = vld [vmem:[#allocation13 + $0x270] sm:$0xff]  ;;  %v3596_v32 = vld [vmem:[#allocation13 + $0x278] sm:$0xff] }
 0xd0d   :  { %4804 = vmatmul.mubr.f32.vlgmr.msra.gmra.mrb[34].mxu1 %v3317_v31  ;;  %3475 = vmatmul.mubr.f32.vlgmr.msra.gmra.mrb[24].mxu0 %v3317_v31 }
 0xd0e   :  { %5973 = vmatpush1.bf16.msra.mxu1 %v7505_v55  ;;  %3545 = vmatprep.mubr.f32.mxu1 %v6862_v0 }
 0xd0f   :  { %5975 = vmatprep.subr.bf16.mxu1 %v7512_v24  ;;  %4838 = vmatprep.mubr.msk.f32.mxu0 %vm6864_vm0, %v6862_v0 }
 0xd10   :  { %6004 = vmatpush3.bf16.msra.mxu0 %v6003_v62 }
 0xd11   :  { %6005 = vmatprep.subr.bf16.mxu0 %v6863_v25 }
 0xd12   :  { %5977 = vmatpush1.bf16.msra.mxu1 %v7517_v5 }
 0xd13   :  { %5979 = vmatprep.subr.bf16.mxu1 %v7524_v3 }
 0xd14   :  { %6007 = vmatpush3.bf16.msra.mxu0 %v6006_v37 }
 0xd15   :  { %6008 = vmatprep.subr.bf16.mxu0 %v6863_v25 }
 0xd16   :  { %5981 = vmatpush1.bf16.msra.mxu1 %v7529_v16 }
 0xd17   :  { %5983 = vmatprep.subr.bf16.mxu1 %v7536_v44 }
 0xd18   :  { %6010 = vmatpush3.bf16.msra.mxu0 %v6009_v42 }
 0xd19   :  { %6011 = vmatprep.subr.bf16.mxu0 %v6863_v25 }
 0xd1a   :  { %5985 = vmatpush1.bf16.msra.mxu1 %v7541_v4 }
 0xd1b   :  { %5987 = vmatprep.subr.bf16.mxu1 %v7547_v46 }
 0xd1c   :  { %6013 = vmatpush3.bf16.msra.mxu0 %v6012_v56 }
 0xd1d   :  { %6014 = vmatprep.subr.bf16.mxu0 %v6863_v25 }
 0xd1e   :  { %5989 = vmatpush1.bf16.msra.mxu1 %v7554_v38 }
 0xd1f   :  { %5991 = vmatprep.subr.bf16.mxu1 %v7558_v7 }
 0xd20   :  { %6016 = vmatpush3.bf16.msra.mxu0 %v6015_v49 }
 0xd21   :  { %6017 = vmatprep.subr.bf16.mxu0 %v6863_v25 }
 0xd22   :  { %5993 = vmatpush1.bf16.msra.mxu1 %v7565_v63 }
 0xd23   :  { %5995 = vmatprep.subr.bf16.mxu1 %v7570_v26 }
 0xd24   :  { %6019 = vmatpush3.bf16.msra.mxu0 %v6018_v28 }
 0xd25   :  { %6020 = vmatprep.subr.bf16.mxu0 %v6863_v25 }
 0xd26   :  { %5997 = vmatpush1.bf16.msra.mxu1 %v7577_v54 }
 0xd27   :  { %5999 = vmatprep.subr.bf16.mxu1 %v7584_v8 }
 0xd28   :  { %6022 = vmatpush3.bf16.msra.mxu0 %v6021_v13 }
 0xd29   :  { %6023 = vmatprep.subr.bf16.mxu0 %v6863_v25 }
 0xd2a   :  { %6001 = vmatpush1.bf16.msra.mxu1 %v7589_v41 }
 0xd2b   :  { %6059 = vmatprep.subr.bf16.mxu1 %v7500_v51 }
 0xd2d   :  { %3546 = vmatmul.mubr.f32.vlgmr.msra.gmra.mrb[24].mxu1 %v3317_v31  ;;  %v6024_v31 = vpack.c.bf16 %v3596_v32, %v3595_v19 }
 0xd2e   :  { %6061 = vmatpush1.bf16.msra.mxu1 %v7505_v55  ;;  %3807 = vmatprep.mubr.f32.mxu1 %v6862_v0 }
 0xd2f   :  { %6063 = vmatprep.subr.bf16.mxu1 %v7512_v24  ;;  %6025 = vmatpush3.bf16.msra.mxu0 %v6024_v31 }
 0xd30   :  { %6027 = vmatprep.subr.bf16.mxu0 %v7498_v43 }
 0xd32   :  { %6065 = vmatpush1.bf16.msra.mxu1 %v7517_v5 }
 0xd33   :  { %6067 = vmatprep.subr.bf16.mxu1 %v7524_v3 }
 0xd36   :  { %6069 = vmatpush1.bf16.msra.mxu1 %v7529_v16 }
 0xd37   :  { %6071 = vmatprep.subr.bf16.mxu1 %v7536_v44 }
 0xd3a   :  { %6073 = vmatpush1.bf16.msra.mxu1 %v7541_v4 }
 0xd3b   :  { %6075 = vmatprep.subr.bf16.mxu1 %v7547_v46 }
 0xd3e   :  { %6077 = vmatpush1.bf16.msra.mxu1 %v7554_v38 }
 0xd3f   :  { %6079 = vmatprep.subr.bf16.mxu1 %v7558_v7 }
 0xd42   :  { %6081 = vmatpush1.bf16.msra.mxu1 %v7565_v63 }
 0xd43   :  { %6083 = vmatprep.subr.bf16.mxu1 %v7570_v26 }
 0xd46   :  { %6085 = vmatpush1.bf16.msra.mxu1 %v7577_v54 }
 0xd47   :  { %6087 = vmatprep.subr.bf16.mxu1 %v7584_v8 }
 0xd4a   :  { %6089 = vmatpush1.bf16.msra.mxu1 %v7589_v41 }
 0xd4b   :  { %6090 = vmatprep.subr.bf16.mxu1 %v6863_v25 }
 0xde0   :  { %v3401_v59 = vpop.f32.mrb[34].mxu1  ;;  %v3476_v58 = vpop.f32.mrb[24].mxu0 }
 0xde1   :  { %v7867_v62 = vadd.f32 %v3401_v59, %v7812_v23  ;;  %v4805_v35 = vpop.f32.mrb[35].mxu1  ;;  %v3478_v9 = vpop.f32.mrb[25].mxu0  ;;  %v6330_v18 = vadd.f32 %v3476_v58, %v7644_v21 }
 0xde2   :  { %v6331_v37 = vadd.f32 %v3478_v9, %v7648_v20 }
 0xde3   :  { %v4517_v42 = vmul.f32 -1.442695, %v6330_v18 }
 0xde4   :  { %v4518_v30 = vmul.f32 -1.442695, %v6331_v37  ;;  %v3844_v37 = vld [vmem:[#allocation13 + $0x288] sm:$0xff] }
 0xde6   :  { %6624 = vpow2.f32 %v4518_v30  ;;  %v3845_v30 = vld [vmem:[#allocation13 + $0x290] sm:$0xff] }
 0xde7   :  { %6626 = vpow2.f32 %v4517_v42  ;;  %v3846_v42 = vld [vmem:[#allocation13 + $0x298] sm:$0xff] }
 0xdf0   :  { %v6625_v2 = vpop.eup %6624 }
 0xdf1   :  { %v6627_v15 = vpop.eup %6626  ;;  %v3565_v56 = vadd.f32 1.0, %v6625_v2  ;;  %v6094_v2 = vpack.c.bf16 %v3846_v42, %v3845_v30 }
 0xdf2   :  { %v3559_v11 = vadd.f32 1.0, %v6627_v15  ;;  %v3847_v15 = vld [vmem:[#allocation13 + $0x2a0] sm:$0xff] }
 0xdf3   :  { %6628 = vrcp.f32 %v3565_v56  ;;  %v3848_v56 = vld [vmem:[#allocation13 + $0x2a8] sm:$0xff] }
 0xdf4   :  { %6630 = vrcp.f32 %v3559_v11  ;;  %v6097_v11 = vpack.c.bf16 %v3848_v56, %v3847_v15 }
 0xdfd   :  { %v6629_v28 = vpop.eup %6628 }
 0xdfe   :  { %v6631_v50 = vpop.eup %6630  ;;  %v3575_v13 = vmul.f32 %v6629_v28, %v7819_v1  ;;  %v3843_v1 = vld [vmem:[#allocation13 + $0x280] sm:$0xff] }
 0xdff   :  { %v6091_v18 = vpack.c.bf16 %v3844_v37, %v3843_v1 }
 0xe00   :  { %v3547_v57 = vpop.f32.mrb[24].mxu1 }
 0xe01   :  { %v6346_v49 = vadd.f32 %v3547_v57, %v7659_v34  ;;  %v3549_v23 = vpop.f32.mrb[25].mxu1  ;;  %v3849_v57 = vld [vmem:[#allocation13 + $0x2b0] sm:$0xff] }
 0xe02   :  { %v6347_v33 = vadd.f32 %v3549_v23, %v7654_v36 }
 0xe03   :  { %6632 = vtanh.f32 %v6346_v49  ;;  %v3850_v49 = vld [vmem:[#allocation13 + $0x2b8] sm:$0xff] }
 0xe04   :  { %v4519_v45 = vmul.f32 -1.442695, %v6347_v33  ;;  %v6100_v23 = vpack.c.bf16 %v3850_v49, %v3849_v57  ;;  %v3851_v33 = vld [vmem:[#allocation13 + $0x2c0] sm:$0xff] }
 0xe06   :  { %6634 = vpow2.f32 %v4519_v45  ;;  %v3852_v45 = vld [vmem:[#allocation13 + $0x2c8] sm:$0xff] }
 0xe07   :  { %v6103_v28 = vpack.c.bf16 %v3852_v45, %v3851_v33 }
 0xe0d   :  { %v6633_v60 = vpop.eup %6632 }
 0xe0e   :  { %v3576_v19 = vmul.f32 %v6633_v60, %v6631_v50  ;;  %v3853_v50 = vld [vmem:[#allocation13 + $0x2d0] sm:$0xff]  ;;  %v3854_v60 = vld [vmem:[#allocation13 + $0x2d8] sm:$0xff] }
 0xe10   :  { %v6635_v32 = vpop.eup %6634  ;;  %v7874_v31 = vadd.f32 %v3576_v19, %v3575_v13  ;;  %v3855_v13 = vld [vmem:[#allocation13 + $0x2e0] sm:$0xff]  ;;  %v6106_v19 = vpack.c.bf16 %v3854_v60, %v3853_v50 }
 0xe11   :  { %v3572_v59 = vadd.f32 1.0, %v6635_v32  ;;  %v3856_v32 = vld [vmem:[#allocation13 + $0x2e8] sm:$0xff] }
 0xe12   :  { %6636 = vtanh.f32 %v7874_v31 }
 0xe13   :  { %6638 = vrcp.f32 %v3572_v59  ;;  %v6109_v59 = vpack.c.bf16 %v3856_v32, %v3855_v13 }
 0xe1c   :  { %v6637_v58 = vpop.eup %6636 }
 0xe1d   :  { %v6639_v35 = vpop.eup %6638 }
 0xe1e   :  { %v3579_v9 = vmul.f32 %v6639_v35, %v6637_v58  ;;  %v3857_v58 = vld [vmem:[#allocation13 + $0x2f0] sm:$0xff]  ;;  %v3858_v35 = vld [vmem:[#allocation13 + $0x2f8] sm:$0xff] }
 0xe20   :  { %4839 = vmatmul.mubr.f32.vlgmr.msra.gmra.mrb[36].mxu0 %v3579_v9  ;;  %3808 = vmatmul.mubr.f32.vlgmr.msra.gmra.mrb[26].mxu1 %v3579_v9 }
 0xe21   :  { %6029 = vmatpush1.bf16.msra.mxu0 %v7502_v39  ;;  %3736 = vmatprep.mubr.f32.mxu0 %v6862_v0 }
 0xe22   :  { %6031 = vmatprep.subr.bf16.mxu0 %v7510_v61  ;;  %4873 = vmatprep.mubr.msk.f32.mxu1 %vm6864_vm0, %v6862_v0 }
 0xe23   :  { %6092 = vmatpush3.bf16.msra.mxu1 %v6091_v18 }
 0xe24   :  { %6093 = vmatprep.subr.bf16.mxu1 %v6863_v25 }
 0xe25   :  { %6033 = vmatpush1.bf16.msra.mxu0 %v7514_v12 }
 0xe26   :  { %6035 = vmatprep.subr.bf16.mxu0 %v7522_v53 }
 0xe27   :  { %6095 = vmatpush3.bf16.msra.mxu1 %v6094_v2 }
 0xe28   :  { %6096 = vmatprep.subr.bf16.mxu1 %v6863_v25 }
 0xe29   :  { %6037 = vmatpush1.bf16.msra.mxu0 %v7526_v6 }
 0xe2a   :  { %6039 = vmatprep.subr.bf16.mxu0 %v7534_v29 }
 0xe2b   :  { %6098 = vmatpush3.bf16.msra.mxu1 %v6097_v11 }
 0xe2c   :  { %6099 = vmatprep.subr.bf16.mxu1 %v6863_v25 }
 0xe2d   :  { %6041 = vmatpush1.bf16.msra.mxu0 %v7538_v48 }
 0xe2e   :  { %6043 = vmatprep.subr.bf16.mxu0 %v7545_v22 }
 0xe2f   :  { %6101 = vmatpush3.bf16.msra.mxu1 %v6100_v23 }
 0xe30   :  { %6102 = vmatprep.subr.bf16.mxu1 %v6863_v25 }
 0xe31   :  { %6045 = vmatpush1.bf16.msra.mxu0 %v7550_v27 }
 0xe32   :  { %6047 = vmatprep.subr.bf16.mxu0 %v7556_v52 }
 0xe33   :  { %6104 = vmatpush3.bf16.msra.mxu1 %v6103_v28 }
 0xe34   :  { %6105 = vmatprep.subr.bf16.mxu1 %v6863_v25 }
 0xe35   :  { %6049 = vmatpush1.bf16.msra.mxu0 %v7561_v47 }
 0xe36   :  { %6051 = vmatprep.subr.bf16.mxu0 %v7567_v10 }
 0xe37   :  { %6107 = vmatpush3.bf16.msra.mxu1 %v6106_v19 }
 0xe38   :  { %6108 = vmatprep.subr.bf16.mxu1 %v6863_v25 }
 0xe39   :  { %6053 = vmatpush1.bf16.msra.mxu0 %v7573_v40 }
 0xe3a   :  { %6055 = vmatprep.subr.bf16.mxu0 %v7582_v14 }
 0xe3b   :  { %6110 = vmatpush3.bf16.msra.mxu1 %v6109_v59 }
 0xe3c   :  { %6111 = vmatprep.subr.bf16.mxu1 %v6863_v25 }
 0xe3d   :  { %6057 = vmatpush1.bf16.msra.mxu0 %v7586_v17 }
 0xe3e   :  { %6115 = vmatprep.subr.bf16.mxu0 %v7498_v43 }
 0xe40   :  { %3737 = vmatmul.mubr.f32.vlgmr.msra.gmra.mrb[26].mxu0 %v3579_v9  ;;  %v6112_v9 = vpack.c.bf16 %v3858_v35, %v3857_v58 }
 0xe41   :  { %6117 = vmatpush1.bf16.msra.mxu0 %v7502_v39  ;;  %3998 = vmatprep.mubr.f32.mxu0 %v6862_v0 }
 0xe42   :  { %6119 = vmatprep.subr.bf16.mxu0 %v7510_v61  ;;  %6113 = vmatpush3.bf16.msra.mxu1 %v6112_v9 }
 0xe43   :  { %6147 = vmatprep.subr.bf16.mxu1 %v7500_v51 }
 0xe45   :  { %6121 = vmatpush1.bf16.msra.mxu0 %v7514_v12 }
 0xe46   :  { %6123 = vmatprep.subr.bf16.mxu0 %v7522_v53 }
 0xe49   :  { %6125 = vmatpush1.bf16.msra.mxu0 %v7526_v6 }
 0xe4a   :  { %6127 = vmatprep.subr.bf16.mxu0 %v7534_v29 }
 0xe4d   :  { %6129 = vmatpush1.bf16.msra.mxu0 %v7538_v48 }
 0xe4e   :  { %6131 = vmatprep.subr.bf16.mxu0 %v7545_v22 }
 0xe51   :  { %6133 = vmatpush1.bf16.msra.mxu0 %v7550_v27 }
 0xe52   :  { %6135 = vmatprep.subr.bf16.mxu0 %v7556_v52 }
 0xe55   :  { %6137 = vmatpush1.bf16.msra.mxu0 %v7561_v47 }
 0xe56   :  { %6139 = vmatprep.subr.bf16.mxu0 %v7567_v10 }
 0xe59   :  { %6141 = vmatpush1.bf16.msra.mxu0 %v7573_v40 }
 0xe5a   :  { %6143 = vmatprep.subr.bf16.mxu0 %v7582_v14 }
 0xe5d   :  { %6145 = vmatpush1.bf16.msra.mxu0 %v7586_v17 }
 0xe5e   :  { %6178 = vmatprep.subr.bf16.mxu0 %v6863_v25 }
 0xef3   :  { %v3663_v1 = vpop.f32.mrb[36].mxu0  ;;  %v3809_v37 = vpop.f32.mrb[26].mxu1 }
 0xef4   :  { %v7922_v18 = vadd.f32 %v3663_v1, %v7867_v62  ;;  %v4840_v30 = vpop.f32.mrb[37].mxu0  ;;  %v3811_v42 = vpop.f32.mrb[27].mxu1  ;;  %v6348_v45 = vadd.f32 %v3809_v37, %v7659_v34 }
 0xef5   :  { %v6349_v23 = vadd.f32 %v3811_v42, %v7654_v36 }
 0xef7   :  { %v4522_v33 = vmul.f32 -1.442695, %v6349_v23 }
 0xf13   :  { %v3738_v2 = vpop.f32.mrb[26].mxu0 }
 0xf14   :  { %v6332_v15 = vadd.f32 %v3738_v2, %v7644_v21  ;;  %v3740_v56 = vpop.f32.mrb[27].mxu0 }
 0xf15   :  { %v6333_v11 = vadd.f32 %v3740_v56, %v7648_v20  ;;  %v4118_v56 = vld [vmem:[#allocation13 + $0x368] sm:$0xff] }
 0xf16   :  { %v4520_v57 = vmul.f32 -1.442695, %v6332_v15  ;;  %v4117_v15 = vld [vmem:[#allocation13 + $0x360] sm:$0xff] }
 0xf17   :  { %v4521_v49 = vmul.f32 -1.442695, %v6333_v11  ;;  %v6197_v11 = vpack.c.bf16 %v4118_v56, %v4117_v15 }
 0xf18   :  { %6640 = vpow2.f32 %v4520_v57  ;;  %v4119_v57 = vld [vmem:[#allocation13 + $0x370] sm:$0xff] }
 0xf19   :  { %6642 = vpow2.f32 %v4521_v49  ;;  %v4120_v49 = vld [vmem:[#allocation13 + $0x378] sm:$0xff] }
 0xf1a   :  { %6644 = vpow2.f32 %v4522_v33  ;;  %v6200_v23 = vpack.c.bf16 %v4120_v49, %v4119_v57 }
 0xf1b   :  { %6646 = vtanh.f32 %v6348_v45 }
 0xf22   :  { %v6641_v28 = vpop.eup %6640 }
 0xf23   :  { %v6643_v62 = vpop.eup %6642  ;;  %v3821_v50 = vadd.f32 1.0, %v6641_v28 }
 0xf24   :  { %v3827_v60 = vadd.f32 1.0, %v6643_v62  ;;  %v6645_v13 = vpop.eup %6644 }
 0xf25   :  { %6648 = vrcp.f32 %v3821_v50  ;;  %v6647_v19 = vpop.eup %6646  ;;  %v3834_v58 = vadd.f32 1.0, %v6645_v13 }
 0xf26   :  { %6650 = vrcp.f32 %v3827_v60 }
 0xf27   :  { %6652 = vrcp.f32 %v3834_v58 }
 0xf2f   :  { %v6649_v32 = vpop.eup %6648 }
 0xf30   :  { %v6651_v59 = vpop.eup %6650  ;;  %v3838_v35 = vmul.f32 %v6649_v32, %v6647_v19 }
 0xf31   :  { %v3837_v9 = vmul.f32 %v6651_v59, %v7874_v31  ;;  %v6653_v37 = vpop.eup %6652  ;;  %v4116_v31 = vld [vmem:[#allocation13 + $0x358] sm:$0xff] }
 0xf33   :  { %v7929_v1 = vadd.f32 %v3838_v35, %v3837_v9 }
 0xf35   :  { %6654 = vtanh.f32 %v7929_v1 }
 0xf3f   :  { %v6655_v30 = vpop.eup %6654 }
 0xf40   :  { %v3841_v42 = vmul.f32 %v6655_v30, %v6653_v37 }
 0xf42   :  { %4874 = vmatmul.mubr.f32.vlgmr.msra.gmra.mrb[36].mxu1 %v3841_v42  ;;  %3999 = vmatmul.mubr.f32.vlgmr.msra.gmra.mrb[28].mxu0 %v3841_v42 }
 0xf43   :  { %6149 = vmatpush1.bf16.msra.mxu1 %v7505_v55  ;;  %4069 = vmatprep.mubr.f32.mxu1 %v6862_v0 }
 0xf44   :  { %6151 = vmatprep.subr.bf16.mxu1 %v7512_v24  ;;  %4908 = vmatprep.mubr.msk.f32.mxu0 %vm6864_vm0, %v6862_v0 }
 0xf47   :  { %6153 = vmatpush1.bf16.msra.mxu1 %v7517_v5 }
 0xf48   :  { %6155 = vmatprep.subr.bf16.mxu1 %v7524_v3 }
 0xf4b   :  { %6157 = vmatpush1.bf16.msra.mxu1 %v7529_v16 }
 0xf4c   :  { %6159 = vmatprep.subr.bf16.mxu1 %v7536_v44 }
 0xf4f   :  { %6161 = vmatpush1.bf16.msra.mxu1 %v7541_v4 }
 0xf50   :  { %6163 = vmatprep.subr.bf16.mxu1 %v7547_v46 }
 0xf53   :  { %6165 = vmatpush1.bf16.msra.mxu1 %v7554_v38 }
 0xf54   :  { %6167 = vmatprep.subr.bf16.mxu1 %v7558_v7 }
 0xf57   :  { %6169 = vmatpush1.bf16.msra.mxu1 %v7565_v63 }
 0xf58   :  { %6171 = vmatprep.subr.bf16.mxu1 %v7570_v26 }
 0xf5b   :  { %6173 = vmatpush1.bf16.msra.mxu1 %v7577_v54 }
 0xf5c   :  { %6175 = vmatprep.subr.bf16.mxu1 %v7584_v8 }
 0xf5f   :  { %6177 = vmatpush1.bf16.msra.mxu1 %v7589_v41 }
 0xf60   :  { %6235 = vmatprep.subr.bf16.mxu1 %v7500_v51  ;;  %v4105_v51 = vld [vmem:[#allocation13 + $0x300] sm:$0xff] }
 0xf62   :  { %4070 = vmatmul.mubr.f32.vlgmr.msra.gmra.mrb[28].mxu1 %v3841_v42 }
 0xf63   :  { %6237 = vmatpush1.bf16.msra.mxu1 %v7505_v55  ;;  %4331 = vmatprep.mubr.f32.mxu1 %v6862_v0  ;;  %v4106_v55 = vld [vmem:[#allocation13 + $0x308] sm:$0xff] }
 0xf64   :  { %6239 = vmatprep.subr.bf16.mxu1 %v7512_v24  ;;  %v6179_v24 = vpack.c.bf16 %v4106_v55, %v4105_v51 }
 0xf66   :  { %6180 = vmatpush3.bf16.msra.mxu0 %v6179_v24 }
 0xf67   :  { %6241 = vmatpush1.bf16.msra.mxu1 %v7517_v5  ;;  %6181 = vmatprep.subr.bf16.mxu0 %v6863_v25  ;;  %v4107_v5 = vld [vmem:[#allocation13 + $0x310] sm:$0xff] }
 0xf68   :  { %6243 = vmatprep.subr.bf16.mxu1 %v7524_v3  ;;  %v4108_v3 = vld [vmem:[#allocation13 + $0x318] sm:$0xff] }
 0xf6b   :  { %6245 = vmatpush1.bf16.msra.mxu1 %v7529_v16  ;;  %v6182_v16 = vpack.c.bf16 %v4108_v3, %v4107_v5 }
 0xf6c   :  { %6247 = vmatprep.subr.bf16.mxu1 %v7536_v44  ;;  %v4109_v44 = vld [vmem:[#allocation13 + $0x320] sm:$0xff] }
 0xf6d   :  { %6183 = vmatpush3.bf16.msra.mxu0 %v6182_v16 }
 0xf6e   :  { %6184 = vmatprep.subr.bf16.mxu0 %v6863_v25 }
 0xf6f   :  { %6249 = vmatpush1.bf16.msra.mxu1 %v7541_v4  ;;  %v4110_v4 = vld [vmem:[#allocation13 + $0x328] sm:$0xff] }
 0xf70   :  { %6251 = vmatprep.subr.bf16.mxu1 %v7547_v46  ;;  %v6185_v46 = vpack.c.bf16 %v4110_v4, %v4109_v44 }
 0xf72   :  { %6186 = vmatpush3.bf16.msra.mxu0 %v6185_v46 }
 0xf73   :  { %6253 = vmatpush1.bf16.msra.mxu1 %v7554_v38  ;;  %6187 = vmatprep.subr.bf16.mxu0 %v6863_v25  ;;  %v4111_v38 = vld [vmem:[#allocation13 + $0x330] sm:$0xff] }
 0xf74   :  { %6255 = vmatprep.subr.bf16.mxu1 %v7558_v7  ;;  %v4112_v7 = vld [vmem:[#allocation13 + $0x338] sm:$0xff] }
 0xf77   :  { %6257 = vmatpush1.bf16.msra.mxu1 %v7565_v63  ;;  %v6188_v63 = vpack.c.bf16 %v4112_v7, %v4111_v38 }
 0xf78   :  { %6259 = vmatprep.subr.bf16.mxu1 %v7570_v26  ;;  %v4113_v26 = vld [vmem:[#allocation13 + $0x340] sm:$0xff] }
 0xf79   :  { %6189 = vmatpush3.bf16.msra.mxu0 %v6188_v63 }
 0xf7a   :  { %6190 = vmatprep.subr.bf16.mxu0 %v6863_v25 }
 0xf7b   :  { %6261 = vmatpush1.bf16.msra.mxu1 %v7577_v54  ;;  %v4114_v54 = vld [vmem:[#allocation13 + $0x348] sm:$0xff] }
 0xf7c   :  { %6263 = vmatprep.subr.bf16.mxu1 %v7584_v8  ;;  %v6191_v8 = vpack.c.bf16 %v4114_v54, %v4113_v26  ;;  %v4379_v26 = vld [vmem:[#allocation13 + $0x3e0] sm:$0xff]  ;;  %v4380_v54 = vld [vmem:[#allocation13 + $0x3e8] sm:$0xff] }
 0xf7e   :  { %6192 = vmatpush3.bf16.msra.mxu0 %v6191_v8  ;;  %v6285_v8 = vpack.c.bf16 %v4380_v54, %v4379_v26 }
 0xf7f   :  { %6265 = vmatpush1.bf16.msra.mxu1 %v7589_v41  ;;  %6193 = vmatprep.subr.bf16.mxu0 %v6863_v25  ;;  %v4115_v41 = vld [vmem:[#allocation13 + $0x350] sm:$0xff] }
 0xf80   :  { %6266 = vmatprep.subr.bf16.mxu1 %v6863_v25  ;;  %v6194_v2 = vpack.c.bf16 %v4116_v31, %v4115_v41  ;;  %v4381_v41 = vld [vmem:[#allocation13 + $0x3f0] sm:$0xff]  ;;  %v4382_v31 = vld [vmem:[#allocation13 + $0x3f8] sm:$0xff] }
 0xf82   :  { %6195 = vmatpush3.bf16.msra.mxu0 %v6194_v2  ;;  %v6288_v2 = vpack.c.bf16 %v4382_v31, %v4381_v41 }
 0xf83   :  { %6196 = vmatprep.subr.bf16.mxu0 %v6863_v25 }
 0xf86   :  { %6198 = vmatpush3.bf16.msra.mxu0 %v6197_v11 }
 0xf87   :  { %6199 = vmatprep.subr.bf16.mxu0 %v6863_v25 }
 0xf8a   :  { %6201 = vmatpush3.bf16.msra.mxu0 %v6200_v23 }
 0xf8b   :  { %6203 = vmatprep.subr.bf16.mxu0 %v7498_v43 }
0x1015   :  { %v3925_v33 = vpop.f32.mrb[36].mxu1  ;;  %v4000_v45 = vpop.f32.mrb[28].mxu0 }
0x1016   :  { %v7977_v28 = vadd.f32 %v3925_v33, %v7922_v18  ;;  %v4875_v62 = vpop.f32.mrb[37].mxu1  ;;  %v4002_v50 = vpop.f32.mrb[29].mxu0  ;;  %v6334_v13 = vadd.f32 %v4000_v45, %v7644_v21 }
0x1017   :  { %v6335_v60 = vadd.f32 %v4002_v50, %v7648_v20 }
0x1018   :  { %v4523_v32 = vmul.f32 -1.442695, %v6334_v13 }
0x1019   :  { %v4524_v19 = vmul.f32 -1.442695, %v6335_v60 }
0x101b   :  { %6656 = vpow2.f32 %v4524_v19 }
0x101c   :  { %6658 = vpow2.f32 %v4523_v32 }
0x1025   :  { %v6657_v59 = vpop.eup %6656 }
0x1026   :  { %v6659_v58 = vpop.eup %6658  ;;  %v4089_v35 = vadd.f32 1.0, %v6657_v59 }
0x1027   :  { %v4083_v9 = vadd.f32 1.0, %v6659_v58 }
0x1028   :  { %6660 = vrcp.f32 %v4089_v35 }
0x1029   :  { %6662 = vrcp.f32 %v4083_v9 }
0x1032   :  { %v6661_v51 = vpop.eup %6660 }
0x1033   :  { %v6663_v55 = vpop.eup %6662  ;;  %v4099_v5 = vmul.f32 %v6661_v51, %v7929_v1  ;;  %v4378_v1 = vld [vmem:[#allocation13 + $0x3d8] sm:$0xff] }
0x1035   :  { %v4071_v43 = vpop.f32.mrb[28].mxu1 }
0x1036   :  { %v6350_v37 = vadd.f32 %v4071_v43, %v7659_v34  ;;  %v4073_v18 = vpop.f32.mrb[29].mxu1 }
0x1037   :  { %v6351_v30 = vadd.f32 %v4073_v18, %v7654_v36 }
0x1038   :  { %6664 = vtanh.f32 %v6350_v37 }
0x1039   :  { %v4525_v42 = vmul.f32 -1.442695, %v6351_v30 }
0x103b   :  { %6666 = vpow2.f32 %v4525_v42 }
0x1042   :  { %v6665_v24 = vpop.eup %6664 }
0x1043   :  { %v4100_v3 = vmul.f32 %v6665_v24, %v6663_v55  ;;  %v4529_v55 = vld [vmem:[%s8041_s8] ss:$0 sm:$0xff] }
0x1045   :  { %v6667_v16 = vpop.eup %6666  ;;  %v7984_v44 = vadd.f32 %v4100_v3, %v4099_v5 }
0x1046   :  { %v4096_v4 = vadd.f32 1.0, %v6667_v16 }
0x1047   :  { %6668 = vtanh.f32 %v7984_v44 }
0x1048   :  { %6670 = vrcp.f32 %v4096_v4 }
0x1051   :  { %v6669_v46 = vpop.eup %6668 }
0x1052   :  { %v6671_v38 = vpop.eup %6670 }
0x1053   :  { %v4103_v7 = vmul.f32 %v6671_v38, %v6669_v46 }
0x1055   :  { %4909 = vmatmul.mubr.f32.vlgmr.msra.gmra.mrb[38].mxu0 %v4103_v7  ;;  %4332 = vmatmul.mubr.f32.vlgmr.msra.gmra.mrb[30].mxu1 %v4103_v7 }
0x1056   :  { %6205 = vmatpush1.bf16.msra.mxu0 %v7502_v39  ;;  %4260 = vmatprep.mubr.f32.mxu0 %v6862_v0  ;;  %v4368_v39 = vld [vmem:[#allocation13 + $0x388] sm:$0xff] }
0x1057   :  { %6207 = vmatprep.subr.bf16.mxu0 %v7510_v61  ;;  %4943 = vmatprep.mubr.msk.f32.mxu1 %vm6864_vm0, %v6862_v0  ;;  %v4367_v0 = vld [vmem:[#allocation13 + $0x380] sm:$0xff] }
0x1058   :  { %v6267_v61 = vpack.c.bf16 %v4368_v39, %v4367_v0 }
0x105a   :  { %6209 = vmatpush1.bf16.msra.mxu0 %v7514_v12  ;;  %6268 = vmatpush3.bf16.msra.mxu1 %v6267_v61  ;;  %v4369_v12 = vld [vmem:[#allocation13 + $0x390] sm:$0xff] }
0x105b   :  { %6211 = vmatprep.subr.bf16.mxu0 %v7522_v53  ;;  %6269 = vmatprep.subr.bf16.mxu1 %v6863_v25  ;;  %v4370_v53 = vld [vmem:[#allocation13 + $0x398] sm:$0xff] }
0x105e   :  { %6213 = vmatpush1.bf16.msra.mxu0 %v7526_v6  ;;  %v6270_v6 = vpack.c.bf16 %v4370_v53, %v4369_v12 }
0x105f   :  { %6215 = vmatprep.subr.bf16.mxu0 %v7534_v29  ;;  %v4371_v29 = vld [vmem:[#allocation13 + $0x3a0] sm:$0xff] }
0x1060   :  { %6271 = vmatpush3.bf16.msra.mxu1 %v6270_v6 }
0x1061   :  { %6272 = vmatprep.subr.bf16.mxu1 %v6863_v25 }
0x1062   :  { %6217 = vmatpush1.bf16.msra.mxu0 %v7538_v48  ;;  %v4372_v48 = vld [vmem:[#allocation13 + $0x3a8] sm:$0xff] }
0x1063   :  { %6219 = vmatprep.subr.bf16.mxu0 %v7545_v22  ;;  %v6273_v22 = vpack.c.bf16 %v4372_v48, %v4371_v29 }
0x1065   :  { %6274 = vmatpush3.bf16.msra.mxu1 %v6273_v22 }
0x1066   :  { %6221 = vmatpush1.bf16.msra.mxu0 %v7550_v27  ;;  %6275 = vmatprep.subr.bf16.mxu1 %v6863_v25  ;;  %v4373_v27 = vld [vmem:[#allocation13 + $0x3b0] sm:$0xff] }
0x1067   :  { %6223 = vmatprep.subr.bf16.mxu0 %v7556_v52  ;;  %v4374_v52 = vld [vmem:[#allocation13 + $0x3b8] sm:$0xff] }
0x106a   :  { %6225 = vmatpush1.bf16.msra.mxu0 %v7561_v47  ;;  %v6276_v47 = vpack.c.bf16 %v4374_v52, %v4373_v27 }
0x106b   :  { %6227 = vmatprep.subr.bf16.mxu0 %v7567_v10  ;;  %v4375_v10 = vld [vmem:[#allocation13 + $0x3c0] sm:$0xff] }
0x106c   :  { %6277 = vmatpush3.bf16.msra.mxu1 %v6276_v47 }
0x106d   :  { %6278 = vmatprep.subr.bf16.mxu1 %v6863_v25 }
0x106e   :  { %6229 = vmatpush1.bf16.msra.mxu0 %v7573_v40  ;;  %v4376_v40 = vld [vmem:[#allocation13 + $0x3c8] sm:$0xff] }
0x106f   :  { %6231 = vmatprep.subr.bf16.mxu0 %v7582_v14  ;;  %v6279_v14 = vpack.c.bf16 %v4376_v40, %v4375_v10 }
0x1071   :  { %6280 = vmatpush3.bf16.msra.mxu1 %v6279_v14 }
0x1072   :  { %6233 = vmatpush1.bf16.msra.mxu0 %v7586_v17  ;;  %6281 = vmatprep.subr.bf16.mxu1 %v6863_v25  ;;  %v4377_v17 = vld [vmem:[#allocation13 + $0x3d0] sm:$0xff] }
0x1073   :  { %v6282_v63 = vpack.c.bf16 %v4378_v1, %v4377_v17 }
0x1075   :  { %4261 = vmatmul.mubr.f32.vlgmr.msra.gmra.mrb[30].mxu0 %v4103_v7  ;;  %6283 = vmatpush3.bf16.msra.mxu1 %v6282_v63 }
0x1076   :  { %6284 = vmatprep.subr.bf16.mxu1 %v6863_v25 }
0x1079   :  { %6286 = vmatpush3.bf16.msra.mxu1 %v6285_v8 }
0x107a   :  { %6287 = vmatprep.subr.bf16.mxu1 %v6863_v25 }
0x107d   :  { %6289 = vmatpush3.bf16.msra.mxu1 %v6288_v2 }
0x1128   :  { %v4187_v15 = vpop.f32.mrb[38].mxu0  ;;  %v4333_v56 = vpop.f32.mrb[30].mxu1 }
0x1129   :  { %v4191_v11 = vadd.f32 %v4187_v15, %v7977_v28  ;;  %v4910_v57 = vpop.f32.mrb[39].mxu0  ;;  %v4335_v49 = vpop.f32.mrb[31].mxu1  ;;  %v6352_v19 = vadd.f32 %v4333_v56, %v7659_v34 }
0x112a   :  { %v6353_v13 = vadd.f32 %v4335_v49, %v7654_v36 }
0x112c   :  { %v4528_v25 = vmul.f32 -1.442695, %v6353_v13 }
0x1148   :  { %v4262_v23 = vpop.f32.mrb[30].mxu0 }
0x1149   :  { %v6336_v33 = vadd.f32 %v4262_v23, %v7644_v21  ;;  %v4264_v45 = vpop.f32.mrb[31].mxu0 }
0x114a   :  { %v6337_v62 = vadd.f32 %v4264_v45, %v7648_v20 }
0x114b   :  { %v4526_v50 = vmul.f32 -1.442695, %v6336_v33 }
0x114c   :  { %v4527_v60 = vmul.f32 -1.442695, %v6337_v62 }
0x114d   :  { %6672 = vpow2.f32 %v4526_v50 }
0x114e   :  { %6674 = vpow2.f32 %v4527_v60 }
0x114f   :  { %6676 = vpow2.f32 %v4528_v25 }
0x1150   :  { %6678 = vtanh.f32 %v6352_v19 }
0x1157   :  { %v6673_v32 = vpop.eup %6672 }
0x1158   :  { %v6675_v59 = vpop.eup %6674  ;;  %v4345_v28 = vadd.f32 1.0, %v6673_v32 }
0x1159   :  { %v4351_v58 = vadd.f32 1.0, %v6675_v59  ;;  %v6677_v21 = vpop.eup %6676 }
0x115a   :  { %6680 = vrcp.f32 %v4345_v28  ;;  %v6679_v35 = vpop.eup %6678  ;;  %v4358_v43 = vadd.f32 1.0, %v6677_v21 }
0x115b   :  { %6682 = vrcp.f32 %v4351_v58 }
0x115c   :  { %6684 = vrcp.f32 %v4358_v43 }
0x1164   :  { %v6681_v20 = vpop.eup %6680 }
0x1165   :  { %v6683_v9 = vpop.eup %6682  ;;  %v4362_v37 = vmul.f32 %v6681_v20, %v6679_v35 }
0x1166   :  { %v4361_v18 = vmul.f32 %v6683_v9, %v7984_v44  ;;  %v6685_v34 = vpop.eup %6684 }
0x1168   :  { %v4363_v36 = vadd.f32 %v4362_v37, %v4361_v18 }
0x116a   :  { %6686 = vtanh.f32 %v4363_v36 }
0x1174   :  { %v6687_v30 = vpop.eup %6686 }
0x1175   :  { %v4365_v42 = vmul.f32 %v6687_v30, %v6685_v34 }
0x1177   :  { %4944 = vmatmul.mubr.f32.vlgmr.msra.gmra.mrb[38].mxu1 %v4365_v42 }
0x124a   :  { %v4449_v51 = vpop.f32.mrb[38].mxu1 }
0x124b   :  { %v4453_v24 = vadd.f32 %v4449_v51, %v4191_v11  ;;  %v4945_v5 = vpop.f32.mrb[39].mxu1 }
0x124d   :  { %v4461_v3 = vadd.f32 %v4529_v55, %v4453_v24 }
0x124f   :  { %4462 = vst [vmem:[#allocation15] sm:$0xff] %v4461_v3 }
0x1250   :  { %6831 = shalt.err (!%p6828_p10)
}
0x1251   :  { %s6832_s27 = scalar_lea.hbm %s8042_s9, 128 }
0x1252   :  { %p6833_p11 = scmp.ne.s32.totalorder %s8042_s9, %s6832_s27  ;;  %p6836_p12 = scmp.lt.u32.totalorder %s6832_s27, %s8042_s9 }
0x1254   :  { %p6838_p13 = pnand %p6836_p12, %p6833_p11 }
0x1256   :  { %6841 = shalt.err (!%p6838_p13)
}
0x1257   :  { %4472 = dma.vmem_to_hbm [thread:$0]  %s4470_s21, 128, %s8042_s9, [#allocation6]  }
0x1258   :  { %6850 = dma.done.wait [#allocation6], 128  }
0x1259   :  { %6851 = vsyncadd [#allocation6], 4294967168 }
0x125a   :  { %4476 = vsyncpa [#allocation5], 1 }
0x125b   :  { %4477 = vsyncpa [#allocation8], 1 }
0x125c   :  { %4478 = vsyncpa [#allocation11], 1 }
0x125d   :  { %4479 = vsyncpa [#allocation14], 1 }
0x125e   :  { %4480 = vsyncpa [#allocation6], 1 }

</bundles_post_ra>
